<compile_context>
chip_gen: v6e
topology: v6e:2x2x1
jax: 0.10.0
libtpu: 0.0.40
codegen_flags: <defaults>
</compile_context>

<pallas_src>
import functools

import numpy as np
import jax
import jax.numpy as jnp
from jax import lax
from jax.experimental import pallas as pl
from jax.experimental.pallas import tpu as pltpu


_SLAB = 256          # lane-slab width processed register-resident (multiple of 128)
_MAX_BLOCK = 1024    # max batch elements per grid step


def _gd_detector_kernel(y_ref, H_ref, x0_ref, out_ref, *,
                        step_size, iterations, M, N, slab, num_slabs):
    """SoA gradient-descent detector.

    Per-block layouts (batch on the 128-wide lane axis):
      y_ref  : (M, TB)     y_soa[m, b]    = y[b, m]
      H_ref  : (M, N, TB)  H_soa[m, n, b] = H[b, m, n]
      x0_ref : (N, TB)
      out_ref: (N, TB)
    """
    c = jnp.float32(2.0 * step_size)

    for s in range(num_slabs):                       # static slab loop
        sl = slice(s * slab, (s + 1) * slab)

        x = x0_ref[:, sl]                            # (N, slab)

        # Hoisted loop invariants for this slab (per batch lane):
        #   bvec = c * H^T y          -> (N, slab)
        #   G    = -c * H^T H  (sym.) -> (N, N, slab)
        bvec = jnp.zeros((N, slab), jnp.float32)
        hth = jnp.zeros((N, N, slab), jnp.float32)
        for m in range(M):                           # static, M is small
            hm = H_ref[m, :, sl]                     # (N, slab)  per-row load
            ym = y_ref[m:m + 1, sl]                  # (1, slab)  sublane bcast
            bvec = bvec + hm * ym
            hth = hth + hm[:, None, :] * hm[None, :, :]
        bvec = c * bvec
        G = (-c) * hth                               # symmetric: G[j] == G[:, j]

        # x <- x + c*(Hty - HtH x)  ==  x + bvec + sum_j G[j] * x[j]
        def gd_body(_, xc):
            acc = xc + bvec
            for j in range(N):                       # static, N is small
                acc = acc + G[j] * xc[j:j + 1, :]
            return acc

        x = lax.fori_loop(0, iterations, gd_body, x, unroll=True)
        out_ref[:, sl] = x                           # lane-dense store


def gd_detector_forward(y, H, x0, *, step_size, iterations, block_batch=None):
    """y: (B, M), H: (B, M, N), x0: (B, N) -> x: (B, N) with M=2rx+2tx, N=2tx."""
    B, M = y.shape
    _, M2, N = H.shape
    assert M2 == M and x0.shape == (B, N)

    # Batch tile per grid step: multiple of _SLAB, capped at _MAX_BLOCK, and
    # (when the batch is big enough) small enough that the grid has >= 2 blocks
    # so both v7x TensorCores get work; on v5e/v6e the grid is just a loop.
    if block_batch is None:
        b_slabs = pl.cdiv(B, _SLAB)
        tb_slabs = max(1, min(_MAX_BLOCK // _SLAB, pl.cdiv(b_slabs, 2)))
        TB = tb_slabs * _SLAB
    else:
        TB = int(block_batch)
    assert TB % _SLAB == 0
    num_blocks = pl.cdiv(B, TB)
    B_pad = num_blocks * TB

    f32 = jnp.float32
    padb = ((0, B_pad - B),)
    # One-time SoA re-layout (this also absorbs the H^T transpose: no separate
    # swapaxes / extra HBM round-trip for H^T). Padded lanes are zeros -> they
    # compute zeros and are sliced off at the end.
    y_soa = jnp.transpose(jnp.pad(y.astype(f32), padb + ((0, 0),)), (1, 0))
    H_soa = jnp.transpose(jnp.pad(H.astype(f32), padb + ((0, 0), (0, 0))), (1, 2, 0))
    x_soa = jnp.transpose(jnp.pad(x0.astype(f32), padb + ((0, 0),)), (1, 0))

    kernel = functools.partial(
        _gd_detector_kernel,
        step_size=float(step_size), iterations=int(iterations),
        M=M, N=N, slab=_SLAB, num_slabs=TB // _SLAB)

    out = pl.pallas_call(
        kernel,
        out_shape=jax.ShapeDtypeStruct((N, B_pad), f32),
        grid_spec=pltpu.PrefetchScalarGridSpec(
            num_scalar_prefetch=0,
            grid=(num_blocks,),
            in_specs=[
                pl.BlockSpec((M, TB), lambda b: (0, b)),        # y  (SoA)
                pl.BlockSpec((M, N, TB), lambda b: (0, 0, b)),  # H  (SoA)
                pl.BlockSpec((N, TB), lambda b: (0, b)),        # x0 (SoA)
            ],
            out_specs=pl.BlockSpec((N, TB), lambda b: (0, b)),
        ),
        compiler_params=pltpu.CompilerParams(
            dimension_semantics=("parallel",)),   # batch blocks split across TCs
    )(y_soa, H_soa, x_soa)

    return jnp.transpose(out, (1, 0))[:B]


if __name__ == "__main__":
    # Small shapes consistent with the module: y (B, 2rx+2tx), H (B, 2rx+2tx, 2tx).
    batch = 2
    rx, tx = 8, 4
    M = 2 * rx + 2 * tx      # 24
    N = 2 * tx               # 8
    step_size = 0.005
    iterations = 16

    key = jax.random.PRNGKey(0)
    ky, kH, kx = jax.random.split(key, 3)
    y = jax.random.normal(ky, (batch, M), jnp.float32)
    H = jax.random.normal(kH, (batch, M, N), jnp.float32)
    x0 = 0.1 * jax.random.normal(kx, (batch, N), jnp.float32)

    fwd = jax.jit(functools.partial(gd_detector_forward,
                                    step_size=step_size, iterations=iterations))
    x = jax.block_until_ready(fwd(y, H, x0))

    # Host-side float64 reference mirroring the PyTorch forward exactly.
    yn = np.asarray(y, np.float64)
    Hn = np.asarray(H, np.float64)
    xr = np.asarray(x0, np.float64)
    Hty_r = np.einsum("bmn,bm->bn", Hn, yn)
    HtH_r = np.einsum("bmi,bmj->bij", Hn, Hn)
    for _ in range(iterations):
        xr = xr + 2.0 * step_size * (Hty_r - np.einsum("bij,bj->bi", HtH_r, xr))

    xk = np.asarray(x, np.float64)
    assert np.all(np.isfinite(xk))
    rel_err = float(np.max(np.abs(xk - xr)) / (np.max(np.abs(xr)) + 1e-12))
    assert rel_err < 1e-4, f"mismatch vs reference: rel_err={rel_err}"
    print("KERNEL_OK")
</pallas_src>

<mosaic_0001>
module attributes {stable_mosaic.version = 11 : i64} {
  func.func @_gd_detector_kernel(%arg0: i32, %arg1: memref<24x256xf32, #tpu.memory_space<vmem>>, %arg2: memref<24x8x256xf32, #tpu.memory_space<vmem>>, %arg3: memref<8x256xf32, #tpu.memory_space<vmem>>, %arg4: memref<8x256xf32, #tpu.memory_space<vmem>>) attributes {dimension_semantics = [#tpu.dimension_semantics<parallel>], iteration_bounds = array<i64: 1>, scalar_prefetch = 0 : i64, scratch_operands = 0 : i64, tpu.core_type = #tpu.core_type<tc>, window_params = [{transform_indices = @transform_0, window_bounds = array<i64: 24, 256>}, {transform_indices = @transform_1, window_bounds = array<i64: 24, 8, 256>}, {transform_indices = @transform_2, window_bounds = array<i64: 8, 256>}, {transform_indices = @transform_3, window_bounds = array<i64: 8, 256>}]} {
    %c0 = arith.constant 0 : index
    %c0_0 = arith.constant 0 : index
    %0 = vector.load %arg3[%c0, %c0_0] : memref<8x256xf32, #tpu.memory_space<vmem>>, vector<8x256xf32>
    %cst = arith.constant 0.000000e+00 : f32
    %1 = vector.broadcast %cst : f32 to vector<8x256xf32>
    %cst_1 = arith.constant 0.000000e+00 : f32
    %2 = vector.broadcast %cst_1 : f32 to vector<8x8x256xf32>
    %c0_2 = arith.constant 0 : index
    %c0_3 = arith.constant 0 : index
    %c0_4 = arith.constant 0 : index
    %3 = vector.load %arg2[%c0_2, %c0_3, %c0_4] : memref<24x8x256xf32, #tpu.memory_space<vmem>>, vector<1x8x256xf32>
    %4 = vector.shape_cast %3 : vector<1x8x256xf32> to vector<8x256xf32>
    %c0_5 = arith.constant 0 : index
    %c0_6 = arith.constant 0 : index
    %5 = vector.load %arg1[%c0_5, %c0_6] : memref<24x256xf32, #tpu.memory_space<vmem>>, vector<1x256xf32>
    %6 = vector.broadcast %5 : vector<1x256xf32> to vector<8x256xf32>
    %7 = arith.mulf %4, %6 : vector<8x256xf32>
    %8 = arith.addf %1, %7 : vector<8x256xf32>
    %9 = vector.shape_cast %4 : vector<8x256xf32> to vector<8x1x256xf32>
    %10 = vector.shape_cast %4 : vector<8x256xf32> to vector<1x8x256xf32>
    %11 = vector.broadcast %9 : vector<8x1x256xf32> to vector<8x8x256xf32>
    %12 = vector.broadcast %10 : vector<1x8x256xf32> to vector<8x8x256xf32>
    %13 = arith.mulf %11, %12 : vector<8x8x256xf32>
    %14 = arith.addf %2, %13 : vector<8x8x256xf32>
    %c1 = arith.constant 1 : index
    %c0_7 = arith.constant 0 : index
    %c0_8 = arith.constant 0 : index
    %15 = vector.load %arg2[%c1, %c0_7, %c0_8] : memref<24x8x256xf32, #tpu.memory_space<vmem>>, vector<1x8x256xf32>
    %16 = vector.shape_cast %15 : vector<1x8x256xf32> to vector<8x256xf32>
    %c1_9 = arith.constant 1 : index
    %c0_10 = arith.constant 0 : index
    %17 = vector.load %arg1[%c1_9, %c0_10] : memref<24x256xf32, #tpu.memory_space<vmem>>, vector<1x256xf32>
    %18 = vector.broadcast %17 : vector<1x256xf32> to vector<8x256xf32>
    %19 = arith.mulf %16, %18 : vector<8x256xf32>
    %20 = arith.addf %8, %19 : vector<8x256xf32>
    %21 = vector.shape_cast %16 : vector<8x256xf32> to vector<8x1x256xf32>
    %22 = vector.shape_cast %16 : vector<8x256xf32> to vector<1x8x256xf32>
    %23 = vector.broadcast %21 : vector<8x1x256xf32> to vector<8x8x256xf32>
    %24 = vector.broadcast %22 : vector<1x8x256xf32> to vector<8x8x256xf32>
    %25 = arith.mulf %23, %24 : vector<8x8x256xf32>
    %26 = arith.addf %14, %25 : vector<8x8x256xf32>
    %c2 = arith.constant 2 : index
    %c0_11 = arith.constant 0 : index
    %c0_12 = arith.constant 0 : index
    %27 = vector.load %arg2[%c2, %c0_11, %c0_12] : memref<24x8x256xf32, #tpu.memory_space<vmem>>, vector<1x8x256xf32>
    %28 = vector.shape_cast %27 : vector<1x8x256xf32> to vector<8x256xf32>
    %c2_13 = arith.constant 2 : index
    %c0_14 = arith.constant 0 : index
    %29 = vector.load %arg1[%c2_13, %c0_14] : memref<24x256xf32, #tpu.memory_space<vmem>>, vector<1x256xf32>
    %30 = vector.broadcast %29 : vector<1x256xf32> to vector<8x256xf32>
    %31 = arith.mulf %28, %30 : vector<8x256xf32>
    %32 = arith.addf %20, %31 : vector<8x256xf32>
    %33 = vector.shape_cast %28 : vector<8x256xf32> to vector<8x1x256xf32>
    %34 = vector.shape_cast %28 : vector<8x256xf32> to vector<1x8x256xf32>
    %35 = vector.broadcast %33 : vector<8x1x256xf32> to vector<8x8x256xf32>
    %36 = vector.broadcast %34 : vector<1x8x256xf32> to vector<8x8x256xf32>
    %37 = arith.mulf %35, %36 : vector<8x8x256xf32>
    %38 = arith.addf %26, %37 : vector<8x8x256xf32>
    %c3 = arith.constant 3 : index
    %c0_15 = arith.constant 0 : index
    %c0_16 = arith.constant 0 : index
    %39 = vector.load %arg2[%c3, %c0_15, %c0_16] : memref<24x8x256xf32, #tpu.memory_space<vmem>>, vector<1x8x256xf32>
    %40 = vector.shape_cast %39 : vector<1x8x256xf32> to vector<8x256xf32>
    %c3_17 = arith.constant 3 : index
    %c0_18 = arith.constant 0 : index
    %41 = vector.load %arg1[%c3_17, %c0_18] : memref<24x256xf32, #tpu.memory_space<vmem>>, vector<1x256xf32>
    %42 = vector.broadcast %41 : vector<1x256xf32> to vector<8x256xf32>
    %43 = arith.mulf %40, %42 : vector<8x256xf32>
    %44 = arith.addf %32, %43 : vector<8x256xf32>
    %45 = vector.shape_cast %40 : vector<8x256xf32> to vector<8x1x256xf32>
    %46 = vector.shape_cast %40 : vector<8x256xf32> to vector<1x8x256xf32>
    %47 = vector.broadcast %45 : vector<8x1x256xf32> to vector<8x8x256xf32>
    %48 = vector.broadcast %46 : vector<1x8x256xf32> to vector<8x8x256xf32>
    %49 = arith.mulf %47, %48 : vector<8x8x256xf32>
    %50 = arith.addf %38, %49 : vector<8x8x256xf32>
    %c4 = arith.constant 4 : index
    %c0_19 = arith.constant 0 : index
    %c0_20 = arith.constant 0 : index
    %51 = vector.load %arg2[%c4, %c0_19, %c0_20] : memref<24x8x256xf32, #tpu.memory_space<vmem>>, vector<1x8x256xf32>
    %52 = vector.shape_cast %51 : vector<1x8x256xf32> to vector<8x256xf32>
    %c4_21 = arith.constant 4 : index
    %c0_22 = arith.constant 0 : index
    %53 = vector.load %arg1[%c4_21, %c0_22] : memref<24x256xf32, #tpu.memory_space<vmem>>, vector<1x256xf32>
    %54 = vector.broadcast %53 : vector<1x256xf32> to vector<8x256xf32>
    %55 = arith.mulf %52, %54 : vector<8x256xf32>
    %56 = arith.addf %44, %55 : vector<8x256xf32>
    %57 = vector.shape_cast %52 : vector<8x256xf32> to vector<8x1x256xf32>
    %58 = vector.shape_cast %52 : vector<8x256xf32> to vector<1x8x256xf32>
    %59 = vector.broadcast %57 : vector<8x1x256xf32> to vector<8x8x256xf32>
    %60 = vector.broadcast %58 : vector<1x8x256xf32> to vector<8x8x256xf32>
    %61 = arith.mulf %59, %60 : vector<8x8x256xf32>
    %62 = arith.addf %50, %61 : vector<8x8x256xf32>
    %c5 = arith.constant 5 : index
    %c0_23 = arith.constant 0 : index
    %c0_24 = arith.constant 0 : index
    %63 = vector.load %arg2[%c5, %c0_23, %c0_24] : memref<24x8x256xf32, #tpu.memory_space<vmem>>, vector<1x8x256xf32>
    %64 = vector.shape_cast %63 : vector<1x8x256xf32> to vector<8x256xf32>
    %c5_25 = arith.constant 5 : index
    %c0_26 = arith.constant 0 : index
    %65 = vector.load %arg1[%c5_25, %c0_26] : memref<24x256xf32, #tpu.memory_space<vmem>>, vector<1x256xf32>
    %66 = vector.broadcast %65 : vector<1x256xf32> to vector<8x256xf32>
    %67 = arith.mulf %64, %66 : vector<8x256xf32>
    %68 = arith.addf %56, %67 : vector<8x256xf32>
    %69 = vector.shape_cast %64 : vector<8x256xf32> to vector<8x1x256xf32>
    %70 = vector.shape_cast %64 : vector<8x256xf32> to vector<1x8x256xf32>
    %71 = vector.broadcast %69 : vector<8x1x256xf32> to vector<8x8x256xf32>
    %72 = vector.broadcast %70 : vector<1x8x256xf32> to vector<8x8x256xf32>
    %73 = arith.mulf %71, %72 : vector<8x8x256xf32>
    %74 = arith.addf %62, %73 : vector<8x8x256xf32>
    %c6 = arith.constant 6 : index
    %c0_27 = arith.constant 0 : index
    %c0_28 = arith.constant 0 : index
    %75 = vector.load %arg2[%c6, %c0_27, %c0_28] : memref<24x8x256xf32, #tpu.memory_space<vmem>>, vector<1x8x256xf32>
    %76 = vector.shape_cast %75 : vector<1x8x256xf32> to vector<8x256xf32>
    %c6_29 = arith.constant 6 : index
    %c0_30 = arith.constant 0 : index
    %77 = vector.load %arg1[%c6_29, %c0_30] : memref<24x256xf32, #tpu.memory_space<vmem>>, vector<1x256xf32>
    %78 = vector.broadcast %77 : vector<1x256xf32> to vector<8x256xf32>
    %79 = arith.mulf %76, %78 : vector<8x256xf32>
    %80 = arith.addf %68, %79 : vector<8x256xf32>
    %81 = vector.shape_cast %76 : vector<8x256xf32> to vector<8x1x256xf32>
    %82 = vector.shape_cast %76 : vector<8x256xf32> to vector<1x8x256xf32>
    %83 = vector.broadcast %81 : vector<8x1x256xf32> to vector<8x8x256xf32>
    %84 = vector.broadcast %82 : vector<1x8x256xf32> to vector<8x8x256xf32>
    %85 = arith.mulf %83, %84 : vector<8x8x256xf32>
    %86 = arith.addf %74, %85 : vector<8x8x256xf32>
    %c7 = arith.constant 7 : index
    %c0_31 = arith.constant 0 : index
    %c0_32 = arith.constant 0 : index
    %87 = vector.load %arg2[%c7, %c0_31, %c0_32] : memref<24x8x256xf32, #tpu.memory_space<vmem>>, vector<1x8x256xf32>
    %88 = vector.shape_cast %87 : vector<1x8x256xf32> to vector<8x256xf32>
    %c7_33 = arith.constant 7 : index
    %c0_34 = arith.constant 0 : index
    %89 = vector.load %arg1[%c7_33, %c0_34] : memref<24x256xf32, #tpu.memory_space<vmem>>, vector<1x256xf32>
    %90 = vector.broadcast %89 : vector<1x256xf32> to vector<8x256xf32>
    %91 = arith.mulf %88, %90 : vector<8x256xf32>
    %92 = arith.addf %80, %91 : vector<8x256xf32>
    %93 = vector.shape_cast %88 : vector<8x256xf32> to vector<8x1x256xf32>
    %94 = vector.shape_cast %88 : vector<8x256xf32> to vector<1x8x256xf32>
    %95 = vector.broadcast %93 : vector<8x1x256xf32> to vector<8x8x256xf32>
    %96 = vector.broadcast %94 : vector<1x8x256xf32> to vector<8x8x256xf32>
    %97 = arith.mulf %95, %96 : vector<8x8x256xf32>
    %98 = arith.addf %86, %97 : vector<8x8x256xf32>
    %c8 = arith.constant 8 : index
    %c0_35 = arith.constant 0 : index
    %c0_36 = arith.constant 0 : index
    %99 = vector.load %arg2[%c8, %c0_35, %c0_36] : memref<24x8x256xf32, #tpu.memory_space<vmem>>, vector<1x8x256xf32>
    %100 = vector.shape_cast %99 : vector<1x8x256xf32> to vector<8x256xf32>
    %c8_37 = arith.constant 8 : index
    %c0_38 = arith.constant 0 : index
    %101 = vector.load %arg1[%c8_37, %c0_38] : memref<24x256xf32, #tpu.memory_space<vmem>>, vector<1x256xf32>
    %102 = vector.broadcast %101 : vector<1x256xf32> to vector<8x256xf32>
    %103 = arith.mulf %100, %102 : vector<8x256xf32>
    %104 = arith.addf %92, %103 : vector<8x256xf32>
    %105 = vector.shape_cast %100 : vector<8x256xf32> to vector<8x1x256xf32>
    %106 = vector.shape_cast %100 : vector<8x256xf32> to vector<1x8x256xf32>
    %107 = vector.broadcast %105 : vector<8x1x256xf32> to vector<8x8x256xf32>
    %108 = vector.broadcast %106 : vector<1x8x256xf32> to vector<8x8x256xf32>
    %109 = arith.mulf %107, %108 : vector<8x8x256xf32>
    %110 = arith.addf %98, %109 : vector<8x8x256xf32>
    %c9 = arith.constant 9 : index
    %c0_39 = arith.constant 0 : index
    %c0_40 = arith.constant 0 : index
    %111 = vector.load %arg2[%c9, %c0_39, %c0_40] : memref<24x8x256xf32, #tpu.memory_space<vmem>>, vector<1x8x256xf32>
    %112 = vector.shape_cast %111 : vector<1x8x256xf32> to vector<8x256xf32>
    %c9_41 = arith.constant 9 : index
    %c0_42 = arith.constant 0 : index
    %113 = vector.load %arg1[%c9_41, %c0_42] : memref<24x256xf32, #tpu.memory_space<vmem>>, vector<1x256xf32>
    %114 = vector.broadcast %113 : vector<1x256xf32> to vector<8x256xf32>
    %115 = arith.mulf %112, %114 : vector<8x256xf32>
    %116 = arith.addf %104, %115 : vector<8x256xf32>
    %117 = vector.shape_cast %112 : vector<8x256xf32> to vector<8x1x256xf32>
    %118 = vector.shape_cast %112 : vector<8x256xf32> to vector<1x8x256xf32>
    %119 = vector.broadcast %117 : vector<8x1x256xf32> to vector<8x8x256xf32>
    %120 = vector.broadcast %118 : vector<1x8x256xf32> to vector<8x8x256xf32>
    %121 = arith.mulf %119, %120 : vector<8x8x256xf32>
    %122 = arith.addf %110, %121 : vector<8x8x256xf32>
    %c10 = arith.constant 10 : index
    %c0_43 = arith.constant 0 : index
    %c0_44 = arith.constant 0 : index
    %123 = vector.load %arg2[%c10, %c0_43, %c0_44] : memref<24x8x256xf32, #tpu.memory_space<vmem>>, vector<1x8x256xf32>
    %124 = vector.shape_cast %123 : vector<1x8x256xf32> to vector<8x256xf32>
    %c10_45 = arith.constant 10 : index
    %c0_46 = arith.constant 0 : index
    %125 = vector.load %arg1[%c10_45, %c0_46] : memref<24x256xf32, #tpu.memory_space<vmem>>, vector<1x256xf32>
    %126 = vector.broadcast %125 : vector<1x256xf32> to vector<8x256xf32>
    %127 = arith.mulf %124, %126 : vector<8x256xf32>
    %128 = arith.addf %116, %127 : vector<8x256xf32>
    %129 = vector.shape_cast %124 : vector<8x256xf32> to vector<8x1x256xf32>
    %130 = vector.shape_cast %124 : vector<8x256xf32> to vector<1x8x256xf32>
    %131 = vector.broadcast %129 : vector<8x1x256xf32> to vector<8x8x256xf32>
    %132 = vector.broadcast %130 : vector<1x8x256xf32> to vector<8x8x256xf32>
    %133 = arith.mulf %131, %132 : vector<8x8x256xf32>
    %134 = arith.addf %122, %133 : vector<8x8x256xf32>
    %c11 = arith.constant 11 : index
    %c0_47 = arith.constant 0 : index
    %c0_48 = arith.constant 0 : index
    %135 = vector.load %arg2[%c11, %c0_47, %c0_48] : memref<24x8x256xf32, #tpu.memory_space<vmem>>, vector<1x8x256xf32>
    %136 = vector.shape_cast %135 : vector<1x8x256xf32> to vector<8x256xf32>
    %c11_49 = arith.constant 11 : index
    %c0_50 = arith.constant 0 : index
    %137 = vector.load %arg1[%c11_49, %c0_50] : memref<24x256xf32, #tpu.memory_space<vmem>>, vector<1x256xf32>
    %138 = vector.broadcast %137 : vector<1x256xf32> to vector<8x256xf32>
    %139 = arith.mulf %136, %138 : vector<8x256xf32>
    %140 = arith.addf %128, %139 : vector<8x256xf32>
    %141 = vector.shape_cast %136 : vector<8x256xf32> to vector<8x1x256xf32>
    %142 = vector.shape_cast %136 : vector<8x256xf32> to vector<1x8x256xf32>
    %143 = vector.broadcast %141 : vector<8x1x256xf32> to vector<8x8x256xf32>
    %144 = vector.broadcast %142 : vector<1x8x256xf32> to vector<8x8x256xf32>
    %145 = arith.mulf %143, %144 : vector<8x8x256xf32>
    %146 = arith.addf %134, %145 : vector<8x8x256xf32>
    %c12 = arith.constant 12 : index
    %c0_51 = arith.constant 0 : index
    %c0_52 = arith.constant 0 : index
    %147 = vector.load %arg2[%c12, %c0_51, %c0_52] : memref<24x8x256xf32, #tpu.memory_space<vmem>>, vector<1x8x256xf32>
    %148 = vector.shape_cast %147 : vector<1x8x256xf32> to vector<8x256xf32>
    %c12_53 = arith.constant 12 : index
    %c0_54 = arith.constant 0 : index
    %149 = vector.load %arg1[%c12_53, %c0_54] : memref<24x256xf32, #tpu.memory_space<vmem>>, vector<1x256xf32>
    %150 = vector.broadcast %149 : vector<1x256xf32> to vector<8x256xf32>
    %151 = arith.mulf %148, %150 : vector<8x256xf32>
    %152 = arith.addf %140, %151 : vector<8x256xf32>
    %153 = vector.shape_cast %148 : vector<8x256xf32> to vector<8x1x256xf32>
    %154 = vector.shape_cast %148 : vector<8x256xf32> to vector<1x8x256xf32>
    %155 = vector.broadcast %153 : vector<8x1x256xf32> to vector<8x8x256xf32>
    %156 = vector.broadcast %154 : vector<1x8x256xf32> to vector<8x8x256xf32>
    %157 = arith.mulf %155, %156 : vector<8x8x256xf32>
    %158 = arith.addf %146, %157 : vector<8x8x256xf32>
    %c13 = arith.constant 13 : index
    %c0_55 = arith.constant 0 : index
    %c0_56 = arith.constant 0 : index
    %159 = vector.load %arg2[%c13, %c0_55, %c0_56] : memref<24x8x256xf32, #tpu.memory_space<vmem>>, vector<1x8x256xf32>
    %160 = vector.shape_cast %159 : vector<1x8x256xf32> to vector<8x256xf32>
    %c13_57 = arith.constant 13 : index
    %c0_58 = arith.constant 0 : index
    %161 = vector.load %arg1[%c13_57, %c0_58] : memref<24x256xf32, #tpu.memory_space<vmem>>, vector<1x256xf32>
    %162 = vector.broadcast %161 : vector<1x256xf32> to vector<8x256xf32>
    %163 = arith.mulf %160, %162 : vector<8x256xf32>
    %164 = arith.addf %152, %163 : vector<8x256xf32>
    %165 = vector.shape_cast %160 : vector<8x256xf32> to vector<8x1x256xf32>
    %166 = vector.shape_cast %160 : vector<8x256xf32> to vector<1x8x256xf32>
    %167 = vector.broadcast %165 : vector<8x1x256xf32> to vector<8x8x256xf32>
    %168 = vector.broadcast %166 : vector<1x8x256xf32> to vector<8x8x256xf32>
    %169 = arith.mulf %167, %168 : vector<8x8x256xf32>
    %170 = arith.addf %158, %169 : vector<8x8x256xf32>
    %c14 = arith.constant 14 : index
    %c0_59 = arith.constant 0 : index
    %c0_60 = arith.constant 0 : index
    %171 = vector.load %arg2[%c14, %c0_59, %c0_60] : memref<24x8x256xf32, #tpu.memory_space<vmem>>, vector<1x8x256xf32>
    %172 = vector.shape_cast %171 : vector<1x8x256xf32> to vector<8x256xf32>
    %c14_61 = arith.constant 14 : index
    %c0_62 = arith.constant 0 : index
    %173 = vector.load %arg1[%c14_61, %c0_62] : memref<24x256xf32, #tpu.memory_space<vmem>>, vector<1x256xf32>
    %174 = vector.broadcast %173 : vector<1x256xf32> to vector<8x256xf32>
    %175 = arith.mulf %172, %174 : vector<8x256xf32>
    %176 = arith.addf %164, %175 : vector<8x256xf32>
    %177 = vector.shape_cast %172 : vector<8x256xf32> to vector<8x1x256xf32>
    %178 = vector.shape_cast %172 : vector<8x256xf32> to vector<1x8x256xf32>
    %179 = vector.broadcast %177 : vector<8x1x256xf32> to vector<8x8x256xf32>
    %180 = vector.broadcast %178 : vector<1x8x256xf32> to vector<8x8x256xf32>
    %181 = arith.mulf %179, %180 : vector<8x8x256xf32>
    %182 = arith.addf %170, %181 : vector<8x8x256xf32>
    %c15 = arith.constant 15 : index
    %c0_63 = arith.constant 0 : index
    %c0_64 = arith.constant 0 : index
    %183 = vector.load %arg2[%c15, %c0_63, %c0_64] : memref<24x8x256xf32, #tpu.memory_space<vmem>>, vector<1x8x256xf32>
    %184 = vector.shape_cast %183 : vector<1x8x256xf32> to vector<8x256xf32>
    %c15_65 = arith.constant 15 : index
    %c0_66 = arith.constant 0 : index
    %185 = vector.load %arg1[%c15_65, %c0_66] : memref<24x256xf32, #tpu.memory_space<vmem>>, vector<1x256xf32>
    %186 = vector.broadcast %185 : vector<1x256xf32> to vector<8x256xf32>
    %187 = arith.mulf %184, %186 : vector<8x256xf32>
    %188 = arith.addf %176, %187 : vector<8x256xf32>
    %189 = vector.shape_cast %184 : vector<8x256xf32> to vector<8x1x256xf32>
    %190 = vector.shape_cast %184 : vector<8x256xf32> to vector<1x8x256xf32>
    %191 = vector.broadcast %189 : vector<8x1x256xf32> to vector<8x8x256xf32>
    %192 = vector.broadcast %190 : vector<1x8x256xf32> to vector<8x8x256xf32>
    %193 = arith.mulf %191, %192 : vector<8x8x256xf32>
    %194 = arith.addf %182, %193 : vector<8x8x256xf32>
    %c16 = arith.constant 16 : index
    %c0_67 = arith.constant 0 : index
    %c0_68 = arith.constant 0 : index
    %195 = vector.load %arg2[%c16, %c0_67, %c0_68] : memref<24x8x256xf32, #tpu.memory_space<vmem>>, vector<1x8x256xf32>
    %196 = vector.shape_cast %195 : vector<1x8x256xf32> to vector<8x256xf32>
    %c16_69 = arith.constant 16 : index
    %c0_70 = arith.constant 0 : index
    %197 = vector.load %arg1[%c16_69, %c0_70] : memref<24x256xf32, #tpu.memory_space<vmem>>, vector<1x256xf32>
    %198 = vector.broadcast %197 : vector<1x256xf32> to vector<8x256xf32>
    %199 = arith.mulf %196, %198 : vector<8x256xf32>
    %200 = arith.addf %188, %199 : vector<8x256xf32>
    %201 = vector.shape_cast %196 : vector<8x256xf32> to vector<8x1x256xf32>
    %202 = vector.shape_cast %196 : vector<8x256xf32> to vector<1x8x256xf32>
    %203 = vector.broadcast %201 : vector<8x1x256xf32> to vector<8x8x256xf32>
    %204 = vector.broadcast %202 : vector<1x8x256xf32> to vector<8x8x256xf32>
    %205 = arith.mulf %203, %204 : vector<8x8x256xf32>
    %206 = arith.addf %194, %205 : vector<8x8x256xf32>
    %c17 = arith.constant 17 : index
    %c0_71 = arith.constant 0 : index
    %c0_72 = arith.constant 0 : index
    %207 = vector.load %arg2[%c17, %c0_71, %c0_72] : memref<24x8x256xf32, #tpu.memory_space<vmem>>, vector<1x8x256xf32>
    %208 = vector.shape_cast %207 : vector<1x8x256xf32> to vector<8x256xf32>
    %c17_73 = arith.constant 17 : index
    %c0_74 = arith.constant 0 : index
    %209 = vector.load %arg1[%c17_73, %c0_74] : memref<24x256xf32, #tpu.memory_space<vmem>>, vector<1x256xf32>
    %210 = vector.broadcast %209 : vector<1x256xf32> to vector<8x256xf32>
    %211 = arith.mulf %208, %210 : vector<8x256xf32>
    %212 = arith.addf %200, %211 : vector<8x256xf32>
    %213 = vector.shape_cast %208 : vector<8x256xf32> to vector<8x1x256xf32>
    %214 = vector.shape_cast %208 : vector<8x256xf32> to vector<1x8x256xf32>
    %215 = vector.broadcast %213 : vector<8x1x256xf32> to vector<8x8x256xf32>
    %216 = vector.broadcast %214 : vector<1x8x256xf32> to vector<8x8x256xf32>
    %217 = arith.mulf %215, %216 : vector<8x8x256xf32>
    %218 = arith.addf %206, %217 : vector<8x8x256xf32>
    %c18 = arith.constant 18 : index
    %c0_75 = arith.constant 0 : index
    %c0_76 = arith.constant 0 : index
    %219 = vector.load %arg2[%c18, %c0_75, %c0_76] : memref<24x8x256xf32, #tpu.memory_space<vmem>>, vector<1x8x256xf32>
    %220 = vector.shape_cast %219 : vector<1x8x256xf32> to vector<8x256xf32>
    %c18_77 = arith.constant 18 : index
    %c0_78 = arith.constant 0 : index
    %221 = vector.load %arg1[%c18_77, %c0_78] : memref<24x256xf32, #tpu.memory_space<vmem>>, vector<1x256xf32>
    %222 = vector.broadcast %221 : vector<1x256xf32> to vector<8x256xf32>
    %223 = arith.mulf %220, %222 : vector<8x256xf32>
    %224 = arith.addf %212, %223 : vector<8x256xf32>
    %225 = vector.shape_cast %220 : vector<8x256xf32> to vector<8x1x256xf32>
    %226 = vector.shape_cast %220 : vector<8x256xf32> to vector<1x8x256xf32>
    %227 = vector.broadcast %225 : vector<8x1x256xf32> to vector<8x8x256xf32>
    %228 = vector.broadcast %226 : vector<1x8x256xf32> to vector<8x8x256xf32>
    %229 = arith.mulf %227, %228 : vector<8x8x256xf32>
    %230 = arith.addf %218, %229 : vector<8x8x256xf32>
    %c19 = arith.constant 19 : index
    %c0_79 = arith.constant 0 : index
    %c0_80 = arith.constant 0 : index
    %231 = vector.load %arg2[%c19, %c0_79, %c0_80] : memref<24x8x256xf32, #tpu.memory_space<vmem>>, vector<1x8x256xf32>
    %232 = vector.shape_cast %231 : vector<1x8x256xf32> to vector<8x256xf32>
    %c19_81 = arith.constant 19 : index
    %c0_82 = arith.constant 0 : index
    %233 = vector.load %arg1[%c19_81, %c0_82] : memref<24x256xf32, #tpu.memory_space<vmem>>, vector<1x256xf32>
    %234 = vector.broadcast %233 : vector<1x256xf32> to vector<8x256xf32>
    %235 = arith.mulf %232, %234 : vector<8x256xf32>
    %236 = arith.addf %224, %235 : vector<8x256xf32>
    %237 = vector.shape_cast %232 : vector<8x256xf32> to vector<8x1x256xf32>
    %238 = vector.shape_cast %232 : vector<8x256xf32> to vector<1x8x256xf32>
    %239 = vector.broadcast %237 : vector<8x1x256xf32> to vector<8x8x256xf32>
    %240 = vector.broadcast %238 : vector<1x8x256xf32> to vector<8x8x256xf32>
    %241 = arith.mulf %239, %240 : vector<8x8x256xf32>
    %242 = arith.addf %230, %241 : vector<8x8x256xf32>
    %c20 = arith.constant 20 : index
    %c0_83 = arith.constant 0 : index
    %c0_84 = arith.constant 0 : index
    %243 = vector.load %arg2[%c20, %c0_83, %c0_84] : memref<24x8x256xf32, #tpu.memory_space<vmem>>, vector<1x8x256xf32>
    %244 = vector.shape_cast %243 : vector<1x8x256xf32> to vector<8x256xf32>
    %c20_85 = arith.constant 20 : index
    %c0_86 = arith.constant 0 : index
    %245 = vector.load %arg1[%c20_85, %c0_86] : memref<24x256xf32, #tpu.memory_space<vmem>>, vector<1x256xf32>
    %246 = vector.broadcast %245 : vector<1x256xf32> to vector<8x256xf32>
    %247 = arith.mulf %244, %246 : vector<8x256xf32>
    %248 = arith.addf %236, %247 : vector<8x256xf32>
    %249 = vector.shape_cast %244 : vector<8x256xf32> to vector<8x1x256xf32>
    %250 = vector.shape_cast %244 : vector<8x256xf32> to vector<1x8x256xf32>
    %251 = vector.broadcast %249 : vector<8x1x256xf32> to vector<8x8x256xf32>
    %252 = vector.broadcast %250 : vector<1x8x256xf32> to vector<8x8x256xf32>
    %253 = arith.mulf %251, %252 : vector<8x8x256xf32>
    %254 = arith.addf %242, %253 : vector<8x8x256xf32>
    %c21 = arith.constant 21 : index
    %c0_87 = arith.constant 0 : index
    %c0_88 = arith.constant 0 : index
    %255 = vector.load %arg2[%c21, %c0_87, %c0_88] : memref<24x8x256xf32, #tpu.memory_space<vmem>>, vector<1x8x256xf32>
    %256 = vector.shape_cast %255 : vector<1x8x256xf32> to vector<8x256xf32>
    %c21_89 = arith.constant 21 : index
    %c0_90 = arith.constant 0 : index
    %257 = vector.load %arg1[%c21_89, %c0_90] : memref<24x256xf32, #tpu.memory_space<vmem>>, vector<1x256xf32>
    %258 = vector.broadcast %257 : vector<1x256xf32> to vector<8x256xf32>
    %259 = arith.mulf %256, %258 : vector<8x256xf32>
    %260 = arith.addf %248, %259 : vector<8x256xf32>
    %261 = vector.shape_cast %256 : vector<8x256xf32> to vector<8x1x256xf32>
    %262 = vector.shape_cast %256 : vector<8x256xf32> to vector<1x8x256xf32>
    %263 = vector.broadcast %261 : vector<8x1x256xf32> to vector<8x8x256xf32>
    %264 = vector.broadcast %262 : vector<1x8x256xf32> to vector<8x8x256xf32>
    %265 = arith.mulf %263, %264 : vector<8x8x256xf32>
    %266 = arith.addf %254, %265 : vector<8x8x256xf32>
    %c22 = arith.constant 22 : index
    %c0_91 = arith.constant 0 : index
    %c0_92 = arith.constant 0 : index
    %267 = vector.load %arg2[%c22, %c0_91, %c0_92] : memref<24x8x256xf32, #tpu.memory_space<vmem>>, vector<1x8x256xf32>
    %268 = vector.shape_cast %267 : vector<1x8x256xf32> to vector<8x256xf32>
    %c22_93 = arith.constant 22 : index
    %c0_94 = arith.constant 0 : index
    %269 = vector.load %arg1[%c22_93, %c0_94] : memref<24x256xf32, #tpu.memory_space<vmem>>, vector<1x256xf32>
    %270 = vector.broadcast %269 : vector<1x256xf32> to vector<8x256xf32>
    %271 = arith.mulf %268, %270 : vector<8x256xf32>
    %272 = arith.addf %260, %271 : vector<8x256xf32>
    %273 = vector.shape_cast %268 : vector<8x256xf32> to vector<8x1x256xf32>
    %274 = vector.shape_cast %268 : vector<8x256xf32> to vector<1x8x256xf32>
    %275 = vector.broadcast %273 : vector<8x1x256xf32> to vector<8x8x256xf32>
    %276 = vector.broadcast %274 : vector<1x8x256xf32> to vector<8x8x256xf32>
    %277 = arith.mulf %275, %276 : vector<8x8x256xf32>
    %278 = arith.addf %266, %277 : vector<8x8x256xf32>
    %c23 = arith.constant 23 : index
    %c0_95 = arith.constant 0 : index
    %c0_96 = arith.constant 0 : index
    %279 = vector.load %arg2[%c23, %c0_95, %c0_96] : memref<24x8x256xf32, #tpu.memory_space<vmem>>, vector<1x8x256xf32>
    %280 = vector.shape_cast %279 : vector<1x8x256xf32> to vector<8x256xf32>
    %c23_97 = arith.constant 23 : index
    %c0_98 = arith.constant 0 : index
    %281 = vector.load %arg1[%c23_97, %c0_98] : memref<24x256xf32, #tpu.memory_space<vmem>>, vector<1x256xf32>
    %282 = vector.broadcast %281 : vector<1x256xf32> to vector<8x256xf32>
    %283 = arith.mulf %280, %282 : vector<8x256xf32>
    %284 = arith.addf %272, %283 : vector<8x256xf32>
    %285 = vector.shape_cast %280 : vector<8x256xf32> to vector<8x1x256xf32>
    %286 = vector.shape_cast %280 : vector<8x256xf32> to vector<1x8x256xf32>
    %287 = vector.broadcast %285 : vector<8x1x256xf32> to vector<8x8x256xf32>
    %288 = vector.broadcast %286 : vector<1x8x256xf32> to vector<8x8x256xf32>
    %289 = arith.mulf %287, %288 : vector<8x8x256xf32>
    %290 = arith.addf %278, %289 : vector<8x8x256xf32>
    %cst_99 = arith.constant 0.00999999977 : f32
    %291 = vector.broadcast %cst_99 : f32 to vector<8x256xf32>
    %292 = arith.mulf %291, %284 : vector<8x256xf32>
    %cst_100 = arith.constant 0.000000e+00 : f32
    %cst_101 = arith.constant 0.00999999977 : f32
    %293 = arith.subf %cst_100, %cst_101 : f32
    %294 = vector.broadcast %293 : f32 to vector<8x8x256xf32>
    %295 = arith.mulf %294, %290 : vector<8x8x256xf32>
    %c0_i32 = arith.constant 0 : i32
    %296 = arith.addf %0, %292 : vector<8x256xf32>
    %297 = vector.extract_strided_slice %295 {offsets = [0, 0, 0], sizes = [1, 8, 256], strides = [1, 1, 1]} : vector<8x8x256xf32> to vector<1x8x256xf32>
    %298 = vector.shape_cast %297 : vector<1x8x256xf32> to vector<8x256xf32>
    %299 = vector.extract_strided_slice %0 {offsets = [0, 0], sizes = [1, 256], strides = [1, 1]} : vector<8x256xf32> to vector<1x256xf32>
    %300 = vector.broadcast %299 : vector<1x256xf32> to vector<8x256xf32>
    %301 = arith.mulf %298, %300 : vector<8x256xf32>
    %302 = arith.addf %296, %301 : vector<8x256xf32>
    %303 = vector.extract_strided_slice %295 {offsets = [1, 0, 0], sizes = [1, 8, 256], strides = [1, 1, 1]} : vector<8x8x256xf32> to vector<1x8x256xf32>
    %304 = vector.shape_cast %303 : vector<1x8x256xf32> to vector<8x256xf32>
    %305 = vector.extract_strided_slice %0 {offsets = [1, 0], sizes = [1, 256], strides = [1, 1]} : vector<8x256xf32> to vector<1x256xf32>
    %306 = vector.broadcast %305 : vector<1x256xf32> to vector<8x256xf32>
    %307 = arith.mulf %304, %306 : vector<8x256xf32>
    %308 = arith.addf %302, %307 : vector<8x256xf32>
    %309 = vector.extract_strided_slice %295 {offsets = [2, 0, 0], sizes = [1, 8, 256], strides = [1, 1, 1]} : vector<8x8x256xf32> to vector<1x8x256xf32>
    %310 = vector.shape_cast %309 : vector<1x8x256xf32> to vector<8x256xf32>
    %311 = vector.extract_strided_slice %0 {offsets = [2, 0], sizes = [1, 256], strides = [1, 1]} : vector<8x256xf32> to vector<1x256xf32>
    %312 = vector.broadcast %311 : vector<1x256xf32> to vector<8x256xf32>
    %313 = arith.mulf %310, %312 : vector<8x256xf32>
    %314 = arith.addf %308, %313 : vector<8x256xf32>
    %315 = vector.extract_strided_slice %295 {offsets = [3, 0, 0], sizes = [1, 8, 256], strides = [1, 1, 1]} : vector<8x8x256xf32> to vector<1x8x256xf32>
    %316 = vector.shape_cast %315 : vector<1x8x256xf32> to vector<8x256xf32>
    %317 = vector.extract_strided_slice %0 {offsets = [3, 0], sizes = [1, 256], strides = [1, 1]} : vector<8x256xf32> to vector<1x256xf32>
    %318 = vector.broadcast %317 : vector<1x256xf32> to vector<8x256xf32>
    %319 = arith.mulf %316, %318 : vector<8x256xf32>
    %320 = arith.addf %314, %319 : vector<8x256xf32>
    %321 = vector.extract_strided_slice %295 {offsets = [4, 0, 0], sizes = [1, 8, 256], strides = [1, 1, 1]} : vector<8x8x256xf32> to vector<1x8x256xf32>
    %322 = vector.shape_cast %321 : vector<1x8x256xf32> to vector<8x256xf32>
    %323 = vector.extract_strided_slice %0 {offsets = [4, 0], sizes = [1, 256], strides = [1, 1]} : vector<8x256xf32> to vector<1x256xf32>
    %324 = vector.broadcast %323 : vector<1x256xf32> to vector<8x256xf32>
    %325 = arith.mulf %322, %324 : vector<8x256xf32>
    %326 = arith.addf %320, %325 : vector<8x256xf32>
    %327 = vector.extract_strided_slice %295 {offsets = [5, 0, 0], sizes = [1, 8, 256], strides = [1, 1, 1]} : vector<8x8x256xf32> to vector<1x8x256xf32>
    %328 = vector.shape_cast %327 : vector<1x8x256xf32> to vector<8x256xf32>
    %329 = vector.extract_strided_slice %0 {offsets = [5, 0], sizes = [1, 256], strides = [1, 1]} : vector<8x256xf32> to vector<1x256xf32>
    %330 = vector.broadcast %329 : vector<1x256xf32> to vector<8x256xf32>
    %331 = arith.mulf %328, %330 : vector<8x256xf32>
    %332 = arith.addf %326, %331 : vector<8x256xf32>
    %333 = vector.extract_strided_slice %295 {offsets = [6, 0, 0], sizes = [1, 8, 256], strides = [1, 1, 1]} : vector<8x8x256xf32> to vector<1x8x256xf32>
    %334 = vector.shape_cast %333 : vector<1x8x256xf32> to vector<8x256xf32>
    %335 = vector.extract_strided_slice %0 {offsets = [6, 0], sizes = [1, 256], strides = [1, 1]} : vector<8x256xf32> to vector<1x256xf32>
    %336 = vector.broadcast %335 : vector<1x256xf32> to vector<8x256xf32>
    %337 = arith.mulf %334, %336 : vector<8x256xf32>
    %338 = arith.addf %332, %337 : vector<8x256xf32>
    %339 = vector.extract_strided_slice %295 {offsets = [7, 0, 0], sizes = [1, 8, 256], strides = [1, 1, 1]} : vector<8x8x256xf32> to vector<1x8x256xf32>
    %340 = vector.shape_cast %339 : vector<1x8x256xf32> to vector<8x256xf32>
    %341 = vector.extract_strided_slice %0 {offsets = [7, 0], sizes = [1, 256], strides = [1, 1]} : vector<8x256xf32> to vector<1x256xf32>
    %342 = vector.broadcast %341 : vector<1x256xf32> to vector<8x256xf32>
    %343 = arith.mulf %340, %342 : vector<8x256xf32>
    %344 = arith.addf %338, %343 : vector<8x256xf32>
    %c1_i32 = arith.constant 1 : i32
    %345 = arith.addf %344, %292 : vector<8x256xf32>
    %346 = vector.extract_strided_slice %295 {offsets = [0, 0, 0], sizes = [1, 8, 256], strides = [1, 1, 1]} : vector<8x8x256xf32> to vector<1x8x256xf32>
    %347 = vector.shape_cast %346 : vector<1x8x256xf32> to vector<8x256xf32>
    %348 = vector.extract_strided_slice %344 {offsets = [0, 0], sizes = [1, 256], strides = [1, 1]} : vector<8x256xf32> to vector<1x256xf32>
    %349 = vector.broadcast %348 : vector<1x256xf32> to vector<8x256xf32>
    %350 = arith.mulf %347, %349 : vector<8x256xf32>
    %351 = arith.addf %345, %350 : vector<8x256xf32>
    %352 = vector.extract_strided_slice %295 {offsets = [1, 0, 0], sizes = [1, 8, 256], strides = [1, 1, 1]} : vector<8x8x256xf32> to vector<1x8x256xf32>
    %353 = vector.shape_cast %352 : vector<1x8x256xf32> to vector<8x256xf32>
    %354 = vector.extract_strided_slice %344 {offsets = [1, 0], sizes = [1, 256], strides = [1, 1]} : vector<8x256xf32> to vector<1x256xf32>
    %355 = vector.broadcast %354 : vector<1x256xf32> to vector<8x256xf32>
    %356 = arith.mulf %353, %355 : vector<8x256xf32>
    %357 = arith.addf %351, %356 : vector<8x256xf32>
    %358 = vector.extract_strided_slice %295 {offsets = [2, 0, 0], sizes = [1, 8, 256], strides = [1, 1, 1]} : vector<8x8x256xf32> to vector<1x8x256xf32>
    %359 = vector.shape_cast %358 : vector<1x8x256xf32> to vector<8x256xf32>
    %360 = vector.extract_strided_slice %344 {offsets = [2, 0], sizes = [1, 256], strides = [1, 1]} : vector<8x256xf32> to vector<1x256xf32>
    %361 = vector.broadcast %360 : vector<1x256xf32> to vector<8x256xf32>
    %362 = arith.mulf %359, %361 : vector<8x256xf32>
    %363 = arith.addf %357, %362 : vector<8x256xf32>
    %364 = vector.extract_strided_slice %295 {offsets = [3, 0, 0], sizes = [1, 8, 256], strides = [1, 1, 1]} : vector<8x8x256xf32> to vector<1x8x256xf32>
    %365 = vector.shape_cast %364 : vector<1x8x256xf32> to vector<8x256xf32>
    %366 = vector.extract_strided_slice %344 {offsets = [3, 0], sizes = [1, 256], strides = [1, 1]} : vector<8x256xf32> to vector<1x256xf32>
    %367 = vector.broadcast %366 : vector<1x256xf32> to vector<8x256xf32>
    %368 = arith.mulf %365, %367 : vector<8x256xf32>
    %369 = arith.addf %363, %368 : vector<8x256xf32>
    %370 = vector.extract_strided_slice %295 {offsets = [4, 0, 0], sizes = [1, 8, 256], strides = [1, 1, 1]} : vector<8x8x256xf32> to vector<1x8x256xf32>
    %371 = vector.shape_cast %370 : vector<1x8x256xf32> to vector<8x256xf32>
    %372 = vector.extract_strided_slice %344 {offsets = [4, 0], sizes = [1, 256], strides = [1, 1]} : vector<8x256xf32> to vector<1x256xf32>
    %373 = vector.broadcast %372 : vector<1x256xf32> to vector<8x256xf32>
    %374 = arith.mulf %371, %373 : vector<8x256xf32>
    %375 = arith.addf %369, %374 : vector<8x256xf32>
    %376 = vector.extract_strided_slice %295 {offsets = [5, 0, 0], sizes = [1, 8, 256], strides = [1, 1, 1]} : vector<8x8x256xf32> to vector<1x8x256xf32>
    %377 = vector.shape_cast %376 : vector<1x8x256xf32> to vector<8x256xf32>
    %378 = vector.extract_strided_slice %344 {offsets = [5, 0], sizes = [1, 256], strides = [1, 1]} : vector<8x256xf32> to vector<1x256xf32>
    %379 = vector.broadcast %378 : vector<1x256xf32> to vector<8x256xf32>
    %380 = arith.mulf %377, %379 : vector<8x256xf32>
    %381 = arith.addf %375, %380 : vector<8x256xf32>
    %382 = vector.extract_strided_slice %295 {offsets = [6, 0, 0], sizes = [1, 8, 256], strides = [1, 1, 1]} : vector<8x8x256xf32> to vector<1x8x256xf32>
    %383 = vector.shape_cast %382 : vector<1x8x256xf32> to vector<8x256xf32>
    %384 = vector.extract_strided_slice %344 {offsets = [6, 0], sizes = [1, 256], strides = [1, 1]} : vector<8x256xf32> to vector<1x256xf32>
    %385 = vector.broadcast %384 : vector<1x256xf32> to vector<8x256xf32>
    %386 = arith.mulf %383, %385 : vector<8x256xf32>
    %387 = arith.addf %381, %386 : vector<8x256xf32>
    %388 = vector.extract_strided_slice %295 {offsets = [7, 0, 0], sizes = [1, 8, 256], strides = [1, 1, 1]} : vector<8x8x256xf32> to vector<1x8x256xf32>
    %389 = vector.shape_cast %388 : vector<1x8x256xf32> to vector<8x256xf32>
    %390 = vector.extract_strided_slice %344 {offsets = [7, 0], sizes = [1, 256], strides = [1, 1]} : vector<8x256xf32> to vector<1x256xf32>
    %391 = vector.broadcast %390 : vector<1x256xf32> to vector<8x256xf32>
    %392 = arith.mulf %389, %391 : vector<8x256xf32>
    %393 = arith.addf %387, %392 : vector<8x256xf32>
    %c2_i32 = arith.constant 2 : i32
    %394 = arith.addf %393, %292 : vector<8x256xf32>
    %395 = vector.extract_strided_slice %295 {offsets = [0, 0, 0], sizes = [1, 8, 256], strides = [1, 1, 1]} : vector<8x8x256xf32> to vector<1x8x256xf32>
    %396 = vector.shape_cast %395 : vector<1x8x256xf32> to vector<8x256xf32>
    %397 = vector.extract_strided_slice %393 {offsets = [0, 0], sizes = [1, 256], strides = [1, 1]} : vector<8x256xf32> to vector<1x256xf32>
    %398 = vector.broadcast %397 : vector<1x256xf32> to vector<8x256xf32>
    %399 = arith.mulf %396, %398 : vector<8x256xf32>
    %400 = arith.addf %394, %399 : vector<8x256xf32>
    %401 = vector.extract_strided_slice %295 {offsets = [1, 0, 0], sizes = [1, 8, 256], strides = [1, 1, 1]} : vector<8x8x256xf32> to vector<1x8x256xf32>
    %402 = vector.shape_cast %401 : vector<1x8x256xf32> to vector<8x256xf32>
    %403 = vector.extract_strided_slice %393 {offsets = [1, 0], sizes = [1, 256], strides = [1, 1]} : vector<8x256xf32> to vector<1x256xf32>
    %404 = vector.broadcast %403 : vector<1x256xf32> to vector<8x256xf32>
    %405 = arith.mulf %402, %404 : vector<8x256xf32>
    %406 = arith.addf %400, %405 : vector<8x256xf32>
    %407 = vector.extract_strided_slice %295 {offsets = [2, 0, 0], sizes = [1, 8, 256], strides = [1, 1, 1]} : vector<8x8x256xf32> to vector<1x8x256xf32>
    %408 = vector.shape_cast %407 : vector<1x8x256xf32> to vector<8x256xf32>
    %409 = vector.extract_strided_slice %393 {offsets = [2, 0], sizes = [1, 256], strides = [1, 1]} : vector<8x256xf32> to vector<1x256xf32>
    %410 = vector.broadcast %409 : vector<1x256xf32> to vector<8x256xf32>
    %411 = arith.mulf %408, %410 : vector<8x256xf32>
    %412 = arith.addf %406, %411 : vector<8x256xf32>
    %413 = vector.extract_strided_slice %295 {offsets = [3, 0, 0], sizes = [1, 8, 256], strides = [1, 1, 1]} : vector<8x8x256xf32> to vector<1x8x256xf32>
    %414 = vector.shape_cast %413 : vector<1x8x256xf32> to vector<8x256xf32>
    %415 = vector.extract_strided_slice %393 {offsets = [3, 0], sizes = [1, 256], strides = [1, 1]} : vector<8x256xf32> to vector<1x256xf32>
    %416 = vector.broadcast %415 : vector<1x256xf32> to vector<8x256xf32>
    %417 = arith.mulf %414, %416 : vector<8x256xf32>
    %418 = arith.addf %412, %417 : vector<8x256xf32>
    %419 = vector.extract_strided_slice %295 {offsets = [4, 0, 0], sizes = [1, 8, 256], strides = [1, 1, 1]} : vector<8x8x256xf32> to vector<1x8x256xf32>
    %420 = vector.shape_cast %419 : vector<1x8x256xf32> to vector<8x256xf32>
    %421 = vector.extract_strided_slice %393 {offsets = [4, 0], sizes = [1, 256], strides = [1, 1]} : vector<8x256xf32> to vector<1x256xf32>
    %422 = vector.broadcast %421 : vector<1x256xf32> to vector<8x256xf32>
    %423 = arith.mulf %420, %422 : vector<8x256xf32>
    %424 = arith.addf %418, %423 : vector<8x256xf32>
    %425 = vector.extract_strided_slice %295 {offsets = [5, 0, 0], sizes = [1, 8, 256], strides = [1, 1, 1]} : vector<8x8x256xf32> to vector<1x8x256xf32>
    %426 = vector.shape_cast %425 : vector<1x8x256xf32> to vector<8x256xf32>
    %427 = vector.extract_strided_slice %393 {offsets = [5, 0], sizes = [1, 256], strides = [1, 1]} : vector<8x256xf32> to vector<1x256xf32>
    %428 = vector.broadcast %427 : vector<1x256xf32> to vector<8x256xf32>
    %429 = arith.mulf %426, %428 : vector<8x256xf32>
    %430 = arith.addf %424, %429 : vector<8x256xf32>
    %431 = vector.extract_strided_slice %295 {offsets = [6, 0, 0], sizes = [1, 8, 256], strides = [1, 1, 1]} : vector<8x8x256xf32> to vector<1x8x256xf32>
    %432 = vector.shape_cast %431 : vector<1x8x256xf32> to vector<8x256xf32>
    %433 = vector.extract_strided_slice %393 {offsets = [6, 0], sizes = [1, 256], strides = [1, 1]} : vector<8x256xf32> to vector<1x256xf32>
    %434 = vector.broadcast %433 : vector<1x256xf32> to vector<8x256xf32>
    %435 = arith.mulf %432, %434 : vector<8x256xf32>
    %436 = arith.addf %430, %435 : vector<8x256xf32>
    %437 = vector.extract_strided_slice %295 {offsets = [7, 0, 0], sizes = [1, 8, 256], strides = [1, 1, 1]} : vector<8x8x256xf32> to vector<1x8x256xf32>
    %438 = vector.shape_cast %437 : vector<1x8x256xf32> to vector<8x256xf32>
    %439 = vector.extract_strided_slice %393 {offsets = [7, 0], sizes = [1, 256], strides = [1, 1]} : vector<8x256xf32> to vector<1x256xf32>
    %440 = vector.broadcast %439 : vector<1x256xf32> to vector<8x256xf32>
    %441 = arith.mulf %438, %440 : vector<8x256xf32>
    %442 = arith.addf %436, %441 : vector<8x256xf32>
    %c3_i32 = arith.constant 3 : i32
    %443 = arith.addf %442, %292 : vector<8x256xf32>
    %444 = vector.extract_strided_slice %295 {offsets = [0, 0, 0], sizes = [1, 8, 256], strides = [1, 1, 1]} : vector<8x8x256xf32> to vector<1x8x256xf32>
    %445 = vector.shape_cast %444 : vector<1x8x256xf32> to vector<8x256xf32>
    %446 = vector.extract_strided_slice %442 {offsets = [0, 0], sizes = [1, 256], strides = [1, 1]} : vector<8x256xf32> to vector<1x256xf32>
    %447 = vector.broadcast %446 : vector<1x256xf32> to vector<8x256xf32>
    %448 = arith.mulf %445, %447 : vector<8x256xf32>
    %449 = arith.addf %443, %448 : vector<8x256xf32>
    %450 = vector.extract_strided_slice %295 {offsets = [1, 0, 0], sizes = [1, 8, 256], strides = [1, 1, 1]} : vector<8x8x256xf32> to vector<1x8x256xf32>
    %451 = vector.shape_cast %450 : vector<1x8x256xf32> to vector<8x256xf32>
    %452 = vector.extract_strided_slice %442 {offsets = [1, 0], sizes = [1, 256], strides = [1, 1]} : vector<8x256xf32> to vector<1x256xf32>
    %453 = vector.broadcast %452 : vector<1x256xf32> to vector<8x256xf32>
    %454 = arith.mulf %451, %453 : vector<8x256xf32>
    %455 = arith.addf %449, %454 : vector<8x256xf32>
    %456 = vector.extract_strided_slice %295 {offsets = [2, 0, 0], sizes = [1, 8, 256], strides = [1, 1, 1]} : vector<8x8x256xf32> to vector<1x8x256xf32>
    %457 = vector.shape_cast %456 : vector<1x8x256xf32> to vector<8x256xf32>
    %458 = vector.extract_strided_slice %442 {offsets = [2, 0], sizes = [1, 256], strides = [1, 1]} : vector<8x256xf32> to vector<1x256xf32>
    %459 = vector.broadcast %458 : vector<1x256xf32> to vector<8x256xf32>
    %460 = arith.mulf %457, %459 : vector<8x256xf32>
    %461 = arith.addf %455, %460 : vector<8x256xf32>
    %462 = vector.extract_strided_slice %295 {offsets = [3, 0, 0], sizes = [1, 8, 256], strides = [1, 1, 1]} : vector<8x8x256xf32> to vector<1x8x256xf32>
    %463 = vector.shape_cast %462 : vector<1x8x256xf32> to vector<8x256xf32>
    %464 = vector.extract_strided_slice %442 {offsets = [3, 0], sizes = [1, 256], strides = [1, 1]} : vector<8x256xf32> to vector<1x256xf32>
    %465 = vector.broadcast %464 : vector<1x256xf32> to vector<8x256xf32>
    %466 = arith.mulf %463, %465 : vector<8x256xf32>
    %467 = arith.addf %461, %466 : vector<8x256xf32>
    %468 = vector.extract_strided_slice %295 {offsets = [4, 0, 0], sizes = [1, 8, 256], strides = [1, 1, 1]} : vector<8x8x256xf32> to vector<1x8x256xf32>
    %469 = vector.shape_cast %468 : vector<1x8x256xf32> to vector<8x256xf32>
    %470 = vector.extract_strided_slice %442 {offsets = [4, 0], sizes = [1, 256], strides = [1, 1]} : vector<8x256xf32> to vector<1x256xf32>
    %471 = vector.broadcast %470 : vector<1x256xf32> to vector<8x256xf32>
    %472 = arith.mulf %469, %471 : vector<8x256xf32>
    %473 = arith.addf %467, %472 : vector<8x256xf32>
    %474 = vector.extract_strided_slice %295 {offsets = [5, 0, 0], sizes = [1, 8, 256], strides = [1, 1, 1]} : vector<8x8x256xf32> to vector<1x8x256xf32>
    %475 = vector.shape_cast %474 : vector<1x8x256xf32> to vector<8x256xf32>
    %476 = vector.extract_strided_slice %442 {offsets = [5, 0], sizes = [1, 256], strides = [1, 1]} : vector<8x256xf32> to vector<1x256xf32>
    %477 = vector.broadcast %476 : vector<1x256xf32> to vector<8x256xf32>
    %478 = arith.mulf %475, %477 : vector<8x256xf32>
    %479 = arith.addf %473, %478 : vector<8x256xf32>
    %480 = vector.extract_strided_slice %295 {offsets = [6, 0, 0], sizes = [1, 8, 256], strides = [1, 1, 1]} : vector<8x8x256xf32> to vector<1x8x256xf32>
    %481 = vector.shape_cast %480 : vector<1x8x256xf32> to vector<8x256xf32>
    %482 = vector.extract_strided_slice %442 {offsets = [6, 0], sizes = [1, 256], strides = [1, 1]} : vector<8x256xf32> to vector<1x256xf32>
    %483 = vector.broadcast %482 : vector<1x256xf32> to vector<8x256xf32>
    %484 = arith.mulf %481, %483 : vector<8x256xf32>
    %485 = arith.addf %479, %484 : vector<8x256xf32>
    %486 = vector.extract_strided_slice %295 {offsets = [7, 0, 0], sizes = [1, 8, 256], strides = [1, 1, 1]} : vector<8x8x256xf32> to vector<1x8x256xf32>
    %487 = vector.shape_cast %486 : vector<1x8x256xf32> to vector<8x256xf32>
    %488 = vector.extract_strided_slice %442 {offsets = [7, 0], sizes = [1, 256], strides = [1, 1]} : vector<8x256xf32> to vector<1x256xf32>
    %489 = vector.broadcast %488 : vector<1x256xf32> to vector<8x256xf32>
    %490 = arith.mulf %487, %489 : vector<8x256xf32>
    %491 = arith.addf %485, %490 : vector<8x256xf32>
    %c4_i32 = arith.constant 4 : i32
    %492 = arith.addf %491, %292 : vector<8x256xf32>
    %493 = vector.extract_strided_slice %295 {offsets = [0, 0, 0], sizes = [1, 8, 256], strides = [1, 1, 1]} : vector<8x8x256xf32> to vector<1x8x256xf32>
    %494 = vector.shape_cast %493 : vector<1x8x256xf32> to vector<8x256xf32>
    %495 = vector.extract_strided_slice %491 {offsets = [0, 0], sizes = [1, 256], strides = [1, 1]} : vector<8x256xf32> to vector<1x256xf32>
    %496 = vector.broadcast %495 : vector<1x256xf32> to vector<8x256xf32>
    %497 = arith.mulf %494, %496 : vector<8x256xf32>
    %498 = arith.addf %492, %497 : vector<8x256xf32>
    %499 = vector.extract_strided_slice %295 {offsets = [1, 0, 0], sizes = [1, 8, 256], strides = [1, 1, 1]} : vector<8x8x256xf32> to vector<1x8x256xf32>
    %500 = vector.shape_cast %499 : vector<1x8x256xf32> to vector<8x256xf32>
    %501 = vector.extract_strided_slice %491 {offsets = [1, 0], sizes = [1, 256], strides = [1, 1]} : vector<8x256xf32> to vector<1x256xf32>
    %502 = vector.broadcast %501 : vector<1x256xf32> to vector<8x256xf32>
    %503 = arith.mulf %500, %502 : vector<8x256xf32>
    %504 = arith.addf %498, %503 : vector<8x256xf32>
    %505 = vector.extract_strided_slice %295 {offsets = [2, 0, 0], sizes = [1, 8, 256], strides = [1, 1, 1]} : vector<8x8x256xf32> to vector<1x8x256xf32>
    %506 = vector.shape_cast %505 : vector<1x8x256xf32> to vector<8x256xf32>
    %507 = vector.extract_strided_slice %491 {offsets = [2, 0], sizes = [1, 256], strides = [1, 1]} : vector<8x256xf32> to vector<1x256xf32>
    %508 = vector.broadcast %507 : vector<1x256xf32> to vector<8x256xf32>
    %509 = arith.mulf %506, %508 : vector<8x256xf32>
    %510 = arith.addf %504, %509 : vector<8x256xf32>
    %511 = vector.extract_strided_slice %295 {offsets = [3, 0, 0], sizes = [1, 8, 256], strides = [1, 1, 1]} : vector<8x8x256xf32> to vector<1x8x256xf32>
    %512 = vector.shape_cast %511 : vector<1x8x256xf32> to vector<8x256xf32>
    %513 = vector.extract_strided_slice %491 {offsets = [3, 0], sizes = [1, 256], strides = [1, 1]} : vector<8x256xf32> to vector<1x256xf32>
    %514 = vector.broadcast %513 : vector<1x256xf32> to vector<8x256xf32>
    %515 = arith.mulf %512, %514 : vector<8x256xf32>
    %516 = arith.addf %510, %515 : vector<8x256xf32>
    %517 = vector.extract_strided_slice %295 {offsets = [4, 0, 0], sizes = [1, 8, 256], strides = [1, 1, 1]} : vector<8x8x256xf32> to vector<1x8x256xf32>
    %518 = vector.shape_cast %517 : vector<1x8x256xf32> to vector<8x256xf32>
    %519 = vector.extract_strided_slice %491 {offsets = [4, 0], sizes = [1, 256], strides = [1, 1]} : vector<8x256xf32> to vector<1x256xf32>
    %520 = vector.broadcast %519 : vector<1x256xf32> to vector<8x256xf32>
    %521 = arith.mulf %518, %520 : vector<8x256xf32>
    %522 = arith.addf %516, %521 : vector<8x256xf32>
    %523 = vector.extract_strided_slice %295 {offsets = [5, 0, 0], sizes = [1, 8, 256], strides = [1, 1, 1]} : vector<8x8x256xf32> to vector<1x8x256xf32>
    %524 = vector.shape_cast %523 : vector<1x8x256xf32> to vector<8x256xf32>
    %525 = vector.extract_strided_slice %491 {offsets = [5, 0], sizes = [1, 256], strides = [1, 1]} : vector<8x256xf32> to vector<1x256xf32>
    %526 = vector.broadcast %525 : vector<1x256xf32> to vector<8x256xf32>
    %527 = arith.mulf %524, %526 : vector<8x256xf32>
    %528 = arith.addf %522, %527 : vector<8x256xf32>
    %529 = vector.extract_strided_slice %295 {offsets = [6, 0, 0], sizes = [1, 8, 256], strides = [1, 1, 1]} : vector<8x8x256xf32> to vector<1x8x256xf32>
    %530 = vector.shape_cast %529 : vector<1x8x256xf32> to vector<8x256xf32>
    %531 = vector.extract_strided_slice %491 {offsets = [6, 0], sizes = [1, 256], strides = [1, 1]} : vector<8x256xf32> to vector<1x256xf32>
    %532 = vector.broadcast %531 : vector<1x256xf32> to vector<8x256xf32>
    %533 = arith.mulf %530, %532 : vector<8x256xf32>
    %534 = arith.addf %528, %533 : vector<8x256xf32>
    %535 = vector.extract_strided_slice %295 {offsets = [7, 0, 0], sizes = [1, 8, 256], strides = [1, 1, 1]} : vector<8x8x256xf32> to vector<1x8x256xf32>
    %536 = vector.shape_cast %535 : vector<1x8x256xf32> to vector<8x256xf32>
    %537 = vector.extract_strided_slice %491 {offsets = [7, 0], sizes = [1, 256], strides = [1, 1]} : vector<8x256xf32> to vector<1x256xf32>
    %538 = vector.broadcast %537 : vector<1x256xf32> to vector<8x256xf32>
    %539 = arith.mulf %536, %538 : vector<8x256xf32>
    %540 = arith.addf %534, %539 : vector<8x256xf32>
    %c5_i32 = arith.constant 5 : i32
    %541 = arith.addf %540, %292 : vector<8x256xf32>
    %542 = vector.extract_strided_slice %295 {offsets = [0, 0, 0], sizes = [1, 8, 256], strides = [1, 1, 1]} : vector<8x8x256xf32> to vector<1x8x256xf32>
    %543 = vector.shape_cast %542 : vector<1x8x256xf32> to vector<8x256xf32>
    %544 = vector.extract_strided_slice %540 {offsets = [0, 0], sizes = [1, 256], strides = [1, 1]} : vector<8x256xf32> to vector<1x256xf32>
    %545 = vector.broadcast %544 : vector<1x256xf32> to vector<8x256xf32>
    %546 = arith.mulf %543, %545 : vector<8x256xf32>
    %547 = arith.addf %541, %546 : vector<8x256xf32>
    %548 = vector.extract_strided_slice %295 {offsets = [1, 0, 0], sizes = [1, 8, 256], strides = [1, 1, 1]} : vector<8x8x256xf32> to vector<1x8x256xf32>
    %549 = vector.shape_cast %548 : vector<1x8x256xf32> to vector<8x256xf32>
    %550 = vector.extract_strided_slice %540 {offsets = [1, 0], sizes = [1, 256], strides = [1, 1]} : vector<8x256xf32> to vector<1x256xf32>
    %551 = vector.broadcast %550 : vector<1x256xf32> to vector<8x256xf32>
    %552 = arith.mulf %549, %551 : vector<8x256xf32>
    %553 = arith.addf %547, %552 : vector<8x256xf32>
    %554 = vector.extract_strided_slice %295 {offsets = [2, 0, 0], sizes = [1, 8, 256], strides = [1, 1, 1]} : vector<8x8x256xf32> to vector<1x8x256xf32>
    %555 = vector.shape_cast %554 : vector<1x8x256xf32> to vector<8x256xf32>
    %556 = vector.extract_strided_slice %540 {offsets = [2, 0], sizes = [1, 256], strides = [1, 1]} : vector<8x256xf32> to vector<1x256xf32>
    %557 = vector.broadcast %556 : vector<1x256xf32> to vector<8x256xf32>
    %558 = arith.mulf %555, %557 : vector<8x256xf32>
    %559 = arith.addf %553, %558 : vector<8x256xf32>
    %560 = vector.extract_strided_slice %295 {offsets = [3, 0, 0], sizes = [1, 8, 256], strides = [1, 1, 1]} : vector<8x8x256xf32> to vector<1x8x256xf32>
    %561 = vector.shape_cast %560 : vector<1x8x256xf32> to vector<8x256xf32>
    %562 = vector.extract_strided_slice %540 {offsets = [3, 0], sizes = [1, 256], strides = [1, 1]} : vector<8x256xf32> to vector<1x256xf32>
    %563 = vector.broadcast %562 : vector<1x256xf32> to vector<8x256xf32>
    %564 = arith.mulf %561, %563 : vector<8x256xf32>
    %565 = arith.addf %559, %564 : vector<8x256xf32>
    %566 = vector.extract_strided_slice %295 {offsets = [4, 0, 0], sizes = [1, 8, 256], strides = [1, 1, 1]} : vector<8x8x256xf32> to vector<1x8x256xf32>
    %567 = vector.shape_cast %566 : vector<1x8x256xf32> to vector<8x256xf32>
    %568 = vector.extract_strided_slice %540 {offsets = [4, 0], sizes = [1, 256], strides = [1, 1]} : vector<8x256xf32> to vector<1x256xf32>
    %569 = vector.broadcast %568 : vector<1x256xf32> to vector<8x256xf32>
    %570 = arith.mulf %567, %569 : vector<8x256xf32>
    %571 = arith.addf %565, %570 : vector<8x256xf32>
    %572 = vector.extract_strided_slice %295 {offsets = [5, 0, 0], sizes = [1, 8, 256], strides = [1, 1, 1]} : vector<8x8x256xf32> to vector<1x8x256xf32>
    %573 = vector.shape_cast %572 : vector<1x8x256xf32> to vector<8x256xf32>
    %574 = vector.extract_strided_slice %540 {offsets = [5, 0], sizes = [1, 256], strides = [1, 1]} : vector<8x256xf32> to vector<1x256xf32>
    %575 = vector.broadcast %574 : vector<1x256xf32> to vector<8x256xf32>
    %576 = arith.mulf %573, %575 : vector<8x256xf32>
    %577 = arith.addf %571, %576 : vector<8x256xf32>
    %578 = vector.extract_strided_slice %295 {offsets = [6, 0, 0], sizes = [1, 8, 256], strides = [1, 1, 1]} : vector<8x8x256xf32> to vector<1x8x256xf32>
    %579 = vector.shape_cast %578 : vector<1x8x256xf32> to vector<8x256xf32>
    %580 = vector.extract_strided_slice %540 {offsets = [6, 0], sizes = [1, 256], strides = [1, 1]} : vector<8x256xf32> to vector<1x256xf32>
    %581 = vector.broadcast %580 : vector<1x256xf32> to vector<8x256xf32>
    %582 = arith.mulf %579, %581 : vector<8x256xf32>
    %583 = arith.addf %577, %582 : vector<8x256xf32>
    %584 = vector.extract_strided_slice %295 {offsets = [7, 0, 0], sizes = [1, 8, 256], strides = [1, 1, 1]} : vector<8x8x256xf32> to vector<1x8x256xf32>
    %585 = vector.shape_cast %584 : vector<1x8x256xf32> to vector<8x256xf32>
    %586 = vector.extract_strided_slice %540 {offsets = [7, 0], sizes = [1, 256], strides = [1, 1]} : vector<8x256xf32> to vector<1x256xf32>
    %587 = vector.broadcast %586 : vector<1x256xf32> to vector<8x256xf32>
    %588 = arith.mulf %585, %587 : vector<8x256xf32>
    %589 = arith.addf %583, %588 : vector<8x256xf32>
    %c6_i32 = arith.constant 6 : i32
    %590 = arith.addf %589, %292 : vector<8x256xf32>
    %591 = vector.extract_strided_slice %295 {offsets = [0, 0, 0], sizes = [1, 8, 256], strides = [1, 1, 1]} : vector<8x8x256xf32> to vector<1x8x256xf32>
    %592 = vector.shape_cast %591 : vector<1x8x256xf32> to vector<8x256xf32>
    %593 = vector.extract_strided_slice %589 {offsets = [0, 0], sizes = [1, 256], strides = [1, 1]} : vector<8x256xf32> to vector<1x256xf32>
    %594 = vector.broadcast %593 : vector<1x256xf32> to vector<8x256xf32>
    %595 = arith.mulf %592, %594 : vector<8x256xf32>
    %596 = arith.addf %590, %595 : vector<8x256xf32>
    %597 = vector.extract_strided_slice %295 {offsets = [1, 0, 0], sizes = [1, 8, 256], strides = [1, 1, 1]} : vector<8x8x256xf32> to vector<1x8x256xf32>
    %598 = vector.shape_cast %597 : vector<1x8x256xf32> to vector<8x256xf32>
    %599 = vector.extract_strided_slice %589 {offsets = [1, 0], sizes = [1, 256], strides = [1, 1]} : vector<8x256xf32> to vector<1x256xf32>
    %600 = vector.broadcast %599 : vector<1x256xf32> to vector<8x256xf32>
    %601 = arith.mulf %598, %600 : vector<8x256xf32>
    %602 = arith.addf %596, %601 : vector<8x256xf32>
    %603 = vector.extract_strided_slice %295 {offsets = [2, 0, 0], sizes = [1, 8, 256], strides = [1, 1, 1]} : vector<8x8x256xf32> to vector<1x8x256xf32>
    %604 = vector.shape_cast %603 : vector<1x8x256xf32> to vector<8x256xf32>
    %605 = vector.extract_strided_slice %589 {offsets = [2, 0], sizes = [1, 256], strides = [1, 1]} : vector<8x256xf32> to vector<1x256xf32>
    %606 = vector.broadcast %605 : vector<1x256xf32> to vector<8x256xf32>
    %607 = arith.mulf %604, %606 : vector<8x256xf32>
    %608 = arith.addf %602, %607 : vector<8x256xf32>
    %609 = vector.extract_strided_slice %295 {offsets = [3, 0, 0], sizes = [1, 8, 256], strides = [1, 1, 1]} : vector<8x8x256xf32> to vector<1x8x256xf32>
    %610 = vector.shape_cast %609 : vector<1x8x256xf32> to vector<8x256xf32>
    %611 = vector.extract_strided_slice %589 {offsets = [3, 0], sizes = [1, 256], strides = [1, 1]} : vector<8x256xf32> to vector<1x256xf32>
    %612 = vector.broadcast %611 : vector<1x256xf32> to vector<8x256xf32>
    %613 = arith.mulf %610, %612 : vector<8x256xf32>
    %614 = arith.addf %608, %613 : vector<8x256xf32>
    %615 = vector.extract_strided_slice %295 {offsets = [4, 0, 0], sizes = [1, 8, 256], strides = [1, 1, 1]} : vector<8x8x256xf32> to vector<1x8x256xf32>
    %616 = vector.shape_cast %615 : vector<1x8x256xf32> to vector<8x256xf32>
    %617 = vector.extract_strided_slice %589 {offsets = [4, 0], sizes = [1, 256], strides = [1, 1]} : vector<8x256xf32> to vector<1x256xf32>
    %618 = vector.broadcast %617 : vector<1x256xf32> to vector<8x256xf32>
    %619 = arith.mulf %616, %618 : vector<8x256xf32>
    %620 = arith.addf %614, %619 : vector<8x256xf32>
    %621 = vector.extract_strided_slice %295 {offsets = [5, 0, 0], sizes = [1, 8, 256], strides = [1, 1, 1]} : vector<8x8x256xf32> to vector<1x8x256xf32>
    %622 = vector.shape_cast %621 : vector<1x8x256xf32> to vector<8x256xf32>
    %623 = vector.extract_strided_slice %589 {offsets = [5, 0], sizes = [1, 256], strides = [1, 1]} : vector<8x256xf32> to vector<1x256xf32>
    %624 = vector.broadcast %623 : vector<1x256xf32> to vector<8x256xf32>
    %625 = arith.mulf %622, %624 : vector<8x256xf32>
    %626 = arith.addf %620, %625 : vector<8x256xf32>
    %627 = vector.extract_strided_slice %295 {offsets = [6, 0, 0], sizes = [1, 8, 256], strides = [1, 1, 1]} : vector<8x8x256xf32> to vector<1x8x256xf32>
    %628 = vector.shape_cast %627 : vector<1x8x256xf32> to vector<8x256xf32>
    %629 = vector.extract_strided_slice %589 {offsets = [6, 0], sizes = [1, 256], strides = [1, 1]} : vector<8x256xf32> to vector<1x256xf32>
    %630 = vector.broadcast %629 : vector<1x256xf32> to vector<8x256xf32>
    %631 = arith.mulf %628, %630 : vector<8x256xf32>
    %632 = arith.addf %626, %631 : vector<8x256xf32>
    %633 = vector.extract_strided_slice %295 {offsets = [7, 0, 0], sizes = [1, 8, 256], strides = [1, 1, 1]} : vector<8x8x256xf32> to vector<1x8x256xf32>
    %634 = vector.shape_cast %633 : vector<1x8x256xf32> to vector<8x256xf32>
    %635 = vector.extract_strided_slice %589 {offsets = [7, 0], sizes = [1, 256], strides = [1, 1]} : vector<8x256xf32> to vector<1x256xf32>
    %636 = vector.broadcast %635 : vector<1x256xf32> to vector<8x256xf32>
    %637 = arith.mulf %634, %636 : vector<8x256xf32>
    %638 = arith.addf %632, %637 : vector<8x256xf32>
    %c7_i32 = arith.constant 7 : i32
    %639 = arith.addf %638, %292 : vector<8x256xf32>
    %640 = vector.extract_strided_slice %295 {offsets = [0, 0, 0], sizes = [1, 8, 256], strides = [1, 1, 1]} : vector<8x8x256xf32> to vector<1x8x256xf32>
    %641 = vector.shape_cast %640 : vector<1x8x256xf32> to vector<8x256xf32>
    %642 = vector.extract_strided_slice %638 {offsets = [0, 0], sizes = [1, 256], strides = [1, 1]} : vector<8x256xf32> to vector<1x256xf32>
    %643 = vector.broadcast %642 : vector<1x256xf32> to vector<8x256xf32>
    %644 = arith.mulf %641, %643 : vector<8x256xf32>
    %645 = arith.addf %639, %644 : vector<8x256xf32>
    %646 = vector.extract_strided_slice %295 {offsets = [1, 0, 0], sizes = [1, 8, 256], strides = [1, 1, 1]} : vector<8x8x256xf32> to vector<1x8x256xf32>
    %647 = vector.shape_cast %646 : vector<1x8x256xf32> to vector<8x256xf32>
    %648 = vector.extract_strided_slice %638 {offsets = [1, 0], sizes = [1, 256], strides = [1, 1]} : vector<8x256xf32> to vector<1x256xf32>
    %649 = vector.broadcast %648 : vector<1x256xf32> to vector<8x256xf32>
    %650 = arith.mulf %647, %649 : vector<8x256xf32>
    %651 = arith.addf %645, %650 : vector<8x256xf32>
    %652 = vector.extract_strided_slice %295 {offsets = [2, 0, 0], sizes = [1, 8, 256], strides = [1, 1, 1]} : vector<8x8x256xf32> to vector<1x8x256xf32>
    %653 = vector.shape_cast %652 : vector<1x8x256xf32> to vector<8x256xf32>
    %654 = vector.extract_strided_slice %638 {offsets = [2, 0], sizes = [1, 256], strides = [1, 1]} : vector<8x256xf32> to vector<1x256xf32>
    %655 = vector.broadcast %654 : vector<1x256xf32> to vector<8x256xf32>
    %656 = arith.mulf %653, %655 : vector<8x256xf32>
    %657 = arith.addf %651, %656 : vector<8x256xf32>
    %658 = vector.extract_strided_slice %295 {offsets = [3, 0, 0], sizes = [1, 8, 256], strides = [1, 1, 1]} : vector<8x8x256xf32> to vector<1x8x256xf32>
    %659 = vector.shape_cast %658 : vector<1x8x256xf32> to vector<8x256xf32>
    %660 = vector.extract_strided_slice %638 {offsets = [3, 0], sizes = [1, 256], strides = [1, 1]} : vector<8x256xf32> to vector<1x256xf32>
    %661 = vector.broadcast %660 : vector<1x256xf32> to vector<8x256xf32>
    %662 = arith.mulf %659, %661 : vector<8x256xf32>
    %663 = arith.addf %657, %662 : vector<8x256xf32>
    %664 = vector.extract_strided_slice %295 {offsets = [4, 0, 0], sizes = [1, 8, 256], strides = [1, 1, 1]} : vector<8x8x256xf32> to vector<1x8x256xf32>
    %665 = vector.shape_cast %664 : vector<1x8x256xf32> to vector<8x256xf32>
    %666 = vector.extract_strided_slice %638 {offsets = [4, 0], sizes = [1, 256], strides = [1, 1]} : vector<8x256xf32> to vector<1x256xf32>
    %667 = vector.broadcast %666 : vector<1x256xf32> to vector<8x256xf32>
    %668 = arith.mulf %665, %667 : vector<8x256xf32>
    %669 = arith.addf %663, %668 : vector<8x256xf32>
    %670 = vector.extract_strided_slice %295 {offsets = [5, 0, 0], sizes = [1, 8, 256], strides = [1, 1, 1]} : vector<8x8x256xf32> to vector<1x8x256xf32>
    %671 = vector.shape_cast %670 : vector<1x8x256xf32> to vector<8x256xf32>
    %672 = vector.extract_strided_slice %638 {offsets = [5, 0], sizes = [1, 256], strides = [1, 1]} : vector<8x256xf32> to vector<1x256xf32>
    %673 = vector.broadcast %672 : vector<1x256xf32> to vector<8x256xf32>
    %674 = arith.mulf %671, %673 : vector<8x256xf32>
    %675 = arith.addf %669, %674 : vector<8x256xf32>
    %676 = vector.extract_strided_slice %295 {offsets = [6, 0, 0], sizes = [1, 8, 256], strides = [1, 1, 1]} : vector<8x8x256xf32> to vector<1x8x256xf32>
    %677 = vector.shape_cast %676 : vector<1x8x256xf32> to vector<8x256xf32>
    %678 = vector.extract_strided_slice %638 {offsets = [6, 0], sizes = [1, 256], strides = [1, 1]} : vector<8x256xf32> to vector<1x256xf32>
    %679 = vector.broadcast %678 : vector<1x256xf32> to vector<8x256xf32>
    %680 = arith.mulf %677, %679 : vector<8x256xf32>
    %681 = arith.addf %675, %680 : vector<8x256xf32>
    %682 = vector.extract_strided_slice %295 {offsets = [7, 0, 0], sizes = [1, 8, 256], strides = [1, 1, 1]} : vector<8x8x256xf32> to vector<1x8x256xf32>
    %683 = vector.shape_cast %682 : vector<1x8x256xf32> to vector<8x256xf32>
    %684 = vector.extract_strided_slice %638 {offsets = [7, 0], sizes = [1, 256], strides = [1, 1]} : vector<8x256xf32> to vector<1x256xf32>
    %685 = vector.broadcast %684 : vector<1x256xf32> to vector<8x256xf32>
    %686 = arith.mulf %683, %685 : vector<8x256xf32>
    %687 = arith.addf %681, %686 : vector<8x256xf32>
    %c8_i32 = arith.constant 8 : i32
    %688 = arith.addf %687, %292 : vector<8x256xf32>
    %689 = vector.extract_strided_slice %295 {offsets = [0, 0, 0], sizes = [1, 8, 256], strides = [1, 1, 1]} : vector<8x8x256xf32> to vector<1x8x256xf32>
    %690 = vector.shape_cast %689 : vector<1x8x256xf32> to vector<8x256xf32>
    %691 = vector.extract_strided_slice %687 {offsets = [0, 0], sizes = [1, 256], strides = [1, 1]} : vector<8x256xf32> to vector<1x256xf32>
    %692 = vector.broadcast %691 : vector<1x256xf32> to vector<8x256xf32>
    %693 = arith.mulf %690, %692 : vector<8x256xf32>
    %694 = arith.addf %688, %693 : vector<8x256xf32>
    %695 = vector.extract_strided_slice %295 {offsets = [1, 0, 0], sizes = [1, 8, 256], strides = [1, 1, 1]} : vector<8x8x256xf32> to vector<1x8x256xf32>
    %696 = vector.shape_cast %695 : vector<1x8x256xf32> to vector<8x256xf32>
    %697 = vector.extract_strided_slice %687 {offsets = [1, 0], sizes = [1, 256], strides = [1, 1]} : vector<8x256xf32> to vector<1x256xf32>
    %698 = vector.broadcast %697 : vector<1x256xf32> to vector<8x256xf32>
    %699 = arith.mulf %696, %698 : vector<8x256xf32>
    %700 = arith.addf %694, %699 : vector<8x256xf32>
    %701 = vector.extract_strided_slice %295 {offsets = [2, 0, 0], sizes = [1, 8, 256], strides = [1, 1, 1]} : vector<8x8x256xf32> to vector<1x8x256xf32>
    %702 = vector.shape_cast %701 : vector<1x8x256xf32> to vector<8x256xf32>
    %703 = vector.extract_strided_slice %687 {offsets = [2, 0], sizes = [1, 256], strides = [1, 1]} : vector<8x256xf32> to vector<1x256xf32>
    %704 = vector.broadcast %703 : vector<1x256xf32> to vector<8x256xf32>
    %705 = arith.mulf %702, %704 : vector<8x256xf32>
    %706 = arith.addf %700, %705 : vector<8x256xf32>
    %707 = vector.extract_strided_slice %295 {offsets = [3, 0, 0], sizes = [1, 8, 256], strides = [1, 1, 1]} : vector<8x8x256xf32> to vector<1x8x256xf32>
    %708 = vector.shape_cast %707 : vector<1x8x256xf32> to vector<8x256xf32>
    %709 = vector.extract_strided_slice %687 {offsets = [3, 0], sizes = [1, 256], strides = [1, 1]} : vector<8x256xf32> to vector<1x256xf32>
    %710 = vector.broadcast %709 : vector<1x256xf32> to vector<8x256xf32>
    %711 = arith.mulf %708, %710 : vector<8x256xf32>
    %712 = arith.addf %706, %711 : vector<8x256xf32>
    %713 = vector.extract_strided_slice %295 {offsets = [4, 0, 0], sizes = [1, 8, 256], strides = [1, 1, 1]} : vector<8x8x256xf32> to vector<1x8x256xf32>
    %714 = vector.shape_cast %713 : vector<1x8x256xf32> to vector<8x256xf32>
    %715 = vector.extract_strided_slice %687 {offsets = [4, 0], sizes = [1, 256], strides = [1, 1]} : vector<8x256xf32> to vector<1x256xf32>
    %716 = vector.broadcast %715 : vector<1x256xf32> to vector<8x256xf32>
    %717 = arith.mulf %714, %716 : vector<8x256xf32>
    %718 = arith.addf %712, %717 : vector<8x256xf32>
    %719 = vector.extract_strided_slice %295 {offsets = [5, 0, 0], sizes = [1, 8, 256], strides = [1, 1, 1]} : vector<8x8x256xf32> to vector<1x8x256xf32>
    %720 = vector.shape_cast %719 : vector<1x8x256xf32> to vector<8x256xf32>
    %721 = vector.extract_strided_slice %687 {offsets = [5, 0], sizes = [1, 256], strides = [1, 1]} : vector<8x256xf32> to vector<1x256xf32>
    %722 = vector.broadcast %721 : vector<1x256xf32> to vector<8x256xf32>
    %723 = arith.mulf %720, %722 : vector<8x256xf32>
    %724 = arith.addf %718, %723 : vector<8x256xf32>
    %725 = vector.extract_strided_slice %295 {offsets = [6, 0, 0], sizes = [1, 8, 256], strides = [1, 1, 1]} : vector<8x8x256xf32> to vector<1x8x256xf32>
    %726 = vector.shape_cast %725 : vector<1x8x256xf32> to vector<8x256xf32>
    %727 = vector.extract_strided_slice %687 {offsets = [6, 0], sizes = [1, 256], strides = [1, 1]} : vector<8x256xf32> to vector<1x256xf32>
    %728 = vector.broadcast %727 : vector<1x256xf32> to vector<8x256xf32>
    %729 = arith.mulf %726, %728 : vector<8x256xf32>
    %730 = arith.addf %724, %729 : vector<8x256xf32>
    %731 = vector.extract_strided_slice %295 {offsets = [7, 0, 0], sizes = [1, 8, 256], strides = [1, 1, 1]} : vector<8x8x256xf32> to vector<1x8x256xf32>
    %732 = vector.shape_cast %731 : vector<1x8x256xf32> to vector<8x256xf32>
    %733 = vector.extract_strided_slice %687 {offsets = [7, 0], sizes = [1, 256], strides = [1, 1]} : vector<8x256xf32> to vector<1x256xf32>
    %734 = vector.broadcast %733 : vector<1x256xf32> to vector<8x256xf32>
    %735 = arith.mulf %732, %734 : vector<8x256xf32>
    %736 = arith.addf %730, %735 : vector<8x256xf32>
    %c9_i32 = arith.constant 9 : i32
    %737 = arith.addf %736, %292 : vector<8x256xf32>
    %738 = vector.extract_strided_slice %295 {offsets = [0, 0, 0], sizes = [1, 8, 256], strides = [1, 1, 1]} : vector<8x8x256xf32> to vector<1x8x256xf32>
    %739 = vector.shape_cast %738 : vector<1x8x256xf32> to vector<8x256xf32>
    %740 = vector.extract_strided_slice %736 {offsets = [0, 0], sizes = [1, 256], strides = [1, 1]} : vector<8x256xf32> to vector<1x256xf32>
    %741 = vector.broadcast %740 : vector<1x256xf32> to vector<8x256xf32>
    %742 = arith.mulf %739, %741 : vector<8x256xf32>
    %743 = arith.addf %737, %742 : vector<8x256xf32>
    %744 = vector.extract_strided_slice %295 {offsets = [1, 0, 0], sizes = [1, 8, 256], strides = [1, 1, 1]} : vector<8x8x256xf32> to vector<1x8x256xf32>
    %745 = vector.shape_cast %744 : vector<1x8x256xf32> to vector<8x256xf32>
    %746 = vector.extract_strided_slice %736 {offsets = [1, 0], sizes = [1, 256], strides = [1, 1]} : vector<8x256xf32> to vector<1x256xf32>
    %747 = vector.broadcast %746 : vector<1x256xf32> to vector<8x256xf32>
    %748 = arith.mulf %745, %747 : vector<8x256xf32>
    %749 = arith.addf %743, %748 : vector<8x256xf32>
    %750 = vector.extract_strided_slice %295 {offsets = [2, 0, 0], sizes = [1, 8, 256], strides = [1, 1, 1]} : vector<8x8x256xf32> to vector<1x8x256xf32>
    %751 = vector.shape_cast %750 : vector<1x8x256xf32> to vector<8x256xf32>
    %752 = vector.extract_strided_slice %736 {offsets = [2, 0], sizes = [1, 256], strides = [1, 1]} : vector<8x256xf32> to vector<1x256xf32>
    %753 = vector.broadcast %752 : vector<1x256xf32> to vector<8x256xf32>
    %754 = arith.mulf %751, %753 : vector<8x256xf32>
    %755 = arith.addf %749, %754 : vector<8x256xf32>
    %756 = vector.extract_strided_slice %295 {offsets = [3, 0, 0], sizes = [1, 8, 256], strides = [1, 1, 1]} : vector<8x8x256xf32> to vector<1x8x256xf32>
    %757 = vector.shape_cast %756 : vector<1x8x256xf32> to vector<8x256xf32>
    %758 = vector.extract_strided_slice %736 {offsets = [3, 0], sizes = [1, 256], strides = [1, 1]} : vector<8x256xf32> to vector<1x256xf32>
    %759 = vector.broadcast %758 : vector<1x256xf32> to vector<8x256xf32>
    %760 = arith.mulf %757, %759 : vector<8x256xf32>
    %761 = arith.addf %755, %760 : vector<8x256xf32>
    %762 = vector.extract_strided_slice %295 {offsets = [4, 0, 0], sizes = [1, 8, 256], strides = [1, 1, 1]} : vector<8x8x256xf32> to vector<1x8x256xf32>
    %763 = vector.shape_cast %762 : vector<1x8x256xf32> to vector<8x256xf32>
    %764 = vector.extract_strided_slice %736 {offsets = [4, 0], sizes = [1, 256], strides = [1, 1]} : vector<8x256xf32> to vector<1x256xf32>
    %765 = vector.broadcast %764 : vector<1x256xf32> to vector<8x256xf32>
    %766 = arith.mulf %763, %765 : vector<8x256xf32>
    %767 = arith.addf %761, %766 : vector<8x256xf32>
    %768 = vector.extract_strided_slice %295 {offsets = [5, 0, 0], sizes = [1, 8, 256], strides = [1, 1, 1]} : vector<8x8x256xf32> to vector<1x8x256xf32>
    %769 = vector.shape_cast %768 : vector<1x8x256xf32> to vector<8x256xf32>
    %770 = vector.extract_strided_slice %736 {offsets = [5, 0], sizes = [1, 256], strides = [1, 1]} : vector<8x256xf32> to vector<1x256xf32>
    %771 = vector.broadcast %770 : vector<1x256xf32> to vector<8x256xf32>
    %772 = arith.mulf %769, %771 : vector<8x256xf32>
    %773 = arith.addf %767, %772 : vector<8x256xf32>
    %774 = vector.extract_strided_slice %295 {offsets = [6, 0, 0], sizes = [1, 8, 256], strides = [1, 1, 1]} : vector<8x8x256xf32> to vector<1x8x256xf32>
    %775 = vector.shape_cast %774 : vector<1x8x256xf32> to vector<8x256xf32>
    %776 = vector.extract_strided_slice %736 {offsets = [6, 0], sizes = [1, 256], strides = [1, 1]} : vector<8x256xf32> to vector<1x256xf32>
    %777 = vector.broadcast %776 : vector<1x256xf32> to vector<8x256xf32>
    %778 = arith.mulf %775, %777 : vector<8x256xf32>
    %779 = arith.addf %773, %778 : vector<8x256xf32>
    %780 = vector.extract_strided_slice %295 {offsets = [7, 0, 0], sizes = [1, 8, 256], strides = [1, 1, 1]} : vector<8x8x256xf32> to vector<1x8x256xf32>
    %781 = vector.shape_cast %780 : vector<1x8x256xf32> to vector<8x256xf32>
    %782 = vector.extract_strided_slice %736 {offsets = [7, 0], sizes = [1, 256], strides = [1, 1]} : vector<8x256xf32> to vector<1x256xf32>
    %783 = vector.broadcast %782 : vector<1x256xf32> to vector<8x256xf32>
    %784 = arith.mulf %781, %783 : vector<8x256xf32>
    %785 = arith.addf %779, %784 : vector<8x256xf32>
    %c10_i32 = arith.constant 10 : i32
    %786 = arith.addf %785, %292 : vector<8x256xf32>
    %787 = vector.extract_strided_slice %295 {offsets = [0, 0, 0], sizes = [1, 8, 256], strides = [1, 1, 1]} : vector<8x8x256xf32> to vector<1x8x256xf32>
    %788 = vector.shape_cast %787 : vector<1x8x256xf32> to vector<8x256xf32>
    %789 = vector.extract_strided_slice %785 {offsets = [0, 0], sizes = [1, 256], strides = [1, 1]} : vector<8x256xf32> to vector<1x256xf32>
    %790 = vector.broadcast %789 : vector<1x256xf32> to vector<8x256xf32>
    %791 = arith.mulf %788, %790 : vector<8x256xf32>
    %792 = arith.addf %786, %791 : vector<8x256xf32>
    %793 = vector.extract_strided_slice %295 {offsets = [1, 0, 0], sizes = [1, 8, 256], strides = [1, 1, 1]} : vector<8x8x256xf32> to vector<1x8x256xf32>
    %794 = vector.shape_cast %793 : vector<1x8x256xf32> to vector<8x256xf32>
    %795 = vector.extract_strided_slice %785 {offsets = [1, 0], sizes = [1, 256], strides = [1, 1]} : vector<8x256xf32> to vector<1x256xf32>
    %796 = vector.broadcast %795 : vector<1x256xf32> to vector<8x256xf32>
    %797 = arith.mulf %794, %796 : vector<8x256xf32>
    %798 = arith.addf %792, %797 : vector<8x256xf32>
    %799 = vector.extract_strided_slice %295 {offsets = [2, 0, 0], sizes = [1, 8, 256], strides = [1, 1, 1]} : vector<8x8x256xf32> to vector<1x8x256xf32>
    %800 = vector.shape_cast %799 : vector<1x8x256xf32> to vector<8x256xf32>
    %801 = vector.extract_strided_slice %785 {offsets = [2, 0], sizes = [1, 256], strides = [1, 1]} : vector<8x256xf32> to vector<1x256xf32>
    %802 = vector.broadcast %801 : vector<1x256xf32> to vector<8x256xf32>
    %803 = arith.mulf %800, %802 : vector<8x256xf32>
    %804 = arith.addf %798, %803 : vector<8x256xf32>
    %805 = vector.extract_strided_slice %295 {offsets = [3, 0, 0], sizes = [1, 8, 256], strides = [1, 1, 1]} : vector<8x8x256xf32> to vector<1x8x256xf32>
    %806 = vector.shape_cast %805 : vector<1x8x256xf32> to vector<8x256xf32>
    %807 = vector.extract_strided_slice %785 {offsets = [3, 0], sizes = [1, 256], strides = [1, 1]} : vector<8x256xf32> to vector<1x256xf32>
    %808 = vector.broadcast %807 : vector<1x256xf32> to vector<8x256xf32>
    %809 = arith.mulf %806, %808 : vector<8x256xf32>
    %810 = arith.addf %804, %809 : vector<8x256xf32>
    %811 = vector.extract_strided_slice %295 {offsets = [4, 0, 0], sizes = [1, 8, 256], strides = [1, 1, 1]} : vector<8x8x256xf32> to vector<1x8x256xf32>
    %812 = vector.shape_cast %811 : vector<1x8x256xf32> to vector<8x256xf32>
    %813 = vector.extract_strided_slice %785 {offsets = [4, 0], sizes = [1, 256], strides = [1, 1]} : vector<8x256xf32> to vector<1x256xf32>
    %814 = vector.broadcast %813 : vector<1x256xf32> to vector<8x256xf32>
    %815 = arith.mulf %812, %814 : vector<8x256xf32>
    %816 = arith.addf %810, %815 : vector<8x256xf32>
    %817 = vector.extract_strided_slice %295 {offsets = [5, 0, 0], sizes = [1, 8, 256], strides = [1, 1, 1]} : vector<8x8x256xf32> to vector<1x8x256xf32>
    %818 = vector.shape_cast %817 : vector<1x8x256xf32> to vector<8x256xf32>
    %819 = vector.extract_strided_slice %785 {offsets = [5, 0], sizes = [1, 256], strides = [1, 1]} : vector<8x256xf32> to vector<1x256xf32>
    %820 = vector.broadcast %819 : vector<1x256xf32> to vector<8x256xf32>
    %821 = arith.mulf %818, %820 : vector<8x256xf32>
    %822 = arith.addf %816, %821 : vector<8x256xf32>
    %823 = vector.extract_strided_slice %295 {offsets = [6, 0, 0], sizes = [1, 8, 256], strides = [1, 1, 1]} : vector<8x8x256xf32> to vector<1x8x256xf32>
    %824 = vector.shape_cast %823 : vector<1x8x256xf32> to vector<8x256xf32>
    %825 = vector.extract_strided_slice %785 {offsets = [6, 0], sizes = [1, 256], strides = [1, 1]} : vector<8x256xf32> to vector<1x256xf32>
    %826 = vector.broadcast %825 : vector<1x256xf32> to vector<8x256xf32>
    %827 = arith.mulf %824, %826 : vector<8x256xf32>
    %828 = arith.addf %822, %827 : vector<8x256xf32>
    %829 = vector.extract_strided_slice %295 {offsets = [7, 0, 0], sizes = [1, 8, 256], strides = [1, 1, 1]} : vector<8x8x256xf32> to vector<1x8x256xf32>
    %830 = vector.shape_cast %829 : vector<1x8x256xf32> to vector<8x256xf32>
    %831 = vector.extract_strided_slice %785 {offsets = [7, 0], sizes = [1, 256], strides = [1, 1]} : vector<8x256xf32> to vector<1x256xf32>
    %832 = vector.broadcast %831 : vector<1x256xf32> to vector<8x256xf32>
    %833 = arith.mulf %830, %832 : vector<8x256xf32>
    %834 = arith.addf %828, %833 : vector<8x256xf32>
    %c11_i32 = arith.constant 11 : i32
    %835 = arith.addf %834, %292 : vector<8x256xf32>
    %836 = vector.extract_strided_slice %295 {offsets = [0, 0, 0], sizes = [1, 8, 256], strides = [1, 1, 1]} : vector<8x8x256xf32> to vector<1x8x256xf32>
    %837 = vector.shape_cast %836 : vector<1x8x256xf32> to vector<8x256xf32>
    %838 = vector.extract_strided_slice %834 {offsets = [0, 0], sizes = [1, 256], strides = [1, 1]} : vector<8x256xf32> to vector<1x256xf32>
    %839 = vector.broadcast %838 : vector<1x256xf32> to vector<8x256xf32>
    %840 = arith.mulf %837, %839 : vector<8x256xf32>
    %841 = arith.addf %835, %840 : vector<8x256xf32>
    %842 = vector.extract_strided_slice %295 {offsets = [1, 0, 0], sizes = [1, 8, 256], strides = [1, 1, 1]} : vector<8x8x256xf32> to vector<1x8x256xf32>
    %843 = vector.shape_cast %842 : vector<1x8x256xf32> to vector<8x256xf32>
    %844 = vector.extract_strided_slice %834 {offsets = [1, 0], sizes = [1, 256], strides = [1, 1]} : vector<8x256xf32> to vector<1x256xf32>
    %845 = vector.broadcast %844 : vector<1x256xf32> to vector<8x256xf32>
    %846 = arith.mulf %843, %845 : vector<8x256xf32>
    %847 = arith.addf %841, %846 : vector<8x256xf32>
    %848 = vector.extract_strided_slice %295 {offsets = [2, 0, 0], sizes = [1, 8, 256], strides = [1, 1, 1]} : vector<8x8x256xf32> to vector<1x8x256xf32>
    %849 = vector.shape_cast %848 : vector<1x8x256xf32> to vector<8x256xf32>
    %850 = vector.extract_strided_slice %834 {offsets = [2, 0], sizes = [1, 256], strides = [1, 1]} : vector<8x256xf32> to vector<1x256xf32>
    %851 = vector.broadcast %850 : vector<1x256xf32> to vector<8x256xf32>
    %852 = arith.mulf %849, %851 : vector<8x256xf32>
    %853 = arith.addf %847, %852 : vector<8x256xf32>
    %854 = vector.extract_strided_slice %295 {offsets = [3, 0, 0], sizes = [1, 8, 256], strides = [1, 1, 1]} : vector<8x8x256xf32> to vector<1x8x256xf32>
    %855 = vector.shape_cast %854 : vector<1x8x256xf32> to vector<8x256xf32>
    %856 = vector.extract_strided_slice %834 {offsets = [3, 0], sizes = [1, 256], strides = [1, 1]} : vector<8x256xf32> to vector<1x256xf32>
    %857 = vector.broadcast %856 : vector<1x256xf32> to vector<8x256xf32>
    %858 = arith.mulf %855, %857 : vector<8x256xf32>
    %859 = arith.addf %853, %858 : vector<8x256xf32>
    %860 = vector.extract_strided_slice %295 {offsets = [4, 0, 0], sizes = [1, 8, 256], strides = [1, 1, 1]} : vector<8x8x256xf32> to vector<1x8x256xf32>
    %861 = vector.shape_cast %860 : vector<1x8x256xf32> to vector<8x256xf32>
    %862 = vector.extract_strided_slice %834 {offsets = [4, 0], sizes = [1, 256], strides = [1, 1]} : vector<8x256xf32> to vector<1x256xf32>
    %863 = vector.broadcast %862 : vector<1x256xf32> to vector<8x256xf32>
    %864 = arith.mulf %861, %863 : vector<8x256xf32>
    %865 = arith.addf %859, %864 : vector<8x256xf32>
    %866 = vector.extract_strided_slice %295 {offsets = [5, 0, 0], sizes = [1, 8, 256], strides = [1, 1, 1]} : vector<8x8x256xf32> to vector<1x8x256xf32>
    %867 = vector.shape_cast %866 : vector<1x8x256xf32> to vector<8x256xf32>
    %868 = vector.extract_strided_slice %834 {offsets = [5, 0], sizes = [1, 256], strides = [1, 1]} : vector<8x256xf32> to vector<1x256xf32>
    %869 = vector.broadcast %868 : vector<1x256xf32> to vector<8x256xf32>
    %870 = arith.mulf %867, %869 : vector<8x256xf32>
    %871 = arith.addf %865, %870 : vector<8x256xf32>
    %872 = vector.extract_strided_slice %295 {offsets = [6, 0, 0], sizes = [1, 8, 256], strides = [1, 1, 1]} : vector<8x8x256xf32> to vector<1x8x256xf32>
    %873 = vector.shape_cast %872 : vector<1x8x256xf32> to vector<8x256xf32>
    %874 = vector.extract_strided_slice %834 {offsets = [6, 0], sizes = [1, 256], strides = [1, 1]} : vector<8x256xf32> to vector<1x256xf32>
    %875 = vector.broadcast %874 : vector<1x256xf32> to vector<8x256xf32>
    %876 = arith.mulf %873, %875 : vector<8x256xf32>
    %877 = arith.addf %871, %876 : vector<8x256xf32>
    %878 = vector.extract_strided_slice %295 {offsets = [7, 0, 0], sizes = [1, 8, 256], strides = [1, 1, 1]} : vector<8x8x256xf32> to vector<1x8x256xf32>
    %879 = vector.shape_cast %878 : vector<1x8x256xf32> to vector<8x256xf32>
    %880 = vector.extract_strided_slice %834 {offsets = [7, 0], sizes = [1, 256], strides = [1, 1]} : vector<8x256xf32> to vector<1x256xf32>
    %881 = vector.broadcast %880 : vector<1x256xf32> to vector<8x256xf32>
    %882 = arith.mulf %879, %881 : vector<8x256xf32>
    %883 = arith.addf %877, %882 : vector<8x256xf32>
    %c12_i32 = arith.constant 12 : i32
    %884 = arith.addf %883, %292 : vector<8x256xf32>
    %885 = vector.extract_strided_slice %295 {offsets = [0, 0, 0], sizes = [1, 8, 256], strides = [1, 1, 1]} : vector<8x8x256xf32> to vector<1x8x256xf32>
    %886 = vector.shape_cast %885 : vector<1x8x256xf32> to vector<8x256xf32>
    %887 = vector.extract_strided_slice %883 {offsets = [0, 0], sizes = [1, 256], strides = [1, 1]} : vector<8x256xf32> to vector<1x256xf32>
    %888 = vector.broadcast %887 : vector<1x256xf32> to vector<8x256xf32>
    %889 = arith.mulf %886, %888 : vector<8x256xf32>
    %890 = arith.addf %884, %889 : vector<8x256xf32>
    %891 = vector.extract_strided_slice %295 {offsets = [1, 0, 0], sizes = [1, 8, 256], strides = [1, 1, 1]} : vector<8x8x256xf32> to vector<1x8x256xf32>
    %892 = vector.shape_cast %891 : vector<1x8x256xf32> to vector<8x256xf32>
    %893 = vector.extract_strided_slice %883 {offsets = [1, 0], sizes = [1, 256], strides = [1, 1]} : vector<8x256xf32> to vector<1x256xf32>
    %894 = vector.broadcast %893 : vector<1x256xf32> to vector<8x256xf32>
    %895 = arith.mulf %892, %894 : vector<8x256xf32>
    %896 = arith.addf %890, %895 : vector<8x256xf32>
    %897 = vector.extract_strided_slice %295 {offsets = [2, 0, 0], sizes = [1, 8, 256], strides = [1, 1, 1]} : vector<8x8x256xf32> to vector<1x8x256xf32>
    %898 = vector.shape_cast %897 : vector<1x8x256xf32> to vector<8x256xf32>
    %899 = vector.extract_strided_slice %883 {offsets = [2, 0], sizes = [1, 256], strides = [1, 1]} : vector<8x256xf32> to vector<1x256xf32>
    %900 = vector.broadcast %899 : vector<1x256xf32> to vector<8x256xf32>
    %901 = arith.mulf %898, %900 : vector<8x256xf32>
    %902 = arith.addf %896, %901 : vector<8x256xf32>
    %903 = vector.extract_strided_slice %295 {offsets = [3, 0, 0], sizes = [1, 8, 256], strides = [1, 1, 1]} : vector<8x8x256xf32> to vector<1x8x256xf32>
    %904 = vector.shape_cast %903 : vector<1x8x256xf32> to vector<8x256xf32>
    %905 = vector.extract_strided_slice %883 {offsets = [3, 0], sizes = [1, 256], strides = [1, 1]} : vector<8x256xf32> to vector<1x256xf32>
    %906 = vector.broadcast %905 : vector<1x256xf32> to vector<8x256xf32>
    %907 = arith.mulf %904, %906 : vector<8x256xf32>
    %908 = arith.addf %902, %907 : vector<8x256xf32>
    %909 = vector.extract_strided_slice %295 {offsets = [4, 0, 0], sizes = [1, 8, 256], strides = [1, 1, 1]} : vector<8x8x256xf32> to vector<1x8x256xf32>
    %910 = vector.shape_cast %909 : vector<1x8x256xf32> to vector<8x256xf32>
    %911 = vector.extract_strided_slice %883 {offsets = [4, 0], sizes = [1, 256], strides = [1, 1]} : vector<8x256xf32> to vector<1x256xf32>
    %912 = vector.broadcast %911 : vector<1x256xf32> to vector<8x256xf32>
    %913 = arith.mulf %910, %912 : vector<8x256xf32>
    %914 = arith.addf %908, %913 : vector<8x256xf32>
    %915 = vector.extract_strided_slice %295 {offsets = [5, 0, 0], sizes = [1, 8, 256], strides = [1, 1, 1]} : vector<8x8x256xf32> to vector<1x8x256xf32>
    %916 = vector.shape_cast %915 : vector<1x8x256xf32> to vector<8x256xf32>
    %917 = vector.extract_strided_slice %883 {offsets = [5, 0], sizes = [1, 256], strides = [1, 1]} : vector<8x256xf32> to vector<1x256xf32>
    %918 = vector.broadcast %917 : vector<1x256xf32> to vector<8x256xf32>
    %919 = arith.mulf %916, %918 : vector<8x256xf32>
    %920 = arith.addf %914, %919 : vector<8x256xf32>
    %921 = vector.extract_strided_slice %295 {offsets = [6, 0, 0], sizes = [1, 8, 256], strides = [1, 1, 1]} : vector<8x8x256xf32> to vector<1x8x256xf32>
    %922 = vector.shape_cast %921 : vector<1x8x256xf32> to vector<8x256xf32>
    %923 = vector.extract_strided_slice %883 {offsets = [6, 0], sizes = [1, 256], strides = [1, 1]} : vector<8x256xf32> to vector<1x256xf32>
    %924 = vector.broadcast %923 : vector<1x256xf32> to vector<8x256xf32>
    %925 = arith.mulf %922, %924 : vector<8x256xf32>
    %926 = arith.addf %920, %925 : vector<8x256xf32>
    %927 = vector.extract_strided_slice %295 {offsets = [7, 0, 0], sizes = [1, 8, 256], strides = [1, 1, 1]} : vector<8x8x256xf32> to vector<1x8x256xf32>
    %928 = vector.shape_cast %927 : vector<1x8x256xf32> to vector<8x256xf32>
    %929 = vector.extract_strided_slice %883 {offsets = [7, 0], sizes = [1, 256], strides = [1, 1]} : vector<8x256xf32> to vector<1x256xf32>
    %930 = vector.broadcast %929 : vector<1x256xf32> to vector<8x256xf32>
    %931 = arith.mulf %928, %930 : vector<8x256xf32>
    %932 = arith.addf %926, %931 : vector<8x256xf32>
    %c13_i32 = arith.constant 13 : i32
    %933 = arith.addf %932, %292 : vector<8x256xf32>
    %934 = vector.extract_strided_slice %295 {offsets = [0, 0, 0], sizes = [1, 8, 256], strides = [1, 1, 1]} : vector<8x8x256xf32> to vector<1x8x256xf32>
    %935 = vector.shape_cast %934 : vector<1x8x256xf32> to vector<8x256xf32>
    %936 = vector.extract_strided_slice %932 {offsets = [0, 0], sizes = [1, 256], strides = [1, 1]} : vector<8x256xf32> to vector<1x256xf32>
    %937 = vector.broadcast %936 : vector<1x256xf32> to vector<8x256xf32>
    %938 = arith.mulf %935, %937 : vector<8x256xf32>
    %939 = arith.addf %933, %938 : vector<8x256xf32>
    %940 = vector.extract_strided_slice %295 {offsets = [1, 0, 0], sizes = [1, 8, 256], strides = [1, 1, 1]} : vector<8x8x256xf32> to vector<1x8x256xf32>
    %941 = vector.shape_cast %940 : vector<1x8x256xf32> to vector<8x256xf32>
    %942 = vector.extract_strided_slice %932 {offsets = [1, 0], sizes = [1, 256], strides = [1, 1]} : vector<8x256xf32> to vector<1x256xf32>
    %943 = vector.broadcast %942 : vector<1x256xf32> to vector<8x256xf32>
    %944 = arith.mulf %941, %943 : vector<8x256xf32>
    %945 = arith.addf %939, %944 : vector<8x256xf32>
    %946 = vector.extract_strided_slice %295 {offsets = [2, 0, 0], sizes = [1, 8, 256], strides = [1, 1, 1]} : vector<8x8x256xf32> to vector<1x8x256xf32>
    %947 = vector.shape_cast %946 : vector<1x8x256xf32> to vector<8x256xf32>
    %948 = vector.extract_strided_slice %932 {offsets = [2, 0], sizes = [1, 256], strides = [1, 1]} : vector<8x256xf32> to vector<1x256xf32>
    %949 = vector.broadcast %948 : vector<1x256xf32> to vector<8x256xf32>
    %950 = arith.mulf %947, %949 : vector<8x256xf32>
    %951 = arith.addf %945, %950 : vector<8x256xf32>
    %952 = vector.extract_strided_slice %295 {offsets = [3, 0, 0], sizes = [1, 8, 256], strides = [1, 1, 1]} : vector<8x8x256xf32> to vector<1x8x256xf32>
    %953 = vector.shape_cast %952 : vector<1x8x256xf32> to vector<8x256xf32>
    %954 = vector.extract_strided_slice %932 {offsets = [3, 0], sizes = [1, 256], strides = [1, 1]} : vector<8x256xf32> to vector<1x256xf32>
    %955 = vector.broadcast %954 : vector<1x256xf32> to vector<8x256xf32>
    %956 = arith.mulf %953, %955 : vector<8x256xf32>
    %957 = arith.addf %951, %956 : vector<8x256xf32>
    %958 = vector.extract_strided_slice %295 {offsets = [4, 0, 0], sizes = [1, 8, 256], strides = [1, 1, 1]} : vector<8x8x256xf32> to vector<1x8x256xf32>
    %959 = vector.shape_cast %958 : vector<1x8x256xf32> to vector<8x256xf32>
    %960 = vector.extract_strided_slice %932 {offsets = [4, 0], sizes = [1, 256], strides = [1, 1]} : vector<8x256xf32> to vector<1x256xf32>
    %961 = vector.broadcast %960 : vector<1x256xf32> to vector<8x256xf32>
    %962 = arith.mulf %959, %961 : vector<8x256xf32>
    %963 = arith.addf %957, %962 : vector<8x256xf32>
    %964 = vector.extract_strided_slice %295 {offsets = [5, 0, 0], sizes = [1, 8, 256], strides = [1, 1, 1]} : vector<8x8x256xf32> to vector<1x8x256xf32>
    %965 = vector.shape_cast %964 : vector<1x8x256xf32> to vector<8x256xf32>
    %966 = vector.extract_strided_slice %932 {offsets = [5, 0], sizes = [1, 256], strides = [1, 1]} : vector<8x256xf32> to vector<1x256xf32>
    %967 = vector.broadcast %966 : vector<1x256xf32> to vector<8x256xf32>
    %968 = arith.mulf %965, %967 : vector<8x256xf32>
    %969 = arith.addf %963, %968 : vector<8x256xf32>
    %970 = vector.extract_strided_slice %295 {offsets = [6, 0, 0], sizes = [1, 8, 256], strides = [1, 1, 1]} : vector<8x8x256xf32> to vector<1x8x256xf32>
    %971 = vector.shape_cast %970 : vector<1x8x256xf32> to vector<8x256xf32>
    %972 = vector.extract_strided_slice %932 {offsets = [6, 0], sizes = [1, 256], strides = [1, 1]} : vector<8x256xf32> to vector<1x256xf32>
    %973 = vector.broadcast %972 : vector<1x256xf32> to vector<8x256xf32>
    %974 = arith.mulf %971, %973 : vector<8x256xf32>
    %975 = arith.addf %969, %974 : vector<8x256xf32>
    %976 = vector.extract_strided_slice %295 {offsets = [7, 0, 0], sizes = [1, 8, 256], strides = [1, 1, 1]} : vector<8x8x256xf32> to vector<1x8x256xf32>
    %977 = vector.shape_cast %976 : vector<1x8x256xf32> to vector<8x256xf32>
    %978 = vector.extract_strided_slice %932 {offsets = [7, 0], sizes = [1, 256], strides = [1, 1]} : vector<8x256xf32> to vector<1x256xf32>
    %979 = vector.broadcast %978 : vector<1x256xf32> to vector<8x256xf32>
    %980 = arith.mulf %977, %979 : vector<8x256xf32>
    %981 = arith.addf %975, %980 : vector<8x256xf32>
    %c14_i32 = arith.constant 14 : i32
    %982 = arith.addf %981, %292 : vector<8x256xf32>
    %983 = vector.extract_strided_slice %295 {offsets = [0, 0, 0], sizes = [1, 8, 256], strides = [1, 1, 1]} : vector<8x8x256xf32> to vector<1x8x256xf32>
    %984 = vector.shape_cast %983 : vector<1x8x256xf32> to vector<8x256xf32>
    %985 = vector.extract_strided_slice %981 {offsets = [0, 0], sizes = [1, 256], strides = [1, 1]} : vector<8x256xf32> to vector<1x256xf32>
    %986 = vector.broadcast %985 : vector<1x256xf32> to vector<8x256xf32>
    %987 = arith.mulf %984, %986 : vector<8x256xf32>
    %988 = arith.addf %982, %987 : vector<8x256xf32>
    %989 = vector.extract_strided_slice %295 {offsets = [1, 0, 0], sizes = [1, 8, 256], strides = [1, 1, 1]} : vector<8x8x256xf32> to vector<1x8x256xf32>
    %990 = vector.shape_cast %989 : vector<1x8x256xf32> to vector<8x256xf32>
    %991 = vector.extract_strided_slice %981 {offsets = [1, 0], sizes = [1, 256], strides = [1, 1]} : vector<8x256xf32> to vector<1x256xf32>
    %992 = vector.broadcast %991 : vector<1x256xf32> to vector<8x256xf32>
    %993 = arith.mulf %990, %992 : vector<8x256xf32>
    %994 = arith.addf %988, %993 : vector<8x256xf32>
    %995 = vector.extract_strided_slice %295 {offsets = [2, 0, 0], sizes = [1, 8, 256], strides = [1, 1, 1]} : vector<8x8x256xf32> to vector<1x8x256xf32>
    %996 = vector.shape_cast %995 : vector<1x8x256xf32> to vector<8x256xf32>
    %997 = vector.extract_strided_slice %981 {offsets = [2, 0], sizes = [1, 256], strides = [1, 1]} : vector<8x256xf32> to vector<1x256xf32>
    %998 = vector.broadcast %997 : vector<1x256xf32> to vector<8x256xf32>
    %999 = arith.mulf %996, %998 : vector<8x256xf32>
    %1000 = arith.addf %994, %999 : vector<8x256xf32>
    %1001 = vector.extract_strided_slice %295 {offsets = [3, 0, 0], sizes = [1, 8, 256], strides = [1, 1, 1]} : vector<8x8x256xf32> to vector<1x8x256xf32>
    %1002 = vector.shape_cast %1001 : vector<1x8x256xf32> to vector<8x256xf32>
    %1003 = vector.extract_strided_slice %981 {offsets = [3, 0], sizes = [1, 256], strides = [1, 1]} : vector<8x256xf32> to vector<1x256xf32>
    %1004 = vector.broadcast %1003 : vector<1x256xf32> to vector<8x256xf32>
    %1005 = arith.mulf %1002, %1004 : vector<8x256xf32>
    %1006 = arith.addf %1000, %1005 : vector<8x256xf32>
    %1007 = vector.extract_strided_slice %295 {offsets = [4, 0, 0], sizes = [1, 8, 256], strides = [1, 1, 1]} : vector<8x8x256xf32> to vector<1x8x256xf32>
    %1008 = vector.shape_cast %1007 : vector<1x8x256xf32> to vector<8x256xf32>
    %1009 = vector.extract_strided_slice %981 {offsets = [4, 0], sizes = [1, 256], strides = [1, 1]} : vector<8x256xf32> to vector<1x256xf32>
    %1010 = vector.broadcast %1009 : vector<1x256xf32> to vector<8x256xf32>
    %1011 = arith.mulf %1008, %1010 : vector<8x256xf32>
    %1012 = arith.addf %1006, %1011 : vector<8x256xf32>
    %1013 = vector.extract_strided_slice %295 {offsets = [5, 0, 0], sizes = [1, 8, 256], strides = [1, 1, 1]} : vector<8x8x256xf32> to vector<1x8x256xf32>
    %1014 = vector.shape_cast %1013 : vector<1x8x256xf32> to vector<8x256xf32>
    %1015 = vector.extract_strided_slice %981 {offsets = [5, 0], sizes = [1, 256], strides = [1, 1]} : vector<8x256xf32> to vector<1x256xf32>
    %1016 = vector.broadcast %1015 : vector<1x256xf32> to vector<8x256xf32>
    %1017 = arith.mulf %1014, %1016 : vector<8x256xf32>
    %1018 = arith.addf %1012, %1017 : vector<8x256xf32>
    %1019 = vector.extract_strided_slice %295 {offsets = [6, 0, 0], sizes = [1, 8, 256], strides = [1, 1, 1]} : vector<8x8x256xf32> to vector<1x8x256xf32>
    %1020 = vector.shape_cast %1019 : vector<1x8x256xf32> to vector<8x256xf32>
    %1021 = vector.extract_strided_slice %981 {offsets = [6, 0], sizes = [1, 256], strides = [1, 1]} : vector<8x256xf32> to vector<1x256xf32>
    %1022 = vector.broadcast %1021 : vector<1x256xf32> to vector<8x256xf32>
    %1023 = arith.mulf %1020, %1022 : vector<8x256xf32>
    %1024 = arith.addf %1018, %1023 : vector<8x256xf32>
    %1025 = vector.extract_strided_slice %295 {offsets = [7, 0, 0], sizes = [1, 8, 256], strides = [1, 1, 1]} : vector<8x8x256xf32> to vector<1x8x256xf32>
    %1026 = vector.shape_cast %1025 : vector<1x8x256xf32> to vector<8x256xf32>
    %1027 = vector.extract_strided_slice %981 {offsets = [7, 0], sizes = [1, 256], strides = [1, 1]} : vector<8x256xf32> to vector<1x256xf32>
    %1028 = vector.broadcast %1027 : vector<1x256xf32> to vector<8x256xf32>
    %1029 = arith.mulf %1026, %1028 : vector<8x256xf32>
    %1030 = arith.addf %1024, %1029 : vector<8x256xf32>
    %c15_i32 = arith.constant 15 : i32
    %1031 = arith.addf %1030, %292 : vector<8x256xf32>
    %1032 = vector.extract_strided_slice %295 {offsets = [0, 0, 0], sizes = [1, 8, 256], strides = [1, 1, 1]} : vector<8x8x256xf32> to vector<1x8x256xf32>
    %1033 = vector.shape_cast %1032 : vector<1x8x256xf32> to vector<8x256xf32>
    %1034 = vector.extract_strided_slice %1030 {offsets = [0, 0], sizes = [1, 256], strides = [1, 1]} : vector<8x256xf32> to vector<1x256xf32>
    %1035 = vector.broadcast %1034 : vector<1x256xf32> to vector<8x256xf32>
    %1036 = arith.mulf %1033, %1035 : vector<8x256xf32>
    %1037 = arith.addf %1031, %1036 : vector<8x256xf32>
    %1038 = vector.extract_strided_slice %295 {offsets = [1, 0, 0], sizes = [1, 8, 256], strides = [1, 1, 1]} : vector<8x8x256xf32> to vector<1x8x256xf32>
    %1039 = vector.shape_cast %1038 : vector<1x8x256xf32> to vector<8x256xf32>
    %1040 = vector.extract_strided_slice %1030 {offsets = [1, 0], sizes = [1, 256], strides = [1, 1]} : vector<8x256xf32> to vector<1x256xf32>
    %1041 = vector.broadcast %1040 : vector<1x256xf32> to vector<8x256xf32>
    %1042 = arith.mulf %1039, %1041 : vector<8x256xf32>
    %1043 = arith.addf %1037, %1042 : vector<8x256xf32>
    %1044 = vector.extract_strided_slice %295 {offsets = [2, 0, 0], sizes = [1, 8, 256], strides = [1, 1, 1]} : vector<8x8x256xf32> to vector<1x8x256xf32>
    %1045 = vector.shape_cast %1044 : vector<1x8x256xf32> to vector<8x256xf32>
    %1046 = vector.extract_strided_slice %1030 {offsets = [2, 0], sizes = [1, 256], strides = [1, 1]} : vector<8x256xf32> to vector<1x256xf32>
    %1047 = vector.broadcast %1046 : vector<1x256xf32> to vector<8x256xf32>
    %1048 = arith.mulf %1045, %1047 : vector<8x256xf32>
    %1049 = arith.addf %1043, %1048 : vector<8x256xf32>
    %1050 = vector.extract_strided_slice %295 {offsets = [3, 0, 0], sizes = [1, 8, 256], strides = [1, 1, 1]} : vector<8x8x256xf32> to vector<1x8x256xf32>
    %1051 = vector.shape_cast %1050 : vector<1x8x256xf32> to vector<8x256xf32>
    %1052 = vector.extract_strided_slice %1030 {offsets = [3, 0], sizes = [1, 256], strides = [1, 1]} : vector<8x256xf32> to vector<1x256xf32>
    %1053 = vector.broadcast %1052 : vector<1x256xf32> to vector<8x256xf32>
    %1054 = arith.mulf %1051, %1053 : vector<8x256xf32>
    %1055 = arith.addf %1049, %1054 : vector<8x256xf32>
    %1056 = vector.extract_strided_slice %295 {offsets = [4, 0, 0], sizes = [1, 8, 256], strides = [1, 1, 1]} : vector<8x8x256xf32> to vector<1x8x256xf32>
    %1057 = vector.shape_cast %1056 : vector<1x8x256xf32> to vector<8x256xf32>
    %1058 = vector.extract_strided_slice %1030 {offsets = [4, 0], sizes = [1, 256], strides = [1, 1]} : vector<8x256xf32> to vector<1x256xf32>
    %1059 = vector.broadcast %1058 : vector<1x256xf32> to vector<8x256xf32>
    %1060 = arith.mulf %1057, %1059 : vector<8x256xf32>
    %1061 = arith.addf %1055, %1060 : vector<8x256xf32>
    %1062 = vector.extract_strided_slice %295 {offsets = [5, 0, 0], sizes = [1, 8, 256], strides = [1, 1, 1]} : vector<8x8x256xf32> to vector<1x8x256xf32>
    %1063 = vector.shape_cast %1062 : vector<1x8x256xf32> to vector<8x256xf32>
    %1064 = vector.extract_strided_slice %1030 {offsets = [5, 0], sizes = [1, 256], strides = [1, 1]} : vector<8x256xf32> to vector<1x256xf32>
    %1065 = vector.broadcast %1064 : vector<1x256xf32> to vector<8x256xf32>
    %1066 = arith.mulf %1063, %1065 : vector<8x256xf32>
    %1067 = arith.addf %1061, %1066 : vector<8x256xf32>
    %1068 = vector.extract_strided_slice %295 {offsets = [6, 0, 0], sizes = [1, 8, 256], strides = [1, 1, 1]} : vector<8x8x256xf32> to vector<1x8x256xf32>
    %1069 = vector.shape_cast %1068 : vector<1x8x256xf32> to vector<8x256xf32>
    %1070 = vector.extract_strided_slice %1030 {offsets = [6, 0], sizes = [1, 256], strides = [1, 1]} : vector<8x256xf32> to vector<1x256xf32>
    %1071 = vector.broadcast %1070 : vector<1x256xf32> to vector<8x256xf32>
    %1072 = arith.mulf %1069, %1071 : vector<8x256xf32>
    %1073 = arith.addf %1067, %1072 : vector<8x256xf32>
    %1074 = vector.extract_strided_slice %295 {offsets = [7, 0, 0], sizes = [1, 8, 256], strides = [1, 1, 1]} : vector<8x8x256xf32> to vector<1x8x256xf32>
    %1075 = vector.shape_cast %1074 : vector<1x8x256xf32> to vector<8x256xf32>
    %1076 = vector.extract_strided_slice %1030 {offsets = [7, 0], sizes = [1, 256], strides = [1, 1]} : vector<8x256xf32> to vector<1x256xf32>
    %1077 = vector.broadcast %1076 : vector<1x256xf32> to vector<8x256xf32>
    %1078 = arith.mulf %1075, %1077 : vector<8x256xf32>
    %1079 = arith.addf %1073, %1078 : vector<8x256xf32>
    %c0_102 = arith.constant 0 : index
    %c0_103 = arith.constant 0 : index
    %1080 = vector.load %arg4[%c0_102, %c0_103] : memref<8x256xf32, #tpu.memory_space<vmem>>, vector<8x256xf32>
    tpu.vector_store %arg4[%c0_102, %c0_103], %1079 {strides = array<i32>} : memref<8x256xf32, #tpu.memory_space<vmem>>, vector<8x256xf32>,
    return
  }
  func.func @transform_0(%arg0: i32) -> (i32, i32) {
    %c0_i32 = arith.constant 0 : i32
    %c0_i32_0 = arith.constant 0 : i32
    return %c0_i32, %arg0 : i32, i32
  }
  func.func @transform_1(%arg0: i32) -> (i32, i32, i32) {
    %c0_i32 = arith.constant 0 : i32
    %c0_i32_0 = arith.constant 0 : i32
    %c0_i32_1 = arith.constant 0 : i32
    return %c0_i32, %c0_i32_0, %arg0 : i32, i32, i32
  }
  func.func @transform_2(%arg0: i32) -> (i32, i32) {
    %c0_i32 = arith.constant 0 : i32
    %c0_i32_0 = arith.constant 0 : i32
    return %c0_i32, %arg0 : i32, i32
  }
  func.func @transform_3(%arg0: i32) -> (i32, i32) {
    %c0_i32 = arith.constant 0 : i32
    %c0_i32_0 = arith.constant 0 : i32
    return %c0_i32, %arg0 : i32, i32
  }
}

</mosaic_0001>

<bundles_post_ra>
// kernel: gd_detector_forward.1
= control target key start
LH: loop header
LB: loop body
LE: loop exit
PB: predicated region body
PF: predicated region fallthrough
CT: control target
= control target key end

     0   :  { %v20_v0 = vlaneseq  ;;  %v6140_v2 = vmov 1966171168   ;;  %s9470_s0 = inlined_call_operand.vmem [shape: f32[24,256], index: 0, kind: input, shape index: {}]   ;;  %s9471_s1 = inlined_call_operand.vmem [shape: f32[24,8,256], index: 1, kind: input, shape index: {}]   ;;  %s9472_s2 = inlined_call_operand.vmem [shape: f32[8,256], index: 2, kind: input, shape index: {}]   ;;  %s9473_s3 = inlined_call_operand.vmem [shape: f32[8,256], index: 3, kind: output, shape index: {}]  }
   0x1   :  { %v6164_v1 = vld [vmem:[%s9471_s1] sm:$0xff]  ;;  %v39_v3 = vunpack.c.l.s4 %v6140_v2  ;;  %v6169_v4 = vld [vmem:[%s9471_s1 + $0x8] sm:$0xff]  ;;  %v6179_v7 = vld [vmem:[%s9471_s1 + $0x10] sm:$0xff] }
   0x2   :  { %v18_v5 = vld [vmem:[%s9470_s0] ss:$8 sm:$0x3]  ;;  %v6174_v6 = vshrl.u32 %v20_v0, 7  ;;  %v36_v8 = vcombine.low %v6164_v1, %v6169_v4  ;;  %v37_v9 = vcombine.high %v6164_v1, %v6169_v4  ;;  %v6188_v11 = vld [vmem:[%s9471_s1 + $0x18] sm:$0xff] }
   0x3   :  { %v40_v10 = vunpack.c.0.s8 %v39_v3  ;;  %v6024_v12 = vld [vmem:[%s9470_s0 + $0x1] ss:$8 sm:$0x3]  ;;  %v220_v15 = vcombine.low %v6179_v7, %v6188_v11  ;;  %v221_v16 = vcombine.high %v6179_v7, %v6188_v11 }
   0x4   :  { %v6194_v13 = vsub.s32 0, %v6174_v6  ;;  %v6197_v14 = vsub.s32 1, %v6174_v6  ;;  %v6213_v22 = vld [vmem:[%s9471_s1 + $0x20] sm:$0xff]  ;;  %v6218_v23 = vld [vmem:[%s9471_s1 + $0x28] sm:$0xff] }
   0x5   :  { %v6204_v17 = vsub.s32 %v40_v10, %v6174_v6  ;;  %v404_v35 = vcombine.low %v6213_v22, %v6218_v23  ;;  %v405_v39 = vcombine.high %v6213_v22, %v6218_v23 }
   0x6   :  { %v23_v18 = vrot.slane %v18_v5, %v6194_v13  ;;  %v27_v19 = vrot.slane %v18_v5, %v6197_v14  ;;  %v207_v20 = vrot.slane %v6024_v12, %v6194_v13  ;;  %v211_v21 = vrot.slane %v6024_v12, %v6197_v14 }
   0x7   :  { %v44_v24 = vrot.slane %v36_v8, %v6204_v17  ;;  %v51_v25 = vrot.slane %v37_v9, %v6204_v17  ;;  %v228_v26 = vrot.slane %v220_v15, %v6204_v17  ;;  %v235_v27 = vrot.slane %v221_v16, %v6204_v17 }
   0x8   :  { %v30_v28 = vmul.f32 %v23_v18, %v6164_v1  ;;  %v31_v29 = vmul.f32 %v27_v19, %v6169_v4  ;;  %v214_v30 = vmul.f32 %v6179_v7, %v207_v20  ;;  %v215_v31 = vmul.f32 %v6188_v11, %v211_v21  ;;  %v6271_v20 = vld [vmem:[%s9470_s0 + $0x2] ss:$8 sm:$0x3] }
   0x9   :  { %v52_v32 = vcombine.high %v44_v24, %v44_v24  ;;  %v53_v33 = vcombine.high %v51_v25, %v51_v25  ;;  %v60_v34 = vrot.slane %v44_v24, %v6204_v17  ;;  %v67_v36 = vrot.slane %v51_v25, %v6204_v17 }
   0xa   :  { %v6232_v37 = vadd.f32 %v214_v30, %v30_v28  ;;  %v6234_v38 = vadd.f32 %v215_v31, %v31_v29  ;;  %v236_v43 = vcombine.high %v228_v26, %v228_v26  ;;  %v237_v47 = vcombine.high %v235_v27, %v235_v27 }
   0xb   :  { %v74_v40 = vrot.slane %v52_v32, %v6204_v17  ;;  %v81_v41 = vrot.slane %v53_v33, %v6204_v17  ;;  %v82_v42 = vcombine.high %v60_v34, %v60_v34  ;;  %v83_v44 = vcombine.high %v67_v36, %v67_v36 }
   0xc   :  { %v89_v45 = vrot.slane %v60_v34, %v6194_v13  ;;  %v93_v46 = vrot.slane %v60_v34, %v6197_v14  ;;  %v121_v54 = vrot.slane %v67_v36, %v6194_v13  ;;  %v125_v55 = vrot.slane %v67_v36, %v6197_v14 }
   0xd   :  { %v84_v48 = vcombine.high %v74_v40, %v74_v40  ;;  %v85_v49 = vcombine.high %v81_v41, %v81_v41  ;;  %v97_v50 = vrot.slane %v74_v40, %v6194_v13  ;;  %v101_v51 = vrot.slane %v74_v40, %v6197_v14 }
   0xe   :  { %v105_v52 = vrot.slane %v82_v42, %v6194_v13  ;;  %v109_v53 = vrot.slane %v82_v42, %v6197_v14  ;;  %v129_v58 = vrot.slane %v81_v41, %v6194_v13  ;;  %v133_v59 = vrot.slane %v81_v41, %v6197_v14 }
   0xf   :  { %v113_v56 = vrot.slane %v84_v48, %v6194_v13  ;;  %v117_v57 = vrot.slane %v84_v48, %v6197_v14  ;;  %v137_v60 = vrot.slane %v83_v44, %v6194_v13  ;;  %v141_v61 = vrot.slane %v83_v44, %v6197_v14 }
  0x10   :  { %v145_v62 = vrot.slane %v85_v49, %v6194_v13  ;;  %v149_v63 = vrot.slane %v85_v49, %v6197_v14  ;;  %v166_v0 = vmul.f32 %v89_v45, %v6164_v1  ;;  %v167_v2 = vmul.f32 %v93_v46, %v6169_v4 }
  0x11   :  { %v168_v3 = vmul.f32 %v97_v50, %v6164_v1  ;;  %v169_v5 = vmul.f32 %v101_v51, %v6169_v4  ;;  %v170_v8 = vmul.f32 %v105_v52, %v6164_v1  ;;  %v171_v9 = vmul.f32 %v109_v53, %v6169_v4 }
  0x12   :  { %v172_v10 = vmul.f32 %v113_v56, %v6164_v1  ;;  %v173_v12 = vmul.f32 %v117_v57, %v6169_v4  ;;  %v174_v15 = vmul.f32 %v121_v54, %v6164_v1  ;;  %v175_v16 = vmul.f32 %v125_v55, %v6169_v4 }
  0x13   :  { %v176_v18 = vmul.f32 %v129_v58, %v6164_v1  ;;  %v177_v19 = vmul.f32 %v133_v59, %v6169_v4  ;;  %v178_v21 = vmul.f32 %v137_v60, %v6164_v1  ;;  %v179_v24 = vmul.f32 %v141_v61, %v6169_v4 }
  0x14   :  { %v244_v25 = vrot.slane %v228_v26, %v6204_v17  ;;  %v251_v28 = vrot.slane %v235_v27, %v6204_v17  ;;  %v6278_v29 = vmul.f32 %v145_v62, %v6164_v1  ;;  %v6281_v30 = vmul.f32 %v149_v63, %v6169_v4 }
  0x15   :  { %v258_v31 = vrot.slane %v236_v43, %v6204_v17  ;;  %v265_v32 = vrot.slane %v237_v47, %v6204_v17  ;;  %v391_v36 = vrot.slane %v6271_v20, %v6194_v13  ;;  %v395_v26 = vrot.slane %v6271_v20, %v6197_v14 }
  0x16   :  { %v266_v33 = vcombine.high %v244_v25, %v244_v25  ;;  %v267_v34 = vcombine.high %v251_v28, %v251_v28  ;;  %v273_v1 = vrot.slane %v244_v25, %v6194_v13  ;;  %v277_v41 = vrot.slane %v244_v25, %v6197_v14 }
  0x17   :  { %v268_v40 = vcombine.high %v258_v31, %v258_v31  ;;  %v269_v27 = vcombine.high %v265_v32, %v265_v32  ;;  %v281_v4 = vrot.slane %v258_v31, %v6194_v13  ;;  %v285_v42 = vrot.slane %v258_v31, %v6197_v14 }
  0x18   :  { %v289_v43 = vrot.slane %v266_v33, %v6194_v13  ;;  %v293_v44 = vrot.slane %v266_v33, %v6197_v14  ;;  %v305_v47 = vrot.slane %v251_v28, %v6194_v13  ;;  %v309_v48 = vrot.slane %v251_v28, %v6197_v14 }
  0x19   :  { %v297_v45 = vrot.slane %v268_v40, %v6194_v13  ;;  %v301_v46 = vrot.slane %v268_v40, %v6197_v14  ;;  %v313_v49 = vrot.slane %v265_v32, %v6194_v13  ;;  %v317_v50 = vrot.slane %v265_v32, %v6197_v14 }
  0x1a   :  { %v321_v51 = vrot.slane %v267_v34, %v6194_v13  ;;  %v325_v52 = vrot.slane %v267_v34, %v6197_v14  ;;  %v329_v53 = vrot.slane %v269_v27, %v6194_v13  ;;  %v333_v54 = vrot.slane %v269_v27, %v6197_v14 }
  0x1b   :  { %v350_v55 = vmul.f32 %v6179_v7, %v273_v1  ;;  %v351_v56 = vmul.f32 %v6188_v11, %v277_v41  ;;  %v352_v57 = vmul.f32 %v6179_v7, %v281_v4  ;;  %v353_v58 = vmul.f32 %v6188_v11, %v285_v42 }
  0x1c   :  { %v354_v59 = vmul.f32 %v6179_v7, %v289_v43  ;;  %v355_v60 = vmul.f32 %v6188_v11, %v293_v44  ;;  %v356_v61 = vmul.f32 %v6179_v7, %v297_v45  ;;  %v357_v62 = vmul.f32 %v6188_v11, %v301_v46 }
  0x1d   :  { %v358_v63 = vmul.f32 %v6179_v7, %v305_v47  ;;  %v359_v20 = vmul.f32 %v6188_v11, %v309_v48  ;;  %v360_v25 = vmul.f32 %v6179_v7, %v313_v49  ;;  %v361_v28 = vmul.f32 %v6188_v11, %v317_v50 }
  0x1e   :  { %v362_v31 = vmul.f32 %v6179_v7, %v321_v51  ;;  %v363_v32 = vmul.f32 %v6188_v11, %v325_v52  ;;  %v364_v33 = vmul.f32 %v6179_v7, %v329_v53  ;;  %v365_v34 = vmul.f32 %v6188_v11, %v333_v54  ;;  %v6344_v11 = vld [vmem:[%s9471_s1 + $0x30] sm:$0xff] }
  0x1f   :  { %v6321_v40 = vadd.f32 %v350_v55, %v166_v0  ;;  %v6323_v27 = vadd.f32 %v351_v56, %v167_v2  ;;  %v6325_v1 = vadd.f32 %v352_v57, %v168_v3  ;;  %v6327_v41 = vadd.f32 %v353_v58, %v169_v5  ;;  %v6349_v0 = vld [vmem:[%s9471_s1 + $0x38] sm:$0xff]  ;;  %v6030_v2 = vld [vmem:[%s9470_s0 + $0x3] ss:$8 sm:$0x3] }
  0x20   :  { %v6329_v4 = vadd.f32 %v354_v59, %v170_v8  ;;  %v6331_v42 = vadd.f32 %v355_v60, %v171_v9  ;;  %v6333_v43 = vadd.f32 %v356_v61, %v172_v10  ;;  %v6335_v44 = vadd.f32 %v357_v62, %v173_v12 }
  0x21   :  { %v6337_v45 = vadd.f32 %v358_v63, %v174_v15  ;;  %v6339_v7 = vadd.f32 %v359_v20, %v175_v16  ;;  %v6354_v3 = vadd.f32 %v360_v25, %v176_v18  ;;  %v6356_v5 = vadd.f32 %v361_v28, %v177_v19 }
  0x22   :  { %v6358_v8 = vadd.f32 %v362_v31, %v178_v21  ;;  %v6360_v9 = vadd.f32 %v363_v32, %v179_v24  ;;  %v398_v10 = vmul.f32 %v6213_v22, %v391_v36  ;;  %v399_v12 = vmul.f32 %v6218_v23, %v395_v26 }
  0x23   :  { %v412_v15 = vrot.slane %v404_v35, %v6204_v17  ;;  %v419_v16 = vrot.slane %v405_v39, %v6204_v17  ;;  %v575_v18 = vrot.slane %v6030_v2, %v6194_v13  ;;  %v579_v19 = vrot.slane %v6030_v2, %v6197_v14 }
  0x24   :  { %v588_v21 = vcombine.low %v6344_v11, %v6349_v0  ;;  %v589_v24 = vcombine.high %v6344_v11, %v6349_v0  ;;  %v6379_v36 = vadd.f32 %v364_v33, %v6278_v29  ;;  %v6382_v35 = vadd.f32 %v365_v34, %v6281_v30 }
  0x25   :  { %v420_v26 = vcombine.high %v412_v15, %v412_v15  ;;  %v421_v46 = vcombine.high %v419_v16, %v419_v16  ;;  %v6385_v39 = vadd.f32 %v398_v10, %v6232_v37  ;;  %v6388_v47 = vadd.f32 %v399_v12, %v6234_v38 }
  0x26   :  { %v428_v48 = vrot.slane %v412_v15, %v6204_v17  ;;  %v435_v49 = vrot.slane %v419_v16, %v6204_v17  ;;  %v582_v51 = vmul.f32 %v6344_v11, %v575_v18  ;;  %v583_v30 = vmul.f32 %v6349_v0, %v579_v19 }
  0x27   :  { %v442_v50 = vrot.slane %v420_v26, %v6204_v17  ;;  %v449_v29 = vrot.slane %v421_v46, %v6204_v17  ;;  %v596_v37 = vrot.slane %v588_v21, %v6204_v17  ;;  %v603_v54 = vrot.slane %v589_v24, %v6204_v17 }
  0x28   :  { %v450_v52 = vcombine.high %v428_v48, %v428_v48  ;;  %v451_v53 = vcombine.high %v435_v49, %v435_v49  ;;  %v457_v56 = vrot.slane %v428_v48, %v6194_v13  ;;  %v461_v57 = vrot.slane %v428_v48, %v6197_v14 }
  0x29   :  { %v452_v38 = vcombine.high %v442_v50, %v442_v50  ;;  %v453_v55 = vcombine.high %v449_v29, %v449_v29  ;;  %v465_v58 = vrot.slane %v442_v50, %v6194_v13  ;;  %v469_v59 = vrot.slane %v442_v50, %v6197_v14 }
  0x2a   :  { %v473_v60 = vrot.slane %v450_v52, %v6194_v13  ;;  %v477_v61 = vrot.slane %v450_v52, %v6197_v14  ;;  %v489_v20 = vrot.slane %v435_v49, %v6194_v13  ;;  %v493_v25 = vrot.slane %v435_v49, %v6197_v14 }
  0x2b   :  { %v481_v62 = vrot.slane %v452_v38, %v6194_v13  ;;  %v485_v63 = vrot.slane %v452_v38, %v6197_v14  ;;  %v497_v28 = vrot.slane %v449_v29, %v6194_v13  ;;  %v501_v31 = vrot.slane %v449_v29, %v6197_v14 }
  0x2c   :  { %v505_v32 = vrot.slane %v451_v53, %v6194_v13  ;;  %v509_v33 = vrot.slane %v451_v53, %v6197_v14  ;;  %v513_v34 = vrot.slane %v453_v55, %v6194_v13  ;;  %v517_v2 = vrot.slane %v453_v55, %v6197_v14 }
  0x2d   :  { %v534_v10 = vmul.f32 %v6213_v22, %v457_v56  ;;  %v535_v12 = vmul.f32 %v6218_v23, %v461_v57  ;;  %v536_v15 = vmul.f32 %v6213_v22, %v465_v58  ;;  %v537_v16 = vmul.f32 %v6218_v23, %v469_v59 }
  0x2e   :  { %v538_v18 = vmul.f32 %v6213_v22, %v473_v60  ;;  %v539_v19 = vmul.f32 %v6218_v23, %v477_v61  ;;  %v540_v21 = vmul.f32 %v6213_v22, %v481_v62  ;;  %v541_v24 = vmul.f32 %v6218_v23, %v485_v63 }
  0x2f   :  { %v542_v26 = vmul.f32 %v6213_v22, %v489_v20  ;;  %v543_v46 = vmul.f32 %v6218_v23, %v493_v25  ;;  %v544_v48 = vmul.f32 %v6213_v22, %v497_v28  ;;  %v545_v49 = vmul.f32 %v6218_v23, %v501_v31 }
  0x30   :  { %v546_v50 = vmul.f32 %v6213_v22, %v505_v32  ;;  %v547_v29 = vmul.f32 %v6218_v23, %v509_v33  ;;  %v548_v52 = vmul.f32 %v6213_v22, %v513_v34  ;;  %v549_v53 = vmul.f32 %v6218_v23, %v517_v2 }
  0x31   :  { %v6431_v38 = vadd.f32 %v534_v10, %v6321_v40  ;;  %v6434_v55 = vadd.f32 %v535_v12, %v6323_v27  ;;  %v6437_v56 = vadd.f32 %v536_v15, %v6325_v1  ;;  %v6440_v57 = vadd.f32 %v537_v16, %v6327_v41 }
  0x32   :  { %v6443_v58 = vadd.f32 %v538_v18, %v6329_v4  ;;  %v6446_v59 = vadd.f32 %v539_v19, %v6331_v42  ;;  %v6449_v22 = vadd.f32 %v540_v21, %v6333_v43  ;;  %v6452_v23 = vadd.f32 %v541_v24, %v6335_v44  ;;  %v6475_v43 = vld [vmem:[%s9470_s0 + $0x4] ss:$8 sm:$0x3] }
  0x33   :  { %v6455_v40 = vadd.f32 %v542_v26, %v6337_v45  ;;  %v6458_v27 = vadd.f32 %v543_v46, %v6339_v7  ;;  %v6461_v1 = vadd.f32 %v544_v48, %v6354_v3  ;;  %v6464_v41 = vadd.f32 %v545_v49, %v6356_v5  ;;  %v6486_v5 = vld [vmem:[%s9471_s1 + $0x40] sm:$0xff] }
  0x34   :  { %v6467_v4 = vadd.f32 %v546_v50, %v6358_v8  ;;  %v6470_v42 = vadd.f32 %v547_v29, %v6360_v9  ;;  %v6478_v44 = vadd.f32 %v548_v52, %v6379_v36  ;;  %v6481_v45 = vadd.f32 %v549_v53, %v6382_v35  ;;  %v6491_v8 = vld [vmem:[%s9471_s1 + $0x48] sm:$0xff] }
  0x35   :  { %v604_v7 = vcombine.high %v596_v37, %v596_v37  ;;  %v605_v3 = vcombine.high %v603_v54, %v603_v54  ;;  %v6494_v9 = vadd.f32 %v582_v51, %v6385_v39  ;;  %v6497_v36 = vadd.f32 %v583_v30, %v6388_v47 }
  0x36   :  { %v612_v35 = vrot.slane %v596_v37, %v6204_v17  ;;  %v619_v60 = vrot.slane %v603_v54, %v6204_v17  ;;  %v759_v63 = vrot.slane %v6475_v43, %v6194_v13  ;;  %v763_v20 = vrot.slane %v6475_v43, %v6197_v14 }
  0x37   :  { %v626_v61 = vrot.slane %v604_v7, %v6204_v17  ;;  %v633_v62 = vrot.slane %v605_v3, %v6204_v17  ;;  %v772_v47 = vcombine.low %v6486_v5, %v6491_v8  ;;  %v773_v51 = vcombine.high %v6486_v5, %v6491_v8 }
  0x38   :  { %v634_v25 = vcombine.high %v612_v35, %v612_v35  ;;  %v635_v39 = vcombine.high %v619_v60, %v619_v60  ;;  %v641_v54 = vrot.slane %v612_v35, %v6194_v13  ;;  %v645_v28 = vrot.slane %v612_v35, %v6197_v14 }
  0x39   :  { %v636_v30 = vcombine.high %v626_v61, %v626_v61  ;;  %v637_v37 = vcombine.high %v633_v62, %v633_v62  ;;  %v649_v31 = vrot.slane %v626_v61, %v6194_v13  ;;  %v653_v32 = vrot.slane %v626_v61, %v6197_v14 }
  0x3a   :  { %v657_v33 = vrot.slane %v634_v25, %v6194_v13  ;;  %v661_v34 = vrot.slane %v634_v25, %v6197_v14  ;;  %v673_v12 = vrot.slane %v619_v60, %v6194_v13  ;;  %v677_v15 = vrot.slane %v619_v60, %v6197_v14 }
  0x3b   :  { %v665_v2 = vrot.slane %v636_v30, %v6194_v13  ;;  %v669_v10 = vrot.slane %v636_v30, %v6197_v14  ;;  %v681_v16 = vrot.slane %v633_v62, %v6194_v13  ;;  %v685_v18 = vrot.slane %v633_v62, %v6197_v14 }
  0x3c   :  { %v689_v19 = vrot.slane %v635_v39, %v6194_v13  ;;  %v693_v21 = vrot.slane %v635_v39, %v6197_v14  ;;  %v697_v24 = vrot.slane %v637_v37, %v6194_v13  ;;  %v701_v26 = vrot.slane %v637_v37, %v6197_v14 }
  0x3d   :  { %v718_v46 = vmul.f32 %v6344_v11, %v641_v54  ;;  %v719_v48 = vmul.f32 %v6349_v0, %v645_v28  ;;  %v720_v49 = vmul.f32 %v6344_v11, %v649_v31  ;;  %v721_v50 = vmul.f32 %v6349_v0, %v653_v32 }
  0x3e   :  { %v722_v29 = vmul.f32 %v6344_v11, %v657_v33  ;;  %v723_v52 = vmul.f32 %v6349_v0, %v661_v34  ;;  %v724_v53 = vmul.f32 %v6344_v11, %v665_v2  ;;  %v725_v43 = vmul.f32 %v6349_v0, %v669_v10 }
  0x3f   :  { %v726_v7 = vmul.f32 %v6344_v11, %v673_v12  ;;  %v727_v3 = vmul.f32 %v6349_v0, %v677_v15  ;;  %v728_v35 = vmul.f32 %v6344_v11, %v681_v16  ;;  %v729_v60 = vmul.f32 %v6349_v0, %v685_v18 }
  0x40   :  { %v730_v61 = vmul.f32 %v6344_v11, %v689_v19  ;;  %v731_v62 = vmul.f32 %v6349_v0, %v693_v21  ;;  %v732_v25 = vmul.f32 %v6344_v11, %v697_v24  ;;  %v733_v39 = vmul.f32 %v6349_v0, %v701_v26 }
  0x41   :  { %v6544_v30 = vadd.f32 %v718_v46, %v6431_v38  ;;  %v6547_v37 = vadd.f32 %v719_v48, %v6434_v55  ;;  %v6550_v54 = vadd.f32 %v720_v49, %v6437_v56  ;;  %v6553_v28 = vadd.f32 %v721_v50, %v6440_v57  ;;  %v6576_v56 = vld [vmem:[%s9471_s1 + $0x50] sm:$0xff]  ;;  %v6581_v57 = vld [vmem:[%s9471_s1 + $0x58] sm:$0xff] }
  0x42   :  { %v6556_v31 = vadd.f32 %v722_v29, %v6443_v58  ;;  %v6559_v32 = vadd.f32 %v723_v52, %v6446_v59  ;;  %v6562_v11 = vadd.f32 %v724_v53, %v6449_v22  ;;  %v6565_v0 = vadd.f32 %v725_v43, %v6452_v23  ;;  %v6036_v58 = vld [vmem:[%s9470_s0 + $0x5] ss:$8 sm:$0x3] }
  0x43   :  { %v6568_v38 = vadd.f32 %v726_v7, %v6455_v40  ;;  %v6571_v55 = vadd.f32 %v727_v3, %v6458_v27  ;;  %v6587_v59 = vadd.f32 %v728_v35, %v6461_v1  ;;  %v6590_v22 = vadd.f32 %v729_v60, %v6464_v41 }
  0x44   :  { %v6593_v23 = vadd.f32 %v730_v61, %v6467_v4  ;;  %v6596_v40 = vadd.f32 %v731_v62, %v6470_v42  ;;  %v766_v27 = vmul.f32 %v6486_v5, %v759_v63  ;;  %v767_v33 = vmul.f32 %v6491_v8, %v763_v20 }
  0x45   :  { %v780_v34 = vrot.slane %v772_v47, %v6204_v17  ;;  %v787_v2 = vrot.slane %v773_v51, %v6204_v17  ;;  %v943_v1 = vrot.slane %v6036_v58, %v6194_v13  ;;  %v947_v10 = vrot.slane %v6036_v58, %v6197_v14 }
  0x46   :  { %v956_v41 = vcombine.low %v6576_v56, %v6581_v57  ;;  %v957_v4 = vcombine.high %v6576_v56, %v6581_v57  ;;  %v6609_v42 = vadd.f32 %v732_v25, %v6478_v44  ;;  %v6612_v63 = vadd.f32 %v733_v39, %v6481_v45 }
  0x47   :  { %v788_v20 = vcombine.high %v780_v34, %v780_v34  ;;  %v789_v47 = vcombine.high %v787_v2, %v787_v2  ;;  %v6615_v51 = vadd.f32 %v766_v27, %v6494_v9  ;;  %v6618_v12 = vadd.f32 %v767_v33, %v6497_v36 }
  0x48   :  { %v796_v15 = vrot.slane %v780_v34, %v6204_v17  ;;  %v803_v16 = vrot.slane %v787_v2, %v6204_v17  ;;  %v950_v19 = vmul.f32 %v6576_v56, %v943_v1  ;;  %v951_v45 = vmul.f32 %v6581_v57, %v947_v10 }
  0x49   :  { %v810_v18 = vrot.slane %v788_v20, %v6204_v17  ;;  %v817_v44 = vrot.slane %v789_v47, %v6204_v17  ;;  %v964_v9 = vrot.slane %v956_v41, %v6204_v17  ;;  %v971_v26 = vrot.slane %v957_v4, %v6204_v17 }
  0x4a   :  { %v818_v21 = vcombine.high %v796_v15, %v796_v15  ;;  %v819_v24 = vcombine.high %v803_v16, %v803_v16  ;;  %v825_v48 = vrot.slane %v796_v15, %v6194_v13  ;;  %v829_v49 = vrot.slane %v796_v15, %v6197_v14 }
  0x4b   :  { %v820_v36 = vcombine.high %v810_v18, %v810_v18  ;;  %v821_v46 = vcombine.high %v817_v44, %v817_v44  ;;  %v833_v50 = vrot.slane %v810_v18, %v6194_v13  ;;  %v837_v29 = vrot.slane %v810_v18, %v6197_v14 }
  0x4c   :  { %v841_v52 = vrot.slane %v818_v21, %v6194_v13  ;;  %v845_v53 = vrot.slane %v818_v21, %v6197_v14  ;;  %v857_v3 = vrot.slane %v803_v16, %v6194_v13  ;;  %v861_v35 = vrot.slane %v803_v16, %v6197_v14 }
  0x4d   :  { %v849_v43 = vrot.slane %v820_v36, %v6194_v13  ;;  %v853_v7 = vrot.slane %v820_v36, %v6197_v14  ;;  %v865_v60 = vrot.slane %v817_v44, %v6194_v13  ;;  %v869_v61 = vrot.slane %v817_v44, %v6197_v14 }
  0x4e   :  { %v873_v62 = vrot.slane %v819_v24, %v6194_v13  ;;  %v877_v25 = vrot.slane %v819_v24, %v6197_v14  ;;  %v881_v39 = vrot.slane %v821_v46, %v6194_v13  ;;  %v885_v58 = vrot.slane %v821_v46, %v6197_v14 }
  0x4f   :  { %v902_v27 = vmul.f32 %v6486_v5, %v825_v48  ;;  %v903_v33 = vmul.f32 %v6491_v8, %v829_v49  ;;  %v904_v34 = vmul.f32 %v6486_v5, %v833_v50  ;;  %v905_v2 = vmul.f32 %v6491_v8, %v837_v29 }
  0x50   :  { %v906_v1 = vmul.f32 %v6486_v5, %v841_v52  ;;  %v907_v10 = vmul.f32 %v6491_v8, %v845_v53  ;;  %v908_v41 = vmul.f32 %v6486_v5, %v849_v43  ;;  %v909_v4 = vmul.f32 %v6491_v8, %v853_v7 }
  0x51   :  { %v910_v20 = vmul.f32 %v6486_v5, %v857_v3  ;;  %v911_v47 = vmul.f32 %v6491_v8, %v861_v35  ;;  %v912_v15 = vmul.f32 %v6486_v5, %v865_v60  ;;  %v913_v16 = vmul.f32 %v6491_v8, %v869_v61 }
  0x52   :  { %v914_v18 = vmul.f32 %v6486_v5, %v873_v62  ;;  %v915_v44 = vmul.f32 %v6491_v8, %v877_v25  ;;  %v916_v21 = vmul.f32 %v6486_v5, %v881_v39  ;;  %v917_v24 = vmul.f32 %v6491_v8, %v885_v58 }
  0x53   :  { %v6661_v36 = vadd.f32 %v902_v27, %v6544_v30  ;;  %v6664_v46 = vadd.f32 %v903_v33, %v6547_v37  ;;  %v6667_v48 = vadd.f32 %v904_v34, %v6550_v54  ;;  %v6670_v49 = vadd.f32 %v905_v2, %v6553_v28 }
  0x54   :  { %v6673_v50 = vadd.f32 %v906_v1, %v6556_v31  ;;  %v6676_v29 = vadd.f32 %v907_v10, %v6559_v32  ;;  %v6679_v5 = vadd.f32 %v908_v41, %v6562_v11  ;;  %v6682_v8 = vadd.f32 %v909_v4, %v6565_v0  ;;  %v6705_v11 = vld [vmem:[%s9470_s0 + $0x6] ss:$8 sm:$0x3] }
  0x55   :  { %v6685_v30 = vadd.f32 %v910_v20, %v6568_v38  ;;  %v6688_v37 = vadd.f32 %v911_v47, %v6571_v55  ;;  %v6691_v54 = vadd.f32 %v912_v15, %v6587_v59  ;;  %v6694_v28 = vadd.f32 %v913_v16, %v6590_v22  ;;  %v6716_v22 = vld [vmem:[%s9471_s1 + $0x60] sm:$0xff] }
  0x56   :  { %v6697_v31 = vadd.f32 %v914_v18, %v6593_v23  ;;  %v6700_v32 = vadd.f32 %v915_v44, %v6596_v40  ;;  %v6708_v0 = vadd.f32 %v916_v21, %v6609_v42  ;;  %v6711_v38 = vadd.f32 %v917_v24, %v6612_v63  ;;  %v6721_v23 = vld [vmem:[%s9471_s1 + $0x68] sm:$0xff] }
  0x57   :  { %v972_v55 = vcombine.high %v964_v9, %v964_v9  ;;  %v973_v59 = vcombine.high %v971_v26, %v971_v26  ;;  %v6724_v40 = vadd.f32 %v950_v19, %v6615_v51  ;;  %v6727_v42 = vadd.f32 %v951_v45, %v6618_v12 }
  0x58   :  { %v980_v63 = vrot.slane %v964_v9, %v6204_v17  ;;  %v987_v52 = vrot.slane %v971_v26, %v6204_v17  ;;  %v1127_v7 = vrot.slane %v6705_v11, %v6194_v13  ;;  %v1131_v3 = vrot.slane %v6705_v11, %v6197_v14 }
  0x59   :  { %v994_v53 = vrot.slane %v972_v55, %v6204_v17  ;;  %v1001_v43 = vrot.slane %v973_v59, %v6204_v17  ;;  %v1140_v12 = vcombine.low %v6716_v22, %v6721_v23  ;;  %v1141_v19 = vcombine.high %v6716_v22, %v6721_v23 }
  0x5a   :  { %v1002_v35 = vcombine.high %v980_v63, %v980_v63  ;;  %v1003_v51 = vcombine.high %v987_v52, %v987_v52  ;;  %v1009_v26 = vrot.slane %v980_v63, %v6194_v13  ;;  %v1013_v60 = vrot.slane %v980_v63, %v6197_v14 }
  0x5b   :  { %v1004_v45 = vcombine.high %v994_v53, %v994_v53  ;;  %v1005_v9 = vcombine.high %v1001_v43, %v1001_v43  ;;  %v1017_v61 = vrot.slane %v994_v53, %v6194_v13  ;;  %v1021_v62 = vrot.slane %v994_v53, %v6197_v14 }
  0x5c   :  { %v1025_v25 = vrot.slane %v1002_v35, %v6194_v13  ;;  %v1029_v39 = vrot.slane %v1002_v35, %v6197_v14  ;;  %v1041_v33 = vrot.slane %v987_v52, %v6194_v13  ;;  %v1045_v34 = vrot.slane %v987_v52, %v6197_v14 }
  0x5d   :  { %v1033_v58 = vrot.slane %v1004_v45, %v6194_v13  ;;  %v1037_v27 = vrot.slane %v1004_v45, %v6197_v14  ;;  %v1049_v2 = vrot.slane %v1001_v43, %v6194_v13  ;;  %v1053_v1 = vrot.slane %v1001_v43, %v6197_v14 }
  0x5e   :  { %v1057_v10 = vrot.slane %v1003_v51, %v6194_v13  ;;  %v1061_v41 = vrot.slane %v1003_v51, %v6197_v14  ;;  %v1065_v4 = vrot.slane %v1005_v9, %v6194_v13  ;;  %v1069_v20 = vrot.slane %v1005_v9, %v6197_v14 }
  0x5f   :  { %v1086_v47 = vmul.f32 %v6576_v56, %v1009_v26  ;;  %v1087_v15 = vmul.f32 %v6581_v57, %v1013_v60  ;;  %v1088_v16 = vmul.f32 %v6576_v56, %v1017_v61  ;;  %v1089_v18 = vmul.f32 %v6581_v57, %v1021_v62 }
  0x60   :  { %v1090_v44 = vmul.f32 %v6576_v56, %v1025_v25  ;;  %v1091_v21 = vmul.f32 %v6581_v57, %v1029_v39  ;;  %v1092_v24 = vmul.f32 %v6576_v56, %v1033_v58  ;;  %v1093_v11 = vmul.f32 %v6581_v57, %v1037_v27 }
  0x61   :  { %v1094_v55 = vmul.f32 %v6576_v56, %v1041_v33  ;;  %v1095_v59 = vmul.f32 %v6581_v57, %v1045_v34  ;;  %v1096_v63 = vmul.f32 %v6576_v56, %v1049_v2  ;;  %v1097_v52 = vmul.f32 %v6581_v57, %v1053_v1 }
  0x62   :  { %v1098_v53 = vmul.f32 %v6576_v56, %v1057_v10  ;;  %v1099_v43 = vmul.f32 %v6581_v57, %v1061_v41  ;;  %v1100_v35 = vmul.f32 %v6576_v56, %v1065_v4  ;;  %v1101_v51 = vmul.f32 %v6581_v57, %v1069_v20 }
  0x63   :  { %v6774_v45 = vadd.f32 %v1086_v47, %v6661_v36  ;;  %v6777_v9 = vadd.f32 %v1087_v15, %v6664_v46  ;;  %v6780_v26 = vadd.f32 %v1088_v16, %v6667_v48  ;;  %v6783_v60 = vadd.f32 %v1089_v18, %v6670_v49  ;;  %v6806_v48 = vld [vmem:[%s9471_s1 + $0x70] sm:$0xff]  ;;  %v6811_v49 = vld [vmem:[%s9471_s1 + $0x78] sm:$0xff] }
  0x64   :  { %v6786_v61 = vadd.f32 %v1090_v44, %v6673_v50  ;;  %v6789_v62 = vadd.f32 %v1091_v21, %v6676_v29  ;;  %v6792_v56 = vadd.f32 %v1092_v24, %v6679_v5  ;;  %v6795_v57 = vadd.f32 %v1093_v11, %v6682_v8  ;;  %v6042_v50 = vld [vmem:[%s9470_s0 + $0x7] ss:$8 sm:$0x3] }
  0x65   :  { %v6798_v36 = vadd.f32 %v1094_v55, %v6685_v30  ;;  %v6801_v46 = vadd.f32 %v1095_v59, %v6688_v37  ;;  %v6817_v29 = vadd.f32 %v1096_v63, %v6691_v54  ;;  %v6820_v5 = vadd.f32 %v1097_v52, %v6694_v28 }
  0x66   :  { %v6823_v8 = vadd.f32 %v1098_v53, %v6697_v31  ;;  %v6826_v30 = vadd.f32 %v1099_v43, %v6700_v32  ;;  %v1134_v37 = vmul.f32 %v6716_v22, %v1127_v7  ;;  %v1135_v25 = vmul.f32 %v6721_v23, %v1131_v3 }
  0x67   :  { %v1148_v39 = vrot.slane %v1140_v12, %v6204_v17  ;;  %v1155_v58 = vrot.slane %v1141_v19, %v6204_v17  ;;  %v1311_v54 = vrot.slane %v6042_v50, %v6194_v13  ;;  %v1315_v27 = vrot.slane %v6042_v50, %v6197_v14 }
  0x68   :  { %v1324_v28 = vcombine.low %v6806_v48, %v6811_v49  ;;  %v1325_v31 = vcombine.high %v6806_v48, %v6811_v49  ;;  %v6839_v32 = vadd.f32 %v1100_v35, %v6708_v0  ;;  %v6842_v7 = vadd.f32 %v1101_v51, %v6711_v38 }
  0x69   :  { %v1156_v3 = vcombine.high %v1148_v39, %v1148_v39  ;;  %v1157_v12 = vcombine.high %v1155_v58, %v1155_v58  ;;  %v6845_v19 = vadd.f32 %v1134_v37, %v6724_v40  ;;  %v6848_v33 = vadd.f32 %v1135_v25, %v6727_v42 }
  0x6a   :  { %v1164_v34 = vrot.slane %v1148_v39, %v6204_v17  ;;  %v1171_v2 = vrot.slane %v1155_v58, %v6204_v17  ;;  %v1318_v10 = vmul.f32 %v6806_v48, %v1311_v54  ;;  %v1319_v38 = vmul.f32 %v6811_v49, %v1315_v27 }
  0x6b   :  { %v1178_v1 = vrot.slane %v1156_v3, %v6204_v17  ;;  %v1185_v0 = vrot.slane %v1157_v12, %v6204_v17  ;;  %v1332_v40 = vrot.slane %v1324_v28, %v6204_v17  ;;  %v1339_v20 = vrot.slane %v1325_v31, %v6204_v17 }
  0x6c   :  { %v1186_v41 = vcombine.high %v1164_v34, %v1164_v34  ;;  %v1187_v4 = vcombine.high %v1171_v2, %v1171_v2  ;;  %v1193_v15 = vrot.slane %v1164_v34, %v6194_v13  ;;  %v1197_v16 = vrot.slane %v1164_v34, %v6197_v14 }
  0x6d   :  { %v1188_v42 = vcombine.high %v1178_v1, %v1178_v1  ;;  %v1189_v47 = vcombine.high %v1185_v0, %v1185_v0  ;;  %v1201_v18 = vrot.slane %v1178_v1, %v6194_v13  ;;  %v1205_v44 = vrot.slane %v1178_v1, %v6197_v14 }
  0x6e   :  { %v1209_v21 = vrot.slane %v1186_v41, %v6194_v13  ;;  %v1213_v24 = vrot.slane %v1186_v41, %v6197_v14  ;;  %v1225_v59 = vrot.slane %v1171_v2, %v6194_v13  ;;  %v1229_v63 = vrot.slane %v1171_v2, %v6197_v14 }
  0x6f   :  { %v1217_v11 = vrot.slane %v1188_v42, %v6194_v13  ;;  %v1221_v55 = vrot.slane %v1188_v42, %v6197_v14  ;;  %v1233_v52 = vrot.slane %v1185_v0, %v6194_v13  ;;  %v1237_v53 = vrot.slane %v1185_v0, %v6197_v14 }
  0x70   :  { %v1241_v43 = vrot.slane %v1187_v4, %v6194_v13  ;;  %v1245_v35 = vrot.slane %v1187_v4, %v6197_v14  ;;  %v1249_v51 = vrot.slane %v1189_v47, %v6194_v13  ;;  %v1253_v50 = vrot.slane %v1189_v47, %v6197_v14 }
  0x71   :  { %v1270_v37 = vmul.f32 %v6716_v22, %v1193_v15  ;;  %v1271_v25 = vmul.f32 %v6721_v23, %v1197_v16  ;;  %v1272_v39 = vmul.f32 %v6716_v22, %v1201_v18  ;;  %v1273_v58 = vmul.f32 %v6721_v23, %v1205_v44 }
  0x72   :  { %v1274_v54 = vmul.f32 %v6716_v22, %v1209_v21  ;;  %v1275_v27 = vmul.f32 %v6721_v23, %v1213_v24  ;;  %v1276_v28 = vmul.f32 %v6716_v22, %v1217_v11  ;;  %v1277_v31 = vmul.f32 %v6721_v23, %v1221_v55 }
  0x73   :  { %v1278_v3 = vmul.f32 %v6716_v22, %v1225_v59  ;;  %v1279_v12 = vmul.f32 %v6721_v23, %v1229_v63  ;;  %v1280_v34 = vmul.f32 %v6716_v22, %v1233_v52  ;;  %v1281_v2 = vmul.f32 %v6721_v23, %v1237_v53 }
  0x74   :  { %v1282_v1 = vmul.f32 %v6716_v22, %v1241_v43  ;;  %v1283_v0 = vmul.f32 %v6721_v23, %v1245_v35  ;;  %v1284_v41 = vmul.f32 %v6716_v22, %v1249_v51  ;;  %v1285_v4 = vmul.f32 %v6721_v23, %v1253_v50 }
  0x75   :  { %v6891_v42 = vadd.f32 %v1270_v37, %v6774_v45  ;;  %v6894_v47 = vadd.f32 %v1271_v25, %v6777_v9  ;;  %v6897_v15 = vadd.f32 %v1272_v39, %v6780_v26  ;;  %v6900_v16 = vadd.f32 %v1273_v58, %v6783_v60 }
  0x76   :  { %v6903_v18 = vadd.f32 %v1274_v54, %v6786_v61  ;;  %v6906_v44 = vadd.f32 %v1275_v27, %v6789_v62  ;;  %v6909_v22 = vadd.f32 %v1276_v28, %v6792_v56  ;;  %v6912_v23 = vadd.f32 %v1277_v31, %v6795_v57  ;;  %v6935_v56 = vld [vmem:[%s9470_s0 + $0x10] ss:$8 sm:$0x3] }
  0x77   :  { %v6915_v45 = vadd.f32 %v1278_v3, %v6798_v36  ;;  %v6918_v9 = vadd.f32 %v1279_v12, %v6801_v46  ;;  %v6921_v26 = vadd.f32 %v1280_v34, %v6817_v29  ;;  %v6924_v60 = vadd.f32 %v1281_v2, %v6820_v5  ;;  %v6946_v5 = vld [vmem:[%s9471_s1 + $0x80] sm:$0xff] }
  0x78   :  { %v6927_v61 = vadd.f32 %v1282_v1, %v6823_v8  ;;  %v6930_v62 = vadd.f32 %v1283_v0, %v6826_v30  ;;  %v6938_v57 = vadd.f32 %v1284_v41, %v6839_v32  ;;  %v6941_v36 = vadd.f32 %v1285_v4, %v6842_v7  ;;  %v6951_v8 = vld [vmem:[%s9471_s1 + $0x88] sm:$0xff] }
  0x79   :  { %v1340_v46 = vcombine.high %v1332_v40, %v1332_v40  ;;  %v1341_v29 = vcombine.high %v1339_v20, %v1339_v20  ;;  %v6954_v30 = vadd.f32 %v1318_v10, %v6845_v19  ;;  %v6957_v32 = vadd.f32 %v1319_v38, %v6848_v33 }
  0x7a   :  { %v1348_v7 = vrot.slane %v1332_v40, %v6204_v17  ;;  %v1355_v21 = vrot.slane %v1339_v20, %v6204_v17  ;;  %v1495_v55 = vrot.slane %v6935_v56, %v6194_v13  ;;  %v1499_v59 = vrot.slane %v6935_v56, %v6197_v14 }
  0x7b   :  { %v1362_v24 = vrot.slane %v1340_v46, %v6204_v17  ;;  %v1369_v11 = vrot.slane %v1341_v29, %v6204_v17  ;;  %v1508_v33 = vcombine.low %v6946_v5, %v6951_v8  ;;  %v1509_v10 = vcombine.high %v6946_v5, %v6951_v8 }
  0x7c   :  { %v1370_v63 = vcombine.high %v1348_v7, %v1348_v7  ;;  %v1371_v19 = vcombine.high %v1355_v21, %v1355_v21  ;;  %v1377_v20 = vrot.slane %v1348_v7, %v6194_v13  ;;  %v1381_v52 = vrot.slane %v1348_v7, %v6197_v14 }
  0x7d   :  { %v1372_v38 = vcombine.high %v1362_v24, %v1362_v24  ;;  %v1373_v40 = vcombine.high %v1369_v11, %v1369_v11  ;;  %v1385_v53 = vrot.slane %v1362_v24, %v6194_v13  ;;  %v1389_v43 = vrot.slane %v1362_v24, %v6197_v14 }
  0x7e   :  { %v1393_v35 = vrot.slane %v1370_v63, %v6194_v13  ;;  %v1397_v51 = vrot.slane %v1370_v63, %v6197_v14  ;;  %v1409_v25 = vrot.slane %v1355_v21, %v6194_v13  ;;  %v1413_v39 = vrot.slane %v1355_v21, %v6197_v14 }
  0x7f   :  { %v1401_v50 = vrot.slane %v1372_v38, %v6194_v13  ;;  %v1405_v37 = vrot.slane %v1372_v38, %v6197_v14  ;;  %v1417_v58 = vrot.slane %v1369_v11, %v6194_v13  ;;  %v1421_v54 = vrot.slane %v1369_v11, %v6197_v14 }
  0x80   :  { %v1425_v27 = vrot.slane %v1371_v19, %v6194_v13  ;;  %v1429_v28 = vrot.slane %v1371_v19, %v6197_v14  ;;  %v1433_v31 = vrot.slane %v1373_v40, %v6194_v13  ;;  %v1437_v3 = vrot.slane %v1373_v40, %v6197_v14 }
  0x81   :  { %v1454_v12 = vmul.f32 %v6806_v48, %v1377_v20  ;;  %v1455_v34 = vmul.f32 %v6811_v49, %v1381_v52  ;;  %v1456_v2 = vmul.f32 %v6806_v48, %v1385_v53  ;;  %v1457_v1 = vmul.f32 %v6811_v49, %v1389_v43 }
  0x82   :  { %v1458_v0 = vmul.f32 %v6806_v48, %v1393_v35  ;;  %v1459_v41 = vmul.f32 %v6811_v49, %v1397_v51  ;;  %v1460_v4 = vmul.f32 %v6806_v48, %v1401_v50  ;;  %v1461_v56 = vmul.f32 %v6811_v49, %v1405_v37 }
  0x83   :  { %v1462_v46 = vmul.f32 %v6806_v48, %v1409_v25  ;;  %v1463_v29 = vmul.f32 %v6811_v49, %v1413_v39  ;;  %v1464_v7 = vmul.f32 %v6806_v48, %v1417_v58  ;;  %v1465_v21 = vmul.f32 %v6811_v49, %v1421_v54 }
  0x84   :  { %v1466_v24 = vmul.f32 %v6806_v48, %v1425_v27  ;;  %v1467_v11 = vmul.f32 %v6811_v49, %v1429_v28  ;;  %v1468_v63 = vmul.f32 %v6806_v48, %v1433_v31  ;;  %v1469_v19 = vmul.f32 %v6811_v49, %v1437_v3 }
  0x85   :  { %v7004_v38 = vadd.f32 %v1454_v12, %v6891_v42  ;;  %v7007_v40 = vadd.f32 %v1455_v34, %v6894_v47  ;;  %v7010_v20 = vadd.f32 %v1456_v2, %v6897_v15  ;;  %v7013_v52 = vadd.f32 %v1457_v1, %v6900_v16  ;;  %v7036_v15 = vld [vmem:[%s9471_s1 + $0x90] sm:$0xff]  ;;  %v7041_v16 = vld [vmem:[%s9471_s1 + $0x98] sm:$0xff] }
  0x86   :  { %v7016_v53 = vadd.f32 %v1458_v0, %v6903_v18  ;;  %v7019_v43 = vadd.f32 %v1459_v41, %v6906_v44  ;;  %v7022_v48 = vadd.f32 %v1460_v4, %v6909_v22  ;;  %v7025_v49 = vadd.f32 %v1461_v56, %v6912_v23  ;;  %v6048_v18 = vld [vmem:[%s9470_s0 + $0x11] ss:$8 sm:$0x3] }
  0x87   :  { %v7028_v42 = vadd.f32 %v1462_v46, %v6915_v45  ;;  %v7031_v47 = vadd.f32 %v1463_v29, %v6918_v9  ;;  %v7047_v44 = vadd.f32 %v1464_v7, %v6921_v26  ;;  %v7050_v22 = vadd.f32 %v1465_v21, %v6924_v60 }
  0x88   :  { %v7053_v23 = vadd.f32 %v1466_v24, %v6927_v61  ;;  %v7056_v45 = vadd.f32 %v1467_v11, %v6930_v62  ;;  %v1502_v9 = vmul.f32 %v6946_v5, %v1495_v55  ;;  %v1503_v35 = vmul.f32 %v6951_v8, %v1499_v59 }
  0x89   :  { %v1516_v51 = vrot.slane %v1508_v33, %v6204_v17  ;;  %v1523_v50 = vrot.slane %v1509_v10, %v6204_v17  ;;  %v1679_v26 = vrot.slane %v6048_v18, %v6194_v13  ;;  %v1683_v37 = vrot.slane %v6048_v18, %v6197_v14 }
  0x8a   :  { %v1692_v60 = vcombine.low %v7036_v15, %v7041_v16  ;;  %v1693_v61 = vcombine.high %v7036_v15, %v7041_v16  ;;  %v7069_v62 = vadd.f32 %v1468_v63, %v6938_v57  ;;  %v7072_v55 = vadd.f32 %v1469_v19, %v6941_v36 }
  0x8b   :  { %v1524_v59 = vcombine.high %v1516_v51, %v1516_v51  ;;  %v1525_v33 = vcombine.high %v1523_v50, %v1523_v50  ;;  %v7075_v10 = vadd.f32 %v1502_v9, %v6954_v30  ;;  %v7078_v25 = vadd.f32 %v1503_v35, %v6957_v32 }
  0x8c   :  { %v1532_v39 = vrot.slane %v1516_v51, %v6204_v17  ;;  %v1539_v58 = vrot.slane %v1523_v50, %v6204_v17  ;;  %v1686_v27 = vmul.f32 %v7036_v15, %v1679_v26  ;;  %v1687_v36 = vmul.f32 %v7041_v16, %v1683_v37 }
  0x8d   :  { %v1546_v54 = vrot.slane %v1524_v59, %v6204_v17  ;;  %v1553_v57 = vrot.slane %v1525_v33, %v6204_v17  ;;  %v1700_v30 = vrot.slane %v1692_v60, %v6204_v17  ;;  %v1707_v3 = vrot.slane %v1693_v61, %v6204_v17 }
  0x8e   :  { %v1554_v28 = vcombine.high %v1532_v39, %v1532_v39  ;;  %v1555_v31 = vcombine.high %v1539_v58, %v1539_v58  ;;  %v1561_v34 = vrot.slane %v1532_v39, %v6194_v13  ;;  %v1565_v2 = vrot.slane %v1532_v39, %v6197_v14 }
  0x8f   :  { %v1556_v32 = vcombine.high %v1546_v54, %v1546_v54  ;;  %v1557_v12 = vcombine.high %v1553_v57, %v1553_v57  ;;  %v1569_v1 = vrot.slane %v1546_v54, %v6194_v13  ;;  %v1573_v0 = vrot.slane %v1546_v54, %v6197_v14 }
  0x90   :  { %v1577_v41 = vrot.slane %v1554_v28, %v6194_v13  ;;  %v1581_v4 = vrot.slane %v1554_v28, %v6197_v14  ;;  %v1593_v29 = vrot.slane %v1539_v58, %v6194_v13  ;;  %v1597_v7 = vrot.slane %v1539_v58, %v6197_v14 }
  0x91   :  { %v1585_v56 = vrot.slane %v1556_v32, %v6194_v13  ;;  %v1589_v46 = vrot.slane %v1556_v32, %v6197_v14  ;;  %v1601_v21 = vrot.slane %v1553_v57, %v6194_v13  ;;  %v1605_v24 = vrot.slane %v1553_v57, %v6197_v14 }
  0x92   :  { %v1609_v11 = vrot.slane %v1555_v31, %v6194_v13  ;;  %v1613_v63 = vrot.slane %v1555_v31, %v6197_v14  ;;  %v1617_v19 = vrot.slane %v1557_v12, %v6194_v13  ;;  %v1621_v18 = vrot.slane %v1557_v12, %v6197_v14 }
  0x93   :  { %v1638_v9 = vmul.f32 %v6946_v5, %v1561_v34  ;;  %v1639_v35 = vmul.f32 %v6951_v8, %v1565_v2  ;;  %v1640_v51 = vmul.f32 %v6946_v5, %v1569_v1  ;;  %v1641_v50 = vmul.f32 %v6951_v8, %v1573_v0 }
  0x94   :  { %v1642_v26 = vmul.f32 %v6946_v5, %v1577_v41  ;;  %v1643_v37 = vmul.f32 %v6951_v8, %v1581_v4  ;;  %v1644_v60 = vmul.f32 %v6946_v5, %v1585_v56  ;;  %v1645_v61 = vmul.f32 %v6951_v8, %v1589_v46 }
  0x95   :  { %v1646_v59 = vmul.f32 %v6946_v5, %v1593_v29  ;;  %v1647_v33 = vmul.f32 %v6951_v8, %v1597_v7  ;;  %v1648_v39 = vmul.f32 %v6946_v5, %v1601_v21  ;;  %v1649_v58 = vmul.f32 %v6951_v8, %v1605_v24 }
  0x96   :  { %v1650_v54 = vmul.f32 %v6946_v5, %v1609_v11  ;;  %v1651_v57 = vmul.f32 %v6951_v8, %v1613_v63  ;;  %v1652_v28 = vmul.f32 %v6946_v5, %v1617_v19  ;;  %v1653_v31 = vmul.f32 %v6951_v8, %v1621_v18 }
  0x97   :  { %v7121_v32 = vadd.f32 %v1638_v9, %v7004_v38  ;;  %v7124_v12 = vadd.f32 %v1639_v35, %v7007_v40  ;;  %v7127_v34 = vadd.f32 %v1640_v51, %v7010_v20  ;;  %v7130_v2 = vadd.f32 %v1641_v50, %v7013_v52 }
  0x98   :  { %v7133_v1 = vadd.f32 %v1642_v26, %v7016_v53  ;;  %v7136_v0 = vadd.f32 %v1643_v37, %v7019_v43  ;;  %v7139_v5 = vadd.f32 %v1644_v60, %v7022_v48  ;;  %v7142_v8 = vadd.f32 %v1645_v61, %v7025_v49  ;;  %v7165_v48 = vld [vmem:[%s9470_s0 + $0x12] ss:$8 sm:$0x3] }
  0x99   :  { %v7145_v38 = vadd.f32 %v1646_v59, %v7028_v42  ;;  %v7148_v40 = vadd.f32 %v1647_v33, %v7031_v47  ;;  %v7151_v20 = vadd.f32 %v1648_v39, %v7047_v44  ;;  %v7154_v52 = vadd.f32 %v1649_v58, %v7050_v22  ;;  %v7176_v22 = vld [vmem:[%s9471_s1 + $0xa0] sm:$0xff] }
  0x9a   :  { %v7157_v53 = vadd.f32 %v1650_v54, %v7053_v23  ;;  %v7160_v43 = vadd.f32 %v1651_v57, %v7056_v45  ;;  %v7168_v49 = vadd.f32 %v1652_v28, %v7069_v62  ;;  %v7171_v42 = vadd.f32 %v1653_v31, %v7072_v55  ;;  %v7181_v23 = vld [vmem:[%s9471_s1 + $0xa8] sm:$0xff] }
  0x9b   :  { %v1708_v47 = vcombine.high %v1700_v30, %v1700_v30  ;;  %v1709_v44 = vcombine.high %v1707_v3, %v1707_v3  ;;  %v7184_v45 = vadd.f32 %v1686_v27, %v7075_v10  ;;  %v7187_v62 = vadd.f32 %v1687_v36, %v7078_v25 }
  0x9c   :  { %v1716_v55 = vrot.slane %v1700_v30, %v6204_v17  ;;  %v1723_v41 = vrot.slane %v1707_v3, %v6204_v17  ;;  %v1863_v46 = vrot.slane %v7165_v48, %v6194_v13  ;;  %v1867_v29 = vrot.slane %v7165_v48, %v6197_v14 }
  0x9d   :  { %v1730_v4 = vrot.slane %v1708_v47, %v6204_v17  ;;  %v1737_v56 = vrot.slane %v1709_v44, %v6204_v17  ;;  %v1876_v25 = vcombine.low %v7176_v22, %v7181_v23  ;;  %v1877_v27 = vcombine.high %v7176_v22, %v7181_v23 }
  0x9e   :  { %v1738_v7 = vcombine.high %v1716_v55, %v1716_v55  ;;  %v1739_v10 = vcombine.high %v1723_v41, %v1723_v41  ;;  %v1745_v3 = vrot.slane %v1716_v55, %v6194_v13  ;;  %v1749_v21 = vrot.slane %v1716_v55, %v6197_v14 }
  0x9f   :  { %v1740_v36 = vcombine.high %v1730_v4, %v1730_v4  ;;  %v1741_v30 = vcombine.high %v1737_v56, %v1737_v56  ;;  %v1753_v24 = vrot.slane %v1730_v4, %v6194_v13  ;;  %v1757_v11 = vrot.slane %v1730_v4, %v6197_v14 }
  0xa0   :  { %v1761_v63 = vrot.slane %v1738_v7, %v6194_v13  ;;  %v1765_v19 = vrot.slane %v1738_v7, %v6197_v14  ;;  %v1777_v35 = vrot.slane %v1723_v41, %v6194_v13  ;;  %v1781_v51 = vrot.slane %v1723_v41, %v6197_v14 }
  0xa1   :  { %v1769_v18 = vrot.slane %v1740_v36, %v6194_v13  ;;  %v1773_v9 = vrot.slane %v1740_v36, %v6197_v14  ;;  %v1785_v50 = vrot.slane %v1737_v56, %v6194_v13  ;;  %v1789_v26 = vrot.slane %v1737_v56, %v6197_v14 }
  0xa2   :  { %v1793_v37 = vrot.slane %v1739_v10, %v6194_v13  ;;  %v1797_v60 = vrot.slane %v1739_v10, %v6197_v14  ;;  %v1801_v61 = vrot.slane %v1741_v30, %v6194_v13  ;;  %v1805_v59 = vrot.slane %v1741_v30, %v6197_v14 }
  0xa3   :  { %v1822_v33 = vmul.f32 %v7036_v15, %v1745_v3  ;;  %v1823_v39 = vmul.f32 %v7041_v16, %v1749_v21  ;;  %v1824_v58 = vmul.f32 %v7036_v15, %v1753_v24  ;;  %v1825_v54 = vmul.f32 %v7041_v16, %v1757_v11 }
  0xa4   :  { %v1826_v57 = vmul.f32 %v7036_v15, %v1761_v63  ;;  %v1827_v28 = vmul.f32 %v7041_v16, %v1765_v19  ;;  %v1828_v31 = vmul.f32 %v7036_v15, %v1769_v18  ;;  %v1829_v48 = vmul.f32 %v7041_v16, %v1773_v9 }
  0xa5   :  { %v1830_v47 = vmul.f32 %v7036_v15, %v1777_v35  ;;  %v1831_v44 = vmul.f32 %v7041_v16, %v1781_v51  ;;  %v1832_v55 = vmul.f32 %v7036_v15, %v1785_v50  ;;  %v1833_v41 = vmul.f32 %v7041_v16, %v1789_v26 }
  0xa6   :  { %v1834_v4 = vmul.f32 %v7036_v15, %v1793_v37  ;;  %v1835_v56 = vmul.f32 %v7041_v16, %v1797_v60  ;;  %v1836_v7 = vmul.f32 %v7036_v15, %v1801_v61  ;;  %v1837_v10 = vmul.f32 %v7041_v16, %v1805_v59 }
  0xa7   :  { %v7234_v36 = vadd.f32 %v1822_v33, %v7121_v32  ;;  %v7237_v30 = vadd.f32 %v1823_v39, %v7124_v12  ;;  %v7240_v3 = vadd.f32 %v1824_v58, %v7127_v34  ;;  %v7243_v21 = vadd.f32 %v1825_v54, %v7130_v2  ;;  %v7266_v34 = vld [vmem:[%s9471_s1 + $0xb0] sm:$0xff]  ;;  %v7271_v2 = vld [vmem:[%s9471_s1 + $0xb8] sm:$0xff] }
  0xa8   :  { %v7246_v24 = vadd.f32 %v1826_v57, %v7133_v1  ;;  %v7249_v11 = vadd.f32 %v1827_v28, %v7136_v0  ;;  %v7252_v15 = vadd.f32 %v1828_v31, %v7139_v5  ;;  %v7255_v16 = vadd.f32 %v1829_v48, %v7142_v8  ;;  %v6054_v1 = vld [vmem:[%s9470_s0 + $0x13] ss:$8 sm:$0x3] }
  0xa9   :  { %v7258_v32 = vadd.f32 %v1830_v47, %v7145_v38  ;;  %v7261_v12 = vadd.f32 %v1831_v44, %v7148_v40  ;;  %v7277_v0 = vadd.f32 %v1832_v55, %v7151_v20  ;;  %v7280_v5 = vadd.f32 %v1833_v41, %v7154_v52 }
  0xaa   :  { %v7283_v8 = vadd.f32 %v1834_v4, %v7157_v53  ;;  %v7286_v38 = vadd.f32 %v1835_v56, %v7160_v43  ;;  %v1870_v40 = vmul.f32 %v7176_v22, %v1863_v46  ;;  %v1871_v63 = vmul.f32 %v7181_v23, %v1867_v29 }
  0xab   :  { %v1884_v19 = vrot.slane %v1876_v25, %v6204_v17  ;;  %v1891_v18 = vrot.slane %v1877_v27, %v6204_v17  ;;  %v2047_v20 = vrot.slane %v6054_v1, %v6194_v13  ;;  %v2051_v9 = vrot.slane %v6054_v1, %v6197_v14 }
  0xac   :  { %v2060_v52 = vcombine.low %v7266_v34, %v7271_v2  ;;  %v2061_v53 = vcombine.high %v7266_v34, %v7271_v2  ;;  %v7299_v43 = vadd.f32 %v1836_v7, %v7168_v49  ;;  %v7302_v46 = vadd.f32 %v1837_v10, %v7171_v42 }
  0xad   :  { %v1892_v29 = vcombine.high %v1884_v19, %v1884_v19  ;;  %v1893_v25 = vcombine.high %v1891_v18, %v1891_v18  ;;  %v7305_v27 = vadd.f32 %v1870_v40, %v7184_v45  ;;  %v7308_v35 = vadd.f32 %v1871_v63, %v7187_v62 }
  0xae   :  { %v1900_v51 = vrot.slane %v1884_v19, %v6204_v17  ;;  %v1907_v50 = vrot.slane %v1891_v18, %v6204_v17  ;;  %v2054_v37 = vmul.f32 %v7266_v34, %v2047_v20  ;;  %v2055_v42 = vmul.f32 %v7271_v2, %v2051_v9 }
  0xaf   :  { %v1914_v26 = vrot.slane %v1892_v29, %v6204_v17  ;;  %v1921_v49 = vrot.slane %v1893_v25, %v6204_v17  ;;  %v2068_v45 = vrot.slane %v2060_v52, %v6204_v17  ;;  %v2075_v59 = vrot.slane %v2061_v53, %v6204_v17 }
  0xb0   :  { %v1922_v60 = vcombine.high %v1900_v51, %v1900_v51  ;;  %v1923_v61 = vcombine.high %v1907_v50, %v1907_v50  ;;  %v1929_v39 = vrot.slane %v1900_v51, %v6194_v13  ;;  %v1933_v58 = vrot.slane %v1900_v51, %v6197_v14 }
  0xb1   :  { %v1924_v62 = vcombine.high %v1914_v26, %v1914_v26  ;;  %v1925_v33 = vcombine.high %v1921_v49, %v1921_v49  ;;  %v1937_v54 = vrot.slane %v1914_v26, %v6194_v13  ;;  %v1941_v57 = vrot.slane %v1914_v26, %v6197_v14 }
  0xb2   :  { %v1945_v28 = vrot.slane %v1922_v60, %v6194_v13  ;;  %v1949_v31 = vrot.slane %v1922_v60, %v6197_v14  ;;  %v1961_v44 = vrot.slane %v1907_v50, %v6194_v13  ;;  %v1965_v55 = vrot.slane %v1907_v50, %v6197_v14 }
  0xb3   :  { %v1953_v48 = vrot.slane %v1924_v62, %v6194_v13  ;;  %v1957_v47 = vrot.slane %v1924_v62, %v6197_v14  ;;  %v1969_v41 = vrot.slane %v1921_v49, %v6194_v13  ;;  %v1973_v4 = vrot.slane %v1921_v49, %v6197_v14 }
  0xb4   :  { %v1977_v56 = vrot.slane %v1923_v61, %v6194_v13  ;;  %v1981_v7 = vrot.slane %v1923_v61, %v6197_v14  ;;  %v1985_v10 = vrot.slane %v1925_v33, %v6194_v13  ;;  %v1989_v1 = vrot.slane %v1925_v33, %v6197_v14 }
  0xb5   :  { %v2006_v40 = vmul.f32 %v7176_v22, %v1929_v39  ;;  %v2007_v63 = vmul.f32 %v7181_v23, %v1933_v58  ;;  %v2008_v19 = vmul.f32 %v7176_v22, %v1937_v54  ;;  %v2009_v18 = vmul.f32 %v7181_v23, %v1941_v57 }
  0xb6   :  { %v2010_v20 = vmul.f32 %v7176_v22, %v1945_v28  ;;  %v2011_v9 = vmul.f32 %v7181_v23, %v1949_v31  ;;  %v2012_v52 = vmul.f32 %v7176_v22, %v1953_v48  ;;  %v2013_v53 = vmul.f32 %v7181_v23, %v1957_v47 }
  0xb7   :  { %v2014_v29 = vmul.f32 %v7176_v22, %v1961_v44  ;;  %v2015_v25 = vmul.f32 %v7181_v23, %v1965_v55  ;;  %v2016_v51 = vmul.f32 %v7176_v22, %v1969_v41  ;;  %v2017_v50 = vmul.f32 %v7181_v23, %v1973_v4 }
  0xb8   :  { %v2018_v26 = vmul.f32 %v7176_v22, %v1977_v56  ;;  %v2019_v49 = vmul.f32 %v7181_v23, %v1981_v7  ;;  %v2020_v60 = vmul.f32 %v7176_v22, %v1985_v10  ;;  %v2021_v61 = vmul.f32 %v7181_v23, %v1989_v1 }
  0xb9   :  { %v7351_v62 = vadd.f32 %v2006_v40, %v7234_v36  ;;  %v7354_v33 = vadd.f32 %v2007_v63, %v7237_v30  ;;  %v7357_v39 = vadd.f32 %v2008_v19, %v7240_v3  ;;  %v7360_v58 = vadd.f32 %v2009_v18, %v7243_v21 }
  0xba   :  { %v7363_v54 = vadd.f32 %v2010_v20, %v7246_v24  ;;  %v7366_v57 = vadd.f32 %v2011_v9, %v7249_v11  ;;  %v7369_v22 = vadd.f32 %v2012_v52, %v7252_v15  ;;  %v7372_v23 = vadd.f32 %v2013_v53, %v7255_v16  ;;  %v7395_v15 = vld [vmem:[%s9470_s0 + $0x14] ss:$8 sm:$0x3] }
  0xbb   :  { %v7375_v36 = vadd.f32 %v2014_v29, %v7258_v32  ;;  %v7378_v30 = vadd.f32 %v2015_v25, %v7261_v12  ;;  %v7381_v3 = vadd.f32 %v2016_v51, %v7277_v0  ;;  %v7384_v21 = vadd.f32 %v2017_v50, %v7280_v5  ;;  %v7406_v5 = vld [vmem:[%s9471_s1 + $0xc0] sm:$0xff] }
  0xbc   :  { %v7387_v24 = vadd.f32 %v2018_v26, %v7283_v8  ;;  %v7390_v11 = vadd.f32 %v2019_v49, %v7286_v38  ;;  %v7398_v16 = vadd.f32 %v2020_v60, %v7299_v43  ;;  %v7401_v32 = vadd.f32 %v2021_v61, %v7302_v46  ;;  %v7411_v8 = vld [vmem:[%s9471_s1 + $0xc8] sm:$0xff] }
  0xbd   :  { %v2076_v12 = vcombine.high %v2068_v45, %v2068_v45  ;;  %v2077_v0 = vcombine.high %v2075_v59, %v2075_v59  ;;  %v7414_v38 = vadd.f32 %v2054_v37, %v7305_v27  ;;  %v7417_v43 = vadd.f32 %v2055_v42, %v7308_v35 }
  0xbe   :  { %v2084_v46 = vrot.slane %v2068_v45, %v6204_v17  ;;  %v2091_v28 = vrot.slane %v2075_v59, %v6204_v17  ;;  %v2231_v47 = vrot.slane %v7395_v15, %v6194_v13  ;;  %v2235_v44 = vrot.slane %v7395_v15, %v6197_v14 }
  0xbf   :  { %v2098_v31 = vrot.slane %v2076_v12, %v6204_v17  ;;  %v2105_v48 = vrot.slane %v2077_v0, %v6204_v17  ;;  %v2244_v35 = vcombine.low %v7406_v5, %v7411_v8  ;;  %v2245_v37 = vcombine.high %v7406_v5, %v7411_v8 }
  0xc0   :  { %v2106_v55 = vcombine.high %v2084_v46, %v2084_v46  ;;  %v2107_v27 = vcombine.high %v2091_v28, %v2091_v28  ;;  %v2113_v59 = vrot.slane %v2084_v46, %v6194_v13  ;;  %v2117_v41 = vrot.slane %v2084_v46, %v6197_v14 }
  0xc1   :  { %v2108_v42 = vcombine.high %v2098_v31, %v2098_v31  ;;  %v2109_v45 = vcombine.high %v2105_v48, %v2105_v48  ;;  %v2121_v4 = vrot.slane %v2098_v31, %v6194_v13  ;;  %v2125_v56 = vrot.slane %v2098_v31, %v6197_v14 }
  0xc2   :  { %v2129_v7 = vrot.slane %v2106_v55, %v6194_v13  ;;  %v2133_v10 = vrot.slane %v2106_v55, %v6197_v14  ;;  %v2145_v63 = vrot.slane %v2091_v28, %v6194_v13  ;;  %v2149_v19 = vrot.slane %v2091_v28, %v6197_v14 }
  0xc3   :  { %v2137_v1 = vrot.slane %v2108_v42, %v6194_v13  ;;  %v2141_v40 = vrot.slane %v2108_v42, %v6197_v14  ;;  %v2153_v18 = vrot.slane %v2105_v48, %v6194_v13  ;;  %v2157_v20 = vrot.slane %v2105_v48, %v6197_v14 }
  0xc4   :  { %v2161_v9 = vrot.slane %v2107_v27, %v6194_v13  ;;  %v2165_v52 = vrot.slane %v2107_v27, %v6197_v14  ;;  %v2169_v53 = vrot.slane %v2109_v45, %v6194_v13  ;;  %v2173_v29 = vrot.slane %v2109_v45, %v6197_v14 }
  0xc5   :  { %v2190_v25 = vmul.f32 %v7266_v34, %v2113_v59  ;;  %v2191_v51 = vmul.f32 %v7271_v2, %v2117_v41  ;;  %v2192_v50 = vmul.f32 %v7266_v34, %v2121_v4  ;;  %v2193_v26 = vmul.f32 %v7271_v2, %v2125_v56 }
  0xc6   :  { %v2194_v49 = vmul.f32 %v7266_v34, %v2129_v7  ;;  %v2195_v60 = vmul.f32 %v7271_v2, %v2133_v10  ;;  %v2196_v61 = vmul.f32 %v7266_v34, %v2137_v1  ;;  %v2197_v15 = vmul.f32 %v7271_v2, %v2141_v40 }
  0xc7   :  { %v2198_v12 = vmul.f32 %v7266_v34, %v2145_v63  ;;  %v2199_v0 = vmul.f32 %v7271_v2, %v2149_v19  ;;  %v2200_v46 = vmul.f32 %v7266_v34, %v2153_v18  ;;  %v2201_v28 = vmul.f32 %v7271_v2, %v2157_v20 }
  0xc8   :  { %v2202_v31 = vmul.f32 %v7266_v34, %v2161_v9  ;;  %v2203_v48 = vmul.f32 %v7271_v2, %v2165_v52  ;;  %v2204_v55 = vmul.f32 %v7266_v34, %v2169_v53  ;;  %v2205_v27 = vmul.f32 %v7271_v2, %v2173_v29 }
  0xc9   :  { %v7464_v42 = vadd.f32 %v2190_v25, %v7351_v62  ;;  %v7467_v45 = vadd.f32 %v2191_v51, %v7354_v33  ;;  %v7470_v59 = vadd.f32 %v2192_v50, %v7357_v39  ;;  %v7473_v41 = vadd.f32 %v2193_v26, %v7360_v58  ;;  %v7496_v39 = vld [vmem:[%s9471_s1 + $0xd0] sm:$0xff]  ;;  %v7501_v58 = vld [vmem:[%s9471_s1 + $0xd8] sm:$0xff] }
  0xca   :  { %v7476_v4 = vadd.f32 %v2194_v49, %v7363_v54  ;;  %v7479_v56 = vadd.f32 %v2195_v60, %v7366_v57  ;;  %v7482_v34 = vadd.f32 %v2196_v61, %v7369_v22  ;;  %v7485_v2 = vadd.f32 %v2197_v15, %v7372_v23  ;;  %v6060_v54 = vld [vmem:[%s9470_s0 + $0x15] ss:$8 sm:$0x3] }
  0xcb   :  { %v7488_v62 = vadd.f32 %v2198_v12, %v7375_v36  ;;  %v7491_v33 = vadd.f32 %v2199_v0, %v7378_v30  ;;  %v7507_v57 = vadd.f32 %v2200_v46, %v7381_v3  ;;  %v7510_v22 = vadd.f32 %v2201_v28, %v7384_v21 }
  0xcc   :  { %v7513_v23 = vadd.f32 %v2202_v31, %v7387_v24  ;;  %v7516_v36 = vadd.f32 %v2203_v48, %v7390_v11  ;;  %v2238_v30 = vmul.f32 %v7406_v5, %v2231_v47  ;;  %v2239_v7 = vmul.f32 %v7411_v8, %v2235_v44 }
  0xcd   :  { %v2252_v10 = vrot.slane %v2244_v35, %v6204_v17  ;;  %v2259_v1 = vrot.slane %v2245_v37, %v6204_v17  ;;  %v2415_v3 = vrot.slane %v6060_v54, %v6194_v13  ;;  %v2419_v40 = vrot.slane %v6060_v54, %v6197_v14 }
  0xce   :  { %v2428_v21 = vcombine.low %v7496_v39, %v7501_v58  ;;  %v2429_v24 = vcombine.high %v7496_v39, %v7501_v58  ;;  %v7529_v11 = vadd.f32 %v2204_v55, %v7398_v16  ;;  %v7532_v47 = vadd.f32 %v2205_v27, %v7401_v32 }
  0xcf   :  { %v2260_v44 = vcombine.high %v2252_v10, %v2252_v10  ;;  %v2261_v35 = vcombine.high %v2259_v1, %v2259_v1  ;;  %v7535_v37 = vadd.f32 %v2238_v30, %v7414_v38  ;;  %v7538_v63 = vadd.f32 %v2239_v7, %v7417_v43 }
  0xd0   :  { %v2268_v19 = vrot.slane %v2252_v10, %v6204_v17  ;;  %v2275_v18 = vrot.slane %v2259_v1, %v6204_v17  ;;  %v2422_v9 = vmul.f32 %v7496_v39, %v2415_v3  ;;  %v2423_v32 = vmul.f32 %v7501_v58, %v2419_v40 }
  0xd1   :  { %v2282_v20 = vrot.slane %v2260_v44, %v6204_v17  ;;  %v2289_v16 = vrot.slane %v2261_v35, %v6204_v17  ;;  %v2436_v38 = vrot.slane %v2428_v21, %v6204_v17  ;;  %v2443_v29 = vrot.slane %v2429_v24, %v6204_v17 }
  0xd2   :  { %v2290_v52 = vcombine.high %v2268_v19, %v2268_v19  ;;  %v2291_v53 = vcombine.high %v2275_v18, %v2275_v18  ;;  %v2297_v51 = vrot.slane %v2268_v19, %v6194_v13  ;;  %v2301_v50 = vrot.slane %v2268_v19, %v6197_v14 }
  0xd3   :  { %v2292_v43 = vcombine.high %v2282_v20, %v2282_v20  ;;  %v2293_v25 = vcombine.high %v2289_v16, %v2289_v16  ;;  %v2305_v26 = vrot.slane %v2282_v20, %v6194_v13  ;;  %v2309_v49 = vrot.slane %v2282_v20, %v6197_v14 }
  0xd4   :  { %v2313_v60 = vrot.slane %v2290_v52, %v6194_v13  ;;  %v2317_v61 = vrot.slane %v2290_v52, %v6197_v14  ;;  %v2329_v0 = vrot.slane %v2275_v18, %v6194_v13  ;;  %v2333_v46 = vrot.slane %v2275_v18, %v6197_v14 }
  0xd5   :  { %v2321_v15 = vrot.slane %v2292_v43, %v6194_v13  ;;  %v2325_v12 = vrot.slane %v2292_v43, %v6197_v14  ;;  %v2337_v28 = vrot.slane %v2289_v16, %v6194_v13  ;;  %v2341_v31 = vrot.slane %v2289_v16, %v6197_v14 }
  0xd6   :  { %v2345_v48 = vrot.slane %v2291_v53, %v6194_v13  ;;  %v2349_v55 = vrot.slane %v2291_v53, %v6197_v14  ;;  %v2353_v27 = vrot.slane %v2293_v25, %v6194_v13  ;;  %v2357_v54 = vrot.slane %v2293_v25, %v6197_v14 }
  0xd7   :  { %v2374_v30 = vmul.f32 %v7406_v5, %v2297_v51  ;;  %v2375_v7 = vmul.f32 %v7411_v8, %v2301_v50  ;;  %v2376_v10 = vmul.f32 %v7406_v5, %v2305_v26  ;;  %v2377_v1 = vmul.f32 %v7411_v8, %v2309_v49 }
  0xd8   :  { %v2378_v3 = vmul.f32 %v7406_v5, %v2313_v60  ;;  %v2379_v40 = vmul.f32 %v7411_v8, %v2317_v61  ;;  %v2380_v21 = vmul.f32 %v7406_v5, %v2321_v15  ;;  %v2381_v24 = vmul.f32 %v7411_v8, %v2325_v12 }
  0xd9   :  { %v2382_v44 = vmul.f32 %v7406_v5, %v2329_v0  ;;  %v2383_v35 = vmul.f32 %v7411_v8, %v2333_v46  ;;  %v2384_v19 = vmul.f32 %v7406_v5, %v2337_v28  ;;  %v2385_v18 = vmul.f32 %v7411_v8, %v2341_v31 }
  0xda   :  { %v2386_v20 = vmul.f32 %v7406_v5, %v2345_v48  ;;  %v2387_v16 = vmul.f32 %v7411_v8, %v2349_v55  ;;  %v2388_v52 = vmul.f32 %v7406_v5, %v2353_v27  ;;  %v2389_v53 = vmul.f32 %v7411_v8, %v2357_v54 }
  0xdb   :  { %v7581_v43 = vadd.f32 %v2374_v30, %v7464_v42  ;;  %v7584_v25 = vadd.f32 %v2375_v7, %v7467_v45  ;;  %v7587_v51 = vadd.f32 %v2376_v10, %v7470_v59  ;;  %v7590_v50 = vadd.f32 %v2377_v1, %v7473_v41 }
  0xdc   :  { %v7593_v26 = vadd.f32 %v2378_v3, %v7476_v4  ;;  %v7596_v49 = vadd.f32 %v2379_v40, %v7479_v56  ;;  %v7599_v5 = vadd.f32 %v2380_v21, %v7482_v34  ;;  %v7602_v8 = vadd.f32 %v2381_v24, %v7485_v2  ;;  %v7625_v34 = vld [vmem:[%s9470_s0 + $0x16] ss:$8 sm:$0x3] }
  0xdd   :  { %v7605_v42 = vadd.f32 %v2382_v44, %v7488_v62  ;;  %v7608_v45 = vadd.f32 %v2383_v35, %v7491_v33  ;;  %v7611_v59 = vadd.f32 %v2384_v19, %v7507_v57  ;;  %v7614_v41 = vadd.f32 %v2385_v18, %v7510_v22  ;;  %v7636_v22 = vld [vmem:[%s9471_s1 + $0xe0] sm:$0xff] }
  0xde   :  { %v7617_v4 = vadd.f32 %v2386_v20, %v7513_v23  ;;  %v7620_v56 = vadd.f32 %v2387_v16, %v7516_v36  ;;  %v7628_v2 = vadd.f32 %v2388_v52, %v7529_v11  ;;  %v7631_v62 = vadd.f32 %v2389_v53, %v7532_v47  ;;  %v7641_v23 = vld [vmem:[%s9471_s1 + $0xe8] sm:$0xff] }
  0xdf   :  { %v2444_v33 = vcombine.high %v2436_v38, %v2436_v38  ;;  %v2445_v57 = vcombine.high %v2443_v29, %v2443_v29  ;;  %v7644_v36 = vadd.f32 %v2422_v9, %v7535_v37  ;;  %v7647_v11 = vadd.f32 %v2423_v32, %v7538_v63 }
  0xe0   :  { %v2452_v47 = vrot.slane %v2436_v38, %v6204_v17  ;;  %v2459_v60 = vrot.slane %v2443_v29, %v6204_v17  ;;  %v2599_v12 = vrot.slane %v7625_v34, %v6194_v13  ;;  %v2603_v0 = vrot.slane %v7625_v34, %v6197_v14 }
  0xe1   :  { %v2466_v61 = vrot.slane %v2444_v33, %v6204_v17  ;;  %v2473_v15 = vrot.slane %v2445_v57, %v6204_v17  ;;  %v2612_v63 = vcombine.low %v7636_v22, %v7641_v23  ;;  %v2613_v9 = vcombine.high %v7636_v22, %v7641_v23 }
  0xe2   :  { %v2474_v46 = vcombine.high %v2452_v47, %v2452_v47  ;;  %v2475_v37 = vcombine.high %v2459_v60, %v2459_v60  ;;  %v2481_v29 = vrot.slane %v2452_v47, %v6194_v13  ;;  %v2485_v28 = vrot.slane %v2452_v47, %v6197_v14 }
  0xe3   :  { %v2476_v32 = vcombine.high %v2466_v61, %v2466_v61  ;;  %v2477_v38 = vcombine.high %v2473_v15, %v2473_v15  ;;  %v2489_v31 = vrot.slane %v2466_v61, %v6194_v13  ;;  %v2493_v48 = vrot.slane %v2466_v61, %v6197_v14 }
  0xe4   :  { %v2497_v55 = vrot.slane %v2474_v46, %v6194_v13  ;;  %v2501_v27 = vrot.slane %v2474_v46, %v6197_v14  ;;  %v2513_v7 = vrot.slane %v2459_v60, %v6194_v13  ;;  %v2517_v10 = vrot.slane %v2459_v60, %v6197_v14 }
  0xe5   :  { %v2505_v54 = vrot.slane %v2476_v32, %v6194_v13  ;;  %v2509_v30 = vrot.slane %v2476_v32, %v6197_v14  ;;  %v2521_v1 = vrot.slane %v2473_v15, %v6194_v13  ;;  %v2525_v3 = vrot.slane %v2473_v15, %v6197_v14 }
  0xe6   :  { %v2529_v40 = vrot.slane %v2475_v37, %v6194_v13  ;;  %v2533_v21 = vrot.slane %v2475_v37, %v6197_v14  ;;  %v2537_v24 = vrot.slane %v2477_v38, %v6194_v13  ;;  %v2541_v44 = vrot.slane %v2477_v38, %v6197_v14 }
  0xe7   :  { %v2558_v35 = vmul.f32 %v7496_v39, %v2481_v29  ;;  %v2559_v19 = vmul.f32 %v7501_v58, %v2485_v28  ;;  %v2560_v18 = vmul.f32 %v7496_v39, %v2489_v31  ;;  %v2561_v20 = vmul.f32 %v7501_v58, %v2493_v48 }
  0xe8   :  { %v2562_v16 = vmul.f32 %v7496_v39, %v2497_v55  ;;  %v2563_v52 = vmul.f32 %v7501_v58, %v2501_v27  ;;  %v2564_v53 = vmul.f32 %v7496_v39, %v2505_v54  ;;  %v2565_v34 = vmul.f32 %v7501_v58, %v2509_v30 }
  0xe9   :  { %v2566_v33 = vmul.f32 %v7496_v39, %v2513_v7  ;;  %v2567_v57 = vmul.f32 %v7501_v58, %v2517_v10  ;;  %v2568_v47 = vmul.f32 %v7496_v39, %v2521_v1  ;;  %v2569_v60 = vmul.f32 %v7501_v58, %v2525_v3 }
  0xea   :  { %v2570_v61 = vmul.f32 %v7496_v39, %v2529_v40  ;;  %v2571_v15 = vmul.f32 %v7501_v58, %v2533_v21  ;;  %v2572_v46 = vmul.f32 %v7496_v39, %v2537_v24  ;;  %v2573_v37 = vmul.f32 %v7501_v58, %v2541_v44 }
  0xeb   :  { %v7694_v32 = vadd.f32 %v2558_v35, %v7581_v43  ;;  %v7697_v38 = vadd.f32 %v2559_v19, %v7584_v25  ;;  %v7700_v29 = vadd.f32 %v2560_v18, %v7587_v51  ;;  %v7703_v28 = vadd.f32 %v2561_v20, %v7590_v50  ;;  %v7726_v51 = vld [vmem:[%s9471_s1 + $0xf0] sm:$0xff]  ;;  %v7731_v50 = vld [vmem:[%s9471_s1 + $0xf8] sm:$0xff] }
  0xec   :  { %v7706_v31 = vadd.f32 %v2562_v16, %v7593_v26  ;;  %v7709_v48 = vadd.f32 %v2563_v52, %v7596_v49  ;;  %v7712_v39 = vadd.f32 %v2564_v53, %v7599_v5  ;;  %v7715_v58 = vadd.f32 %v2565_v34, %v7602_v8  ;;  %v6066_v26 = vld [vmem:[%s9470_s0 + $0x17] ss:$8 sm:$0x3] }
  0xed   :  { %v7718_v43 = vadd.f32 %v2566_v33, %v7605_v42  ;;  %v7721_v25 = vadd.f32 %v2567_v57, %v7608_v45  ;;  %v7737_v49 = vadd.f32 %v2568_v47, %v7611_v59  ;;  %v7740_v5 = vadd.f32 %v2569_v60, %v7614_v41 }
  0xee   :  { %v7743_v8 = vadd.f32 %v2570_v61, %v7617_v4  ;;  %v7746_v42 = vadd.f32 %v2571_v15, %v7620_v56  ;;  %v2606_v45 = vmul.f32 %v7636_v22, %v2599_v12  ;;  %v2607_v55 = vmul.f32 %v7641_v23, %v2603_v0 }
  0xef   :  { %v2620_v27 = vrot.slane %v2612_v63, %v6204_v17  ;;  %v2627_v54 = vrot.slane %v2613_v9, %v6204_v17  ;;  %v2783_v59 = vrot.slane %v6066_v26, %v6194_v13  ;;  %v2787_v30 = vrot.slane %v6066_v26, %v6197_v14 }
  0xf0   :  { %v2796_v41 = vcombine.low %v7726_v51, %v7731_v50  ;;  %v2797_v4 = vcombine.high %v7726_v51, %v7731_v50  ;;  %v7759_v56 = vadd.f32 %v2572_v46, %v7628_v2  ;;  %v7762_v12 = vadd.f32 %v2573_v37, %v7631_v62 }
  0xf1   :  { %v2628_v0 = vcombine.high %v2620_v27, %v2620_v27  ;;  %v2629_v63 = vcombine.high %v2627_v54, %v2627_v54  ;;  %v7765_v9 = vadd.f32 %v2606_v45, %v7644_v36  ;;  %v7768_v7 = vadd.f32 %v2607_v55, %v7647_v11 }
  0xf2   :  { %v2636_v10 = vrot.slane %v2620_v27, %v6204_v17  ;;  %v2643_v1 = vrot.slane %v2627_v54, %v6204_v17  ;;  %v2790_v40 = vmul.f32 %v7726_v51, %v2783_v59  ;;  %v2791_v62 = vmul.f32 %v7731_v50, %v2787_v30 }
  0xf3   :  { %v2650_v3 = vrot.slane %v2628_v0, %v6204_v17  ;;  %v2657_v2 = vrot.slane %v2629_v63, %v6204_v17  ;;  %v2804_v36 = vrot.slane %v2796_v41, %v6204_v17  ;;  %v2811_v44 = vrot.slane %v2797_v4, %v6204_v17 }
  0xf4   :  { %v2658_v21 = vcombine.high %v2636_v10, %v2636_v10  ;;  %v2659_v24 = vcombine.high %v2643_v1, %v2643_v1  ;;  %v2665_v19 = vrot.slane %v2636_v10, %v6194_v13  ;;  %v2669_v18 = vrot.slane %v2636_v10, %v6197_v14 }
  0xf5   :  { %v2660_v11 = vcombine.high %v2650_v3, %v2650_v3  ;;  %v2661_v35 = vcombine.high %v2657_v2, %v2657_v2  ;;  %v2673_v20 = vrot.slane %v2650_v3, %v6194_v13  ;;  %v2677_v16 = vrot.slane %v2650_v3, %v6197_v14 }
  0xf6   :  { %v2681_v52 = vrot.slane %v2658_v21, %v6194_v13  ;;  %v2685_v53 = vrot.slane %v2658_v21, %v6197_v14  ;;  %v2697_v57 = vrot.slane %v2643_v1, %v6194_v13  ;;  %v2701_v47 = vrot.slane %v2643_v1, %v6197_v14 }
  0xf7   :  { %v2689_v34 = vrot.slane %v2660_v11, %v6194_v13  ;;  %v2693_v33 = vrot.slane %v2660_v11, %v6197_v14  ;;  %v2705_v60 = vrot.slane %v2657_v2, %v6194_v13  ;;  %v2709_v61 = vrot.slane %v2657_v2, %v6197_v14 }
  0xf8   :  { %v2713_v15 = vrot.slane %v2659_v24, %v6194_v13  ;;  %v2717_v46 = vrot.slane %v2659_v24, %v6197_v14  ;;  %v2721_v37 = vrot.slane %v2661_v35, %v6194_v13  ;;  %v2725_v26 = vrot.slane %v2661_v35, %v6197_v14 }
  0xf9   :  { %v2742_v45 = vmul.f32 %v7636_v22, %v2665_v19  ;;  %v2743_v55 = vmul.f32 %v7641_v23, %v2669_v18  ;;  %v2744_v27 = vmul.f32 %v7636_v22, %v2673_v20  ;;  %v2745_v54 = vmul.f32 %v7641_v23, %v2677_v16 }
  0xfa   :  { %v2746_v59 = vmul.f32 %v7636_v22, %v2681_v52  ;;  %v2747_v30 = vmul.f32 %v7641_v23, %v2685_v53  ;;  %v2748_v41 = vmul.f32 %v7636_v22, %v2689_v34  ;;  %v2749_v4 = vmul.f32 %v7641_v23, %v2693_v33 }
  0xfb   :  { %v2750_v0 = vmul.f32 %v7636_v22, %v2697_v57  ;;  %v2751_v63 = vmul.f32 %v7641_v23, %v2701_v47  ;;  %v2752_v10 = vmul.f32 %v7636_v22, %v2705_v60  ;;  %v2753_v1 = vmul.f32 %v7641_v23, %v2709_v61 }
  0xfc   :  { %v2754_v3 = vmul.f32 %v7636_v22, %v2713_v15  ;;  %v2755_v2 = vmul.f32 %v7641_v23, %v2717_v46  ;;  %v2756_v21 = vmul.f32 %v7636_v22, %v2721_v37  ;;  %v2757_v24 = vmul.f32 %v7641_v23, %v2725_v26 }
  0xfd   :  { %v7811_v11 = vadd.f32 %v2742_v45, %v7694_v32  ;;  %v7814_v35 = vadd.f32 %v2743_v55, %v7697_v38  ;;  %v7817_v19 = vadd.f32 %v2744_v27, %v7700_v29  ;;  %v7820_v18 = vadd.f32 %v2745_v54, %v7703_v28 }
  0xfe   :  { %v7823_v20 = vadd.f32 %v2746_v59, %v7706_v31  ;;  %v7826_v16 = vadd.f32 %v2747_v30, %v7709_v48  ;;  %v7829_v22 = vadd.f32 %v2748_v41, %v7712_v39  ;;  %v7832_v23 = vadd.f32 %v2749_v4, %v7715_v58  ;;  %v7855_v39 = vld [vmem:[%s9470_s0 + $0x20] ss:$8 sm:$0x3] }
  0xff   :  { %v7835_v32 = vadd.f32 %v2750_v0, %v7718_v43  ;;  %v7838_v38 = vadd.f32 %v2751_v63, %v7721_v25  ;;  %v7841_v29 = vadd.f32 %v2752_v10, %v7737_v49  ;;  %v7844_v28 = vadd.f32 %v2753_v1, %v7740_v5  ;;  %v7866_v5 = vld [vmem:[%s9471_s1 + $0x100] sm:$0xff] }
 0x100   :  { %v7847_v31 = vadd.f32 %v2754_v3, %v7743_v8  ;;  %v7850_v48 = vadd.f32 %v2755_v2, %v7746_v42  ;;  %v7858_v58 = vadd.f32 %v2756_v21, %v7759_v56  ;;  %v7861_v43 = vadd.f32 %v2757_v24, %v7762_v12  ;;  %v7871_v8 = vld [vmem:[%s9471_s1 + $0x108] sm:$0xff] }
 0x101   :  { %v2812_v25 = vcombine.high %v2804_v36, %v2804_v36  ;;  %v2813_v49 = vcombine.high %v2811_v44, %v2811_v44  ;;  %v7874_v42 = vadd.f32 %v2790_v40, %v7765_v9  ;;  %v7877_v56 = vadd.f32 %v2791_v62, %v7768_v7 }
 0x102   :  { %v2820_v12 = vrot.slane %v2804_v36, %v6204_v17  ;;  %v2827_v52 = vrot.slane %v2811_v44, %v6204_v17  ;;  %v2967_v33 = vrot.slane %v7855_v39, %v6194_v13  ;;  %v2971_v57 = vrot.slane %v7855_v39, %v6197_v14 }
 0x103   :  { %v2834_v53 = vrot.slane %v2812_v25, %v6204_v17  ;;  %v2841_v34 = vrot.slane %v2813_v49, %v6204_v17  ;;  %v2980_v7 = vcombine.low %v7866_v5, %v7871_v8  ;;  %v2981_v40 = vcombine.high %v7866_v5, %v7871_v8 }
 0x104   :  { %v2842_v47 = vcombine.high %v2820_v12, %v2820_v12  ;;  %v2843_v9 = vcombine.high %v2827_v52, %v2827_v52  ;;  %v2849_v44 = vrot.slane %v2820_v12, %v6194_v13  ;;  %v2853_v60 = vrot.slane %v2820_v12, %v6197_v14 }
 0x105   :  { %v2844_v62 = vcombine.high %v2834_v53, %v2834_v53  ;;  %v2845_v36 = vcombine.high %v2841_v34, %v2841_v34  ;;  %v2857_v61 = vrot.slane %v2834_v53, %v6194_v13  ;;  %v2861_v15 = vrot.slane %v2834_v53, %v6197_v14 }
 0x106   :  { %v2865_v46 = vrot.slane %v2842_v47, %v6194_v13  ;;  %v2869_v37 = vrot.slane %v2842_v47, %v6197_v14  ;;  %v2881_v55 = vrot.slane %v2827_v52, %v6194_v13  ;;  %v2885_v27 = vrot.slane %v2827_v52, %v6197_v14 }
 0x107   :  { %v2873_v26 = vrot.slane %v2844_v62, %v6194_v13  ;;  %v2877_v45 = vrot.slane %v2844_v62, %v6197_v14  ;;  %v2889_v54 = vrot.slane %v2841_v34, %v6194_v13  ;;  %v2893_v59 = vrot.slane %v2841_v34, %v6197_v14 }
 0x108   :  { %v2897_v30 = vrot.slane %v2843_v9, %v6194_v13  ;;  %v2901_v41 = vrot.slane %v2843_v9, %v6197_v14  ;;  %v2905_v4 = vrot.slane %v2845_v36, %v6194_v13  ;;  %v2909_v0 = vrot.slane %v2845_v36, %v6197_v14 }
 0x109   :  { %v2926_v63 = vmul.f32 %v7726_v51, %v2849_v44  ;;  %v2927_v10 = vmul.f32 %v7731_v50, %v2853_v60  ;;  %v2928_v1 = vmul.f32 %v7726_v51, %v2857_v61  ;;  %v2929_v3 = vmul.f32 %v7731_v50, %v2861_v15 }
 0x10a   :  { %v2930_v2 = vmul.f32 %v7726_v51, %v2865_v46  ;;  %v2931_v21 = vmul.f32 %v7731_v50, %v2869_v37  ;;  %v2932_v24 = vmul.f32 %v7726_v51, %v2873_v26  ;;  %v2933_v39 = vmul.f32 %v7731_v50, %v2877_v45 }
 0x10b   :  { %v2934_v25 = vmul.f32 %v7726_v51, %v2881_v55  ;;  %v2935_v49 = vmul.f32 %v7731_v50, %v2885_v27  ;;  %v2936_v12 = vmul.f32 %v7726_v51, %v2889_v54  ;;  %v2937_v52 = vmul.f32 %v7731_v50, %v2893_v59 }
 0x10c   :  { %v2938_v53 = vmul.f32 %v7726_v51, %v2897_v30  ;;  %v2939_v34 = vmul.f32 %v7731_v50, %v2901_v41  ;;  %v2940_v47 = vmul.f32 %v7726_v51, %v2905_v4  ;;  %v2941_v9 = vmul.f32 %v7731_v50, %v2909_v0 }
 0x10d   :  { %v7924_v62 = vadd.f32 %v2926_v63, %v7811_v11  ;;  %v7927_v36 = vadd.f32 %v2927_v10, %v7814_v35  ;;  %v7930_v44 = vadd.f32 %v2928_v1, %v7817_v19  ;;  %v7933_v60 = vadd.f32 %v2929_v3, %v7820_v18  ;;  %v7956_v19 = vld [vmem:[%s9471_s1 + $0x110] sm:$0xff]  ;;  %v7961_v18 = vld [vmem:[%s9471_s1 + $0x118] sm:$0xff] }
 0x10e   :  { %v7936_v61 = vadd.f32 %v2930_v2, %v7823_v20  ;;  %v7939_v15 = vadd.f32 %v2931_v21, %v7826_v16  ;;  %v7942_v51 = vadd.f32 %v2932_v24, %v7829_v22  ;;  %v7945_v50 = vadd.f32 %v2933_v39, %v7832_v23  ;;  %v6072_v20 = vld [vmem:[%s9470_s0 + $0x21] ss:$8 sm:$0x3] }
 0x10f   :  { %v7948_v11 = vadd.f32 %v2934_v25, %v7835_v32  ;;  %v7951_v35 = vadd.f32 %v2935_v49, %v7838_v38  ;;  %v7967_v16 = vadd.f32 %v2936_v12, %v7841_v29  ;;  %v7970_v22 = vadd.f32 %v2937_v52, %v7844_v28 }
 0x110   :  { %v7973_v23 = vadd.f32 %v2938_v53, %v7847_v31  ;;  %v7976_v32 = vadd.f32 %v2939_v34, %v7850_v48  ;;  %v2974_v38 = vmul.f32 %v7866_v5, %v2967_v33  ;;  %v2975_v46 = vmul.f32 %v7871_v8, %v2971_v57 }
 0x111   :  { %v2988_v37 = vrot.slane %v2980_v7, %v6204_v17  ;;  %v2995_v26 = vrot.slane %v2981_v40, %v6204_v17  ;;  %v3151_v29 = vrot.slane %v6072_v20, %v6194_v13  ;;  %v3155_v45 = vrot.slane %v6072_v20, %v6197_v14 }
 0x112   :  { %v3164_v28 = vcombine.low %v7956_v19, %v7961_v18  ;;  %v3165_v31 = vcombine.high %v7956_v19, %v7961_v18  ;;  %v7989_v48 = vadd.f32 %v2940_v47, %v7858_v58  ;;  %v7992_v33 = vadd.f32 %v2941_v9, %v7861_v43 }
 0x113   :  { %v2996_v57 = vcombine.high %v2988_v37, %v2988_v37  ;;  %v2997_v7 = vcombine.high %v2995_v26, %v2995_v26  ;;  %v7995_v40 = vadd.f32 %v2974_v38, %v7874_v42  ;;  %v7998_v55 = vadd.f32 %v2975_v46, %v7877_v56 }
 0x114   :  { %v3004_v27 = vrot.slane %v2988_v37, %v6204_v17  ;;  %v3011_v54 = vrot.slane %v2995_v26, %v6204_v17  ;;  %v3158_v30 = vmul.f32 %v7956_v19, %v3151_v29  ;;  %v3159_v43 = vmul.f32 %v7961_v18, %v3155_v45 }
 0x115   :  { %v3018_v59 = vrot.slane %v2996_v57, %v6204_v17  ;;  %v3025_v58 = vrot.slane %v2997_v7, %v6204_v17  ;;  %v3172_v42 = vrot.slane %v3164_v28, %v6204_v17  ;;  %v3179_v0 = vrot.slane %v3165_v31, %v6204_v17 }
 0x116   :  { %v3026_v41 = vcombine.high %v3004_v27, %v3004_v27  ;;  %v3027_v4 = vcombine.high %v3011_v54, %v3011_v54  ;;  %v3033_v10 = vrot.slane %v3004_v27, %v6194_v13  ;;  %v3037_v1 = vrot.slane %v3004_v27, %v6197_v14 }
 0x117   :  { %v3028_v56 = vcombine.high %v3018_v59, %v3018_v59  ;;  %v3029_v63 = vcombine.high %v3025_v58, %v3025_v58  ;;  %v3041_v3 = vrot.slane %v3018_v59, %v6194_v13  ;;  %v3045_v2 = vrot.slane %v3018_v59, %v6197_v14 }
 0x118   :  { %v3049_v21 = vrot.slane %v3026_v41, %v6194_v13  ;;  %v3053_v24 = vrot.slane %v3026_v41, %v6197_v14  ;;  %v3065_v49 = vrot.slane %v3011_v54, %v6194_v13  ;;  %v3069_v12 = vrot.slane %v3011_v54, %v6197_v14 }
 0x119   :  { %v3057_v39 = vrot.slane %v3028_v56, %v6194_v13  ;;  %v3061_v25 = vrot.slane %v3028_v56, %v6197_v14  ;;  %v3073_v52 = vrot.slane %v3025_v58, %v6194_v13  ;;  %v3077_v53 = vrot.slane %v3025_v58, %v6197_v14 }
 0x11a   :  { %v3081_v34 = vrot.slane %v3027_v4, %v6194_v13  ;;  %v3085_v47 = vrot.slane %v3027_v4, %v6197_v14  ;;  %v3089_v9 = vrot.slane %v3029_v63, %v6194_v13  ;;  %v3093_v20 = vrot.slane %v3029_v63, %v6197_v14 }
 0x11b   :  { %v3110_v38 = vmul.f32 %v7866_v5, %v3033_v10  ;;  %v3111_v46 = vmul.f32 %v7871_v8, %v3037_v1  ;;  %v3112_v37 = vmul.f32 %v7866_v5, %v3041_v3  ;;  %v3113_v26 = vmul.f32 %v7871_v8, %v3045_v2 }
 0x11c   :  { %v3114_v29 = vmul.f32 %v7866_v5, %v3049_v21  ;;  %v3115_v45 = vmul.f32 %v7871_v8, %v3053_v24  ;;  %v3116_v28 = vmul.f32 %v7866_v5, %v3057_v39  ;;  %v3117_v31 = vmul.f32 %v7871_v8, %v3061_v25 }
 0x11d   :  { %v3118_v57 = vmul.f32 %v7866_v5, %v3065_v49  ;;  %v3119_v7 = vmul.f32 %v7871_v8, %v3069_v12  ;;  %v3120_v27 = vmul.f32 %v7866_v5, %v3073_v52  ;;  %v3121_v54 = vmul.f32 %v7871_v8, %v3077_v53 }
 0x11e   :  { %v3122_v59 = vmul.f32 %v7866_v5, %v3081_v34  ;;  %v3123_v58 = vmul.f32 %v7871_v8, %v3085_v47  ;;  %v3124_v41 = vmul.f32 %v7866_v5, %v3089_v9  ;;  %v3125_v4 = vmul.f32 %v7871_v8, %v3093_v20 }
 0x11f   :  { %v8041_v56 = vadd.f32 %v3110_v38, %v7924_v62  ;;  %v8044_v63 = vadd.f32 %v3111_v46, %v7927_v36  ;;  %v8047_v10 = vadd.f32 %v3112_v37, %v7930_v44  ;;  %v8050_v1 = vadd.f32 %v3113_v26, %v7933_v60 }
 0x120   :  { %v8053_v3 = vadd.f32 %v3114_v29, %v7936_v61  ;;  %v8056_v2 = vadd.f32 %v3115_v45, %v7939_v15  ;;  %v8059_v5 = vadd.f32 %v3116_v28, %v7942_v51  ;;  %v8062_v8 = vadd.f32 %v3117_v31, %v7945_v50  ;;  %v8085_v51 = vld [vmem:[%s9470_s0 + $0x22] ss:$8 sm:$0x3] }
 0x121   :  { %v8065_v62 = vadd.f32 %v3118_v57, %v7948_v11  ;;  %v8068_v36 = vadd.f32 %v3119_v7, %v7951_v35  ;;  %v8071_v44 = vadd.f32 %v3120_v27, %v7967_v16  ;;  %v8074_v60 = vadd.f32 %v3121_v54, %v7970_v22  ;;  %v8096_v22 = vld [vmem:[%s9471_s1 + $0x120] sm:$0xff] }
 0x122   :  { %v8077_v61 = vadd.f32 %v3122_v59, %v7973_v23  ;;  %v8080_v15 = vadd.f32 %v3123_v58, %v7976_v32  ;;  %v8088_v50 = vadd.f32 %v3124_v41, %v7989_v48  ;;  %v8091_v11 = vadd.f32 %v3125_v4, %v7992_v33  ;;  %v8101_v23 = vld [vmem:[%s9471_s1 + $0x128] sm:$0xff] }
 0x123   :  { %v3180_v35 = vcombine.high %v3172_v42, %v3172_v42  ;;  %v3181_v16 = vcombine.high %v3179_v0, %v3179_v0  ;;  %v8104_v32 = vadd.f32 %v3158_v30, %v7995_v40  ;;  %v8107_v48 = vadd.f32 %v3159_v43, %v7998_v55 }
 0x124   :  { %v3188_v33 = vrot.slane %v3172_v42, %v6204_v17  ;;  %v3195_v21 = vrot.slane %v3179_v0, %v6204_v17  ;;  %v3335_v25 = vrot.slane %v8085_v51, %v6194_v13  ;;  %v3339_v49 = vrot.slane %v8085_v51, %v6197_v14 }
 0x125   :  { %v3202_v24 = vrot.slane %v3180_v35, %v6204_v17  ;;  %v3209_v39 = vrot.slane %v3181_v16, %v6204_v17  ;;  %v3348_v55 = vcombine.low %v8096_v22, %v8101_v23  ;;  %v3349_v30 = vcombine.high %v8096_v22, %v8101_v23 }
 0x126   :  { %v3210_v12 = vcombine.high %v3188_v33, %v3188_v33  ;;  %v3211_v40 = vcombine.high %v3195_v21, %v3195_v21  ;;  %v3217_v0 = vrot.slane %v3188_v33, %v6194_v13  ;;  %v3221_v52 = vrot.slane %v3188_v33, %v6197_v14 }
 0x127   :  { %v3212_v43 = vcombine.high %v3202_v24, %v3202_v24  ;;  %v3213_v42 = vcombine.high %v3209_v39, %v3209_v39  ;;  %v3225_v53 = vrot.slane %v3202_v24, %v6194_v13  ;;  %v3229_v34 = vrot.slane %v3202_v24, %v6197_v14 }
 0x128   :  { %v3233_v47 = vrot.slane %v3210_v12, %v6194_v13  ;;  %v3237_v9 = vrot.slane %v3210_v12, %v6197_v14  ;;  %v3249_v46 = vrot.slane %v3195_v21, %v6194_v13  ;;  %v3253_v37 = vrot.slane %v3195_v21, %v6197_v14 }
 0x129   :  { %v3241_v20 = vrot.slane %v3212_v43, %v6194_v13  ;;  %v3245_v38 = vrot.slane %v3212_v43, %v6197_v14  ;;  %v3257_v26 = vrot.slane %v3209_v39, %v6194_v13  ;;  %v3261_v29 = vrot.slane %v3209_v39, %v6197_v14 }
 0x12a   :  { %v3265_v45 = vrot.slane %v3211_v40, %v6194_v13  ;;  %v3269_v28 = vrot.slane %v3211_v40, %v6197_v14  ;;  %v3273_v31 = vrot.slane %v3213_v42, %v6194_v13  ;;  %v3277_v57 = vrot.slane %v3213_v42, %v6197_v14 }
 0x12b   :  { %v3294_v7 = vmul.f32 %v7956_v19, %v3217_v0  ;;  %v3295_v27 = vmul.f32 %v7961_v18, %v3221_v52  ;;  %v3296_v54 = vmul.f32 %v7956_v19, %v3225_v53  ;;  %v3297_v59 = vmul.f32 %v7961_v18, %v3229_v34 }
 0x12c   :  { %v3298_v58 = vmul.f32 %v7956_v19, %v3233_v47  ;;  %v3299_v41 = vmul.f32 %v7961_v18, %v3237_v9  ;;  %v3300_v4 = vmul.f32 %v7956_v19, %v3241_v20  ;;  %v3301_v51 = vmul.f32 %v7961_v18, %v3245_v38 }
 0x12d   :  { %v3302_v35 = vmul.f32 %v7956_v19, %v3249_v46  ;;  %v3303_v16 = vmul.f32 %v7961_v18, %v3253_v37  ;;  %v3304_v33 = vmul.f32 %v7956_v19, %v3257_v26  ;;  %v3305_v21 = vmul.f32 %v7961_v18, %v3261_v29 }
 0x12e   :  { %v3306_v24 = vmul.f32 %v7956_v19, %v3265_v45  ;;  %v3307_v39 = vmul.f32 %v7961_v18, %v3269_v28  ;;  %v3308_v12 = vmul.f32 %v7956_v19, %v3273_v31  ;;  %v3309_v40 = vmul.f32 %v7961_v18, %v3277_v57 }
 0x12f   :  { %v8154_v43 = vadd.f32 %v3294_v7, %v8041_v56  ;;  %v8157_v42 = vadd.f32 %v3295_v27, %v8044_v63  ;;  %v8160_v0 = vadd.f32 %v3296_v54, %v8047_v10  ;;  %v8163_v52 = vadd.f32 %v3297_v59, %v8050_v1  ;;  %v8186_v10 = vld [vmem:[%s9471_s1 + $0x130] sm:$0xff]  ;;  %v8191_v1 = vld [vmem:[%s9471_s1 + $0x138] sm:$0xff] }
 0x130   :  { %v8166_v53 = vadd.f32 %v3298_v58, %v8053_v3  ;;  %v8169_v34 = vadd.f32 %v3299_v41, %v8056_v2  ;;  %v8172_v19 = vadd.f32 %v3300_v4, %v8059_v5  ;;  %v8175_v18 = vadd.f32 %v3301_v51, %v8062_v8  ;;  %v6078_v3 = vld [vmem:[%s9470_s0 + $0x23] ss:$8 sm:$0x3] }
 0x131   :  { %v8178_v56 = vadd.f32 %v3302_v35, %v8065_v62  ;;  %v8181_v63 = vadd.f32 %v3303_v16, %v8068_v36  ;;  %v8197_v2 = vadd.f32 %v3304_v33, %v8071_v44  ;;  %v8200_v5 = vadd.f32 %v3305_v21, %v8074_v60 }
 0x132   :  { %v8203_v8 = vadd.f32 %v3306_v24, %v8077_v61  ;;  %v8206_v62 = vadd.f32 %v3307_v39, %v8080_v15  ;;  %v3342_v36 = vmul.f32 %v8096_v22, %v3335_v25  ;;  %v3343_v47 = vmul.f32 %v8101_v23, %v3339_v49 }
 0x133   :  { %v3356_v9 = vrot.slane %v3348_v55, %v6204_v17  ;;  %v3363_v20 = vrot.slane %v3349_v30, %v6204_v17  ;;  %v3519_v44 = vrot.slane %v6078_v3, %v6194_v13  ;;  %v3523_v38 = vrot.slane %v6078_v3, %v6197_v14 }
 0x134   :  { %v3532_v60 = vcombine.low %v8186_v10, %v8191_v1  ;;  %v3533_v61 = vcombine.high %v8186_v10, %v8191_v1  ;;  %v8219_v15 = vadd.f32 %v3308_v12, %v8088_v50  ;;  %v8222_v25 = vadd.f32 %v3309_v40, %v8091_v11 }
 0x135   :  { %v3364_v49 = vcombine.high %v3356_v9, %v3356_v9  ;;  %v3365_v55 = vcombine.high %v3363_v20, %v3363_v20  ;;  %v8225_v30 = vadd.f32 %v3342_v36, %v8104_v32  ;;  %v8228_v46 = vadd.f32 %v3343_v47, %v8107_v48 }
 0x136   :  { %v3372_v37 = vrot.slane %v3356_v9, %v6204_v17  ;;  %v3379_v26 = vrot.slane %v3363_v20, %v6204_v17  ;;  %v3526_v45 = vmul.f32 %v8186_v10, %v3519_v44  ;;  %v3527_v11 = vmul.f32 %v8191_v1, %v3523_v38 }
 0x137   :  { %v3386_v29 = vrot.slane %v3364_v49, %v6204_v17  ;;  %v3393_v50 = vrot.slane %v3365_v55, %v6204_v17  ;;  %v3540_v32 = vrot.slane %v3532_v60, %v6204_v17  ;;  %v3547_v57 = vrot.slane %v3533_v61, %v6204_v17 }
 0x138   :  { %v3394_v28 = vcombine.high %v3372_v37, %v3372_v37  ;;  %v3395_v31 = vcombine.high %v3379_v26, %v3379_v26  ;;  %v3401_v27 = vrot.slane %v3372_v37, %v6194_v13  ;;  %v3405_v54 = vrot.slane %v3372_v37, %v6197_v14 }
 0x139   :  { %v3396_v48 = vcombine.high %v3386_v29, %v3386_v29  ;;  %v3397_v7 = vcombine.high %v3393_v50, %v3393_v50  ;;  %v3409_v59 = vrot.slane %v3386_v29, %v6194_v13  ;;  %v3413_v58 = vrot.slane %v3386_v29, %v6197_v14 }
 0x13a   :  { %v3417_v41 = vrot.slane %v3394_v28, %v6194_v13  ;;  %v3421_v4 = vrot.slane %v3394_v28, %v6197_v14  ;;  %v3433_v16 = vrot.slane %v3379_v26, %v6194_v13  ;;  %v3437_v33 = vrot.slane %v3379_v26, %v6197_v14 }
 0x13b   :  { %v3425_v51 = vrot.slane %v3396_v48, %v6194_v13  ;;  %v3429_v35 = vrot.slane %v3396_v48, %v6197_v14  ;;  %v3441_v21 = vrot.slane %v3393_v50, %v6194_v13  ;;  %v3445_v24 = vrot.slane %v3393_v50, %v6197_v14 }
 0x13c   :  { %v3449_v39 = vrot.slane %v3395_v31, %v6194_v13  ;;  %v3453_v12 = vrot.slane %v3395_v31, %v6197_v14  ;;  %v3457_v40 = vrot.slane %v3397_v7, %v6194_v13  ;;  %v3461_v3 = vrot.slane %v3397_v7, %v6197_v14 }
 0x13d   :  { %v3478_v36 = vmul.f32 %v8096_v22, %v3401_v27  ;;  %v3479_v47 = vmul.f32 %v8101_v23, %v3405_v54  ;;  %v3480_v9 = vmul.f32 %v8096_v22, %v3409_v59  ;;  %v3481_v20 = vmul.f32 %v8101_v23, %v3413_v58 }
 0x13e   :  { %v3482_v44 = vmul.f32 %v8096_v22, %v3417_v41  ;;  %v3483_v38 = vmul.f32 %v8101_v23, %v3421_v4  ;;  %v3484_v60 = vmul.f32 %v8096_v22, %v3425_v51  ;;  %v3485_v61 = vmul.f32 %v8101_v23, %v3429_v35 }
 0x13f   :  { %v3486_v49 = vmul.f32 %v8096_v22, %v3433_v16  ;;  %v3487_v55 = vmul.f32 %v8101_v23, %v3437_v33  ;;  %v3488_v37 = vmul.f32 %v8096_v22, %v3441_v21  ;;  %v3489_v26 = vmul.f32 %v8101_v23, %v3445_v24 }
 0x140   :  { %v3490_v29 = vmul.f32 %v8096_v22, %v3449_v39  ;;  %v3491_v50 = vmul.f32 %v8101_v23, %v3453_v12  ;;  %v3492_v28 = vmul.f32 %v8096_v22, %v3457_v40  ;;  %v3493_v31 = vmul.f32 %v8101_v23, %v3461_v3 }
 0x141   :  { %v8271_v48 = vadd.f32 %v3478_v36, %v8154_v43  ;;  %v8274_v7 = vadd.f32 %v3479_v47, %v8157_v42  ;;  %v8277_v27 = vadd.f32 %v3480_v9, %v8160_v0  ;;  %v8280_v54 = vadd.f32 %v3481_v20, %v8163_v52 }
 0x142   :  { %v8283_v59 = vadd.f32 %v3482_v44, %v8166_v53  ;;  %v8286_v58 = vadd.f32 %v3483_v38, %v8169_v34  ;;  %v8289_v22 = vadd.f32 %v3484_v60, %v8172_v19  ;;  %v8292_v23 = vadd.f32 %v3485_v61, %v8175_v18  ;;  %v8315_v19 = vld [vmem:[%s9470_s0 + $0x24] ss:$8 sm:$0x3] }
 0x143   :  { %v8295_v43 = vadd.f32 %v3486_v49, %v8178_v56  ;;  %v8298_v42 = vadd.f32 %v3487_v55, %v8181_v63  ;;  %v8301_v0 = vadd.f32 %v3488_v37, %v8197_v2  ;;  %v8304_v52 = vadd.f32 %v3489_v26, %v8200_v5  ;;  %v8326_v5 = vld [vmem:[%s9471_s1 + $0x140] sm:$0xff] }
 0x144   :  { %v8307_v53 = vadd.f32 %v3490_v29, %v8203_v8  ;;  %v8310_v34 = vadd.f32 %v3491_v50, %v8206_v62  ;;  %v8318_v18 = vadd.f32 %v3492_v28, %v8219_v15  ;;  %v8321_v56 = vadd.f32 %v3493_v31, %v8222_v25  ;;  %v8331_v8 = vld [vmem:[%s9471_s1 + $0x148] sm:$0xff] }
 0x145   :  { %v3548_v63 = vcombine.high %v3540_v32, %v3540_v32  ;;  %v3549_v2 = vcombine.high %v3547_v57, %v3547_v57  ;;  %v8334_v62 = vadd.f32 %v3526_v45, %v8225_v30  ;;  %v8337_v15 = vadd.f32 %v3527_v11, %v8228_v46 }
 0x146   :  { %v3556_v25 = vrot.slane %v3540_v32, %v6204_v17  ;;  %v3563_v41 = vrot.slane %v3547_v57, %v6204_v17  ;;  %v3703_v35 = vrot.slane %v8315_v19, %v6194_v13  ;;  %v3707_v16 = vrot.slane %v8315_v19, %v6197_v14 }
 0x147   :  { %v3570_v4 = vrot.slane %v3548_v63, %v6204_v17  ;;  %v3577_v51 = vrot.slane %v3549_v2, %v6204_v17  ;;  %v3716_v46 = vcombine.low %v8326_v5, %v8331_v8  ;;  %v3717_v45 = vcombine.high %v8326_v5, %v8331_v8 }
 0x148   :  { %v3578_v33 = vcombine.high %v3556_v25, %v3556_v25  ;;  %v3579_v30 = vcombine.high %v3563_v41, %v3563_v41  ;;  %v3585_v57 = vrot.slane %v3556_v25, %v6194_v13  ;;  %v3589_v21 = vrot.slane %v3556_v25, %v6197_v14 }
 0x149   :  { %v3580_v11 = vcombine.high %v3570_v4, %v3570_v4  ;;  %v3581_v32 = vcombine.high %v3577_v51, %v3577_v51  ;;  %v3593_v24 = vrot.slane %v3570_v4, %v6194_v13  ;;  %v3597_v39 = vrot.slane %v3570_v4, %v6197_v14 }
 0x14a   :  { %v3601_v12 = vrot.slane %v3578_v33, %v6194_v13  ;;  %v3605_v40 = vrot.slane %v3578_v33, %v6197_v14  ;;  %v3617_v47 = vrot.slane %v3563_v41, %v6194_v13  ;;  %v3621_v9 = vrot.slane %v3563_v41, %v6197_v14 }
 0x14b   :  { %v3609_v3 = vrot.slane %v3580_v11, %v6194_v13  ;;  %v3613_v36 = vrot.slane %v3580_v11, %v6197_v14  ;;  %v3625_v20 = vrot.slane %v3577_v51, %v6194_v13  ;;  %v3629_v44 = vrot.slane %v3577_v51, %v6197_v14 }
 0x14c   :  { %v3633_v38 = vrot.slane %v3579_v30, %v6194_v13  ;;  %v3637_v60 = vrot.slane %v3579_v30, %v6197_v14  ;;  %v3641_v61 = vrot.slane %v3581_v32, %v6194_v13  ;;  %v3645_v49 = vrot.slane %v3581_v32, %v6197_v14 }
 0x14d   :  { %v3662_v55 = vmul.f32 %v8186_v10, %v3585_v57  ;;  %v3663_v37 = vmul.f32 %v8191_v1, %v3589_v21  ;;  %v3664_v26 = vmul.f32 %v8186_v10, %v3593_v24  ;;  %v3665_v29 = vmul.f32 %v8191_v1, %v3597_v39 }
 0x14e   :  { %v3666_v50 = vmul.f32 %v8186_v10, %v3601_v12  ;;  %v3667_v28 = vmul.f32 %v8191_v1, %v3605_v40  ;;  %v3668_v31 = vmul.f32 %v8186_v10, %v3609_v3  ;;  %v3669_v19 = vmul.f32 %v8191_v1, %v3613_v36 }
 0x14f   :  { %v3670_v63 = vmul.f32 %v8186_v10, %v3617_v47  ;;  %v3671_v2 = vmul.f32 %v8191_v1, %v3621_v9  ;;  %v3672_v25 = vmul.f32 %v8186_v10, %v3625_v20  ;;  %v3673_v41 = vmul.f32 %v8191_v1, %v3629_v44 }
 0x150   :  { %v3674_v4 = vmul.f32 %v8186_v10, %v3633_v38  ;;  %v3675_v51 = vmul.f32 %v8191_v1, %v3637_v60  ;;  %v3676_v33 = vmul.f32 %v8186_v10, %v3641_v61  ;;  %v3677_v30 = vmul.f32 %v8191_v1, %v3645_v49 }
 0x151   :  { %v8384_v11 = vadd.f32 %v3662_v55, %v8271_v48  ;;  %v8387_v32 = vadd.f32 %v3663_v37, %v8274_v7  ;;  %v8390_v57 = vadd.f32 %v3664_v26, %v8277_v27  ;;  %v8393_v21 = vadd.f32 %v3665_v29, %v8280_v54  ;;  %v8416_v27 = vld [vmem:[%s9471_s1 + $0x150] sm:$0xff]  ;;  %v8421_v54 = vld [vmem:[%s9471_s1 + $0x158] sm:$0xff] }
 0x152   :  { %v8396_v24 = vadd.f32 %v3666_v50, %v8283_v59  ;;  %v8399_v39 = vadd.f32 %v3667_v28, %v8286_v58  ;;  %v8402_v10 = vadd.f32 %v3668_v31, %v8289_v22  ;;  %v8405_v1 = vadd.f32 %v3669_v19, %v8292_v23  ;;  %v6084_v59 = vld [vmem:[%s9470_s0 + $0x25] ss:$8 sm:$0x3] }
 0x153   :  { %v8408_v48 = vadd.f32 %v3670_v63, %v8295_v43  ;;  %v8411_v7 = vadd.f32 %v3671_v2, %v8298_v42  ;;  %v8427_v58 = vadd.f32 %v3672_v25, %v8301_v0  ;;  %v8430_v22 = vadd.f32 %v3673_v41, %v8304_v52 }
 0x154   :  { %v8433_v23 = vadd.f32 %v3674_v4, %v8307_v53  ;;  %v8436_v43 = vadd.f32 %v3675_v51, %v8310_v34  ;;  %v3710_v42 = vmul.f32 %v8326_v5, %v3703_v35  ;;  %v3711_v12 = vmul.f32 %v8331_v8, %v3707_v16 }
 0x155   :  { %v3724_v40 = vrot.slane %v3716_v46, %v6204_v17  ;;  %v3731_v3 = vrot.slane %v3717_v45, %v6204_v17  ;;  %v3887_v0 = vrot.slane %v6084_v59, %v6194_v13  ;;  %v3891_v36 = vrot.slane %v6084_v59, %v6197_v14 }
 0x156   :  { %v3900_v52 = vcombine.low %v8416_v27, %v8421_v54  ;;  %v3901_v53 = vcombine.high %v8416_v27, %v8421_v54  ;;  %v8449_v34 = vadd.f32 %v3676_v33, %v8318_v18  ;;  %v8452_v35 = vadd.f32 %v3677_v30, %v8321_v56 }
 0x157   :  { %v3732_v16 = vcombine.high %v3724_v40, %v3724_v40  ;;  %v3733_v46 = vcombine.high %v3731_v3, %v3731_v3  ;;  %v8455_v45 = vadd.f32 %v3710_v42, %v8334_v62  ;;  %v8458_v47 = vadd.f32 %v3711_v12, %v8337_v15 }
 0x158   :  { %v3740_v9 = vrot.slane %v3724_v40, %v6204_v17  ;;  %v3747_v20 = vrot.slane %v3731_v3, %v6204_v17  ;;  %v3894_v38 = vmul.f32 %v8416_v27, %v3887_v0  ;;  %v3895_v56 = vmul.f32 %v8421_v54, %v3891_v36 }
 0x159   :  { %v3754_v44 = vrot.slane %v3732_v16, %v6204_v17  ;;  %v3761_v18 = vrot.slane %v3733_v46, %v6204_v17  ;;  %v3908_v62 = vrot.slane %v3900_v52, %v6204_v17  ;;  %v3915_v49 = vrot.slane %v3901_v53, %v6204_v17 }
 0x15a   :  { %v3762_v60 = vcombine.high %v3740_v9, %v3740_v9  ;;  %v3763_v61 = vcombine.high %v3747_v20, %v3747_v20  ;;  %v3769_v37 = vrot.slane %v3740_v9, %v6194_v13  ;;  %v3773_v26 = vrot.slane %v3740_v9, %v6197_v14 }
 0x15b   :  { %v3764_v15 = vcombine.high %v3754_v44, %v3754_v44  ;;  %v3765_v55 = vcombine.high %v3761_v18, %v3761_v18  ;;  %v3777_v29 = vrot.slane %v3754_v44, %v6194_v13  ;;  %v3781_v50 = vrot.slane %v3754_v44, %v6197_v14 }
 0x15c   :  { %v3785_v28 = vrot.slane %v3762_v60, %v6194_v13  ;;  %v3789_v31 = vrot.slane %v3762_v60, %v6197_v14  ;;  %v3801_v2 = vrot.slane %v3747_v20, %v6194_v13  ;;  %v3805_v25 = vrot.slane %v3747_v20, %v6197_v14 }
 0x15d   :  { %v3793_v19 = vrot.slane %v3764_v15, %v6194_v13  ;;  %v3797_v63 = vrot.slane %v3764_v15, %v6197_v14  ;;  %v3809_v41 = vrot.slane %v3761_v18, %v6194_v13  ;;  %v3813_v4 = vrot.slane %v3761_v18, %v6197_v14 }
 0x15e   :  { %v3817_v51 = vrot.slane %v3763_v61, %v6194_v13  ;;  %v3821_v33 = vrot.slane %v3763_v61, %v6197_v14  ;;  %v3825_v30 = vrot.slane %v3765_v55, %v6194_v13  ;;  %v3829_v59 = vrot.slane %v3765_v55, %v6197_v14 }
 0x15f   :  { %v3846_v42 = vmul.f32 %v8326_v5, %v3769_v37  ;;  %v3847_v12 = vmul.f32 %v8331_v8, %v3773_v26  ;;  %v3848_v40 = vmul.f32 %v8326_v5, %v3777_v29  ;;  %v3849_v3 = vmul.f32 %v8331_v8, %v3781_v50 }
 0x160   :  { %v3850_v0 = vmul.f32 %v8326_v5, %v3785_v28  ;;  %v3851_v36 = vmul.f32 %v8331_v8, %v3789_v31  ;;  %v3852_v52 = vmul.f32 %v8326_v5, %v3793_v19  ;;  %v3853_v53 = vmul.f32 %v8331_v8, %v3797_v63 }
 0x161   :  { %v3854_v16 = vmul.f32 %v8326_v5, %v3801_v2  ;;  %v3855_v46 = vmul.f32 %v8331_v8, %v3805_v25  ;;  %v3856_v9 = vmul.f32 %v8326_v5, %v3809_v41  ;;  %v3857_v20 = vmul.f32 %v8331_v8, %v3813_v4 }
 0x162   :  { %v3858_v44 = vmul.f32 %v8326_v5, %v3817_v51  ;;  %v3859_v18 = vmul.f32 %v8331_v8, %v3821_v33  ;;  %v3860_v60 = vmul.f32 %v8326_v5, %v3825_v30  ;;  %v3861_v61 = vmul.f32 %v8331_v8, %v3829_v59 }
 0x163   :  { %v8501_v15 = vadd.f32 %v3846_v42, %v8384_v11  ;;  %v8504_v55 = vadd.f32 %v3847_v12, %v8387_v32  ;;  %v8507_v37 = vadd.f32 %v3848_v40, %v8390_v57  ;;  %v8510_v26 = vadd.f32 %v3849_v3, %v8393_v21 }
 0x164   :  { %v8513_v29 = vadd.f32 %v3850_v0, %v8396_v24  ;;  %v8516_v50 = vadd.f32 %v3851_v36, %v8399_v39  ;;  %v8519_v5 = vadd.f32 %v3852_v52, %v8402_v10  ;;  %v8522_v8 = vadd.f32 %v3853_v53, %v8405_v1  ;;  %v8545_v10 = vld [vmem:[%s9470_s0 + $0x26] ss:$8 sm:$0x3] }
 0x165   :  { %v8525_v11 = vadd.f32 %v3854_v16, %v8408_v48  ;;  %v8528_v32 = vadd.f32 %v3855_v46, %v8411_v7  ;;  %v8531_v57 = vadd.f32 %v3856_v9, %v8427_v58  ;;  %v8534_v21 = vadd.f32 %v3857_v20, %v8430_v22  ;;  %v8556_v22 = vld [vmem:[%s9471_s1 + $0x160] sm:$0xff] }
 0x166   :  { %v8537_v24 = vadd.f32 %v3858_v44, %v8433_v23  ;;  %v8540_v39 = vadd.f32 %v3859_v18, %v8436_v43  ;;  %v8548_v1 = vadd.f32 %v3860_v60, %v8449_v34  ;;  %v8551_v48 = vadd.f32 %v3861_v61, %v8452_v35  ;;  %v8561_v23 = vld [vmem:[%s9471_s1 + $0x168] sm:$0xff] }
 0x167   :  { %v3916_v7 = vcombine.high %v3908_v62, %v3908_v62  ;;  %v3917_v58 = vcombine.high %v3915_v49, %v3915_v49  ;;  %v8564_v43 = vadd.f32 %v3894_v38, %v8455_v45  ;;  %v8567_v34 = vadd.f32 %v3895_v56, %v8458_v47 }
 0x168   :  { %v3924_v35 = vrot.slane %v3908_v62, %v6204_v17  ;;  %v3931_v28 = vrot.slane %v3915_v49, %v6204_v17  ;;  %v4071_v63 = vrot.slane %v8545_v10, %v6194_v13  ;;  %v4075_v2 = vrot.slane %v8545_v10, %v6197_v14 }
 0x169   :  { %v3938_v31 = vrot.slane %v3916_v7, %v6204_v17  ;;  %v3945_v19 = vrot.slane %v3917_v58, %v6204_v17  ;;  %v4084_v47 = vcombine.low %v8556_v22, %v8561_v23  ;;  %v4085_v38 = vcombine.high %v8556_v22, %v8561_v23 }
 0x16a   :  { %v3946_v25 = vcombine.high %v3924_v35, %v3924_v35  ;;  %v3947_v45 = vcombine.high %v3931_v28, %v3931_v28  ;;  %v3953_v49 = vrot.slane %v3924_v35, %v6194_v13  ;;  %v3957_v41 = vrot.slane %v3924_v35, %v6197_v14 }
 0x16b   :  { %v3948_v56 = vcombine.high %v3938_v31, %v3938_v31  ;;  %v3949_v62 = vcombine.high %v3945_v19, %v3945_v19  ;;  %v3961_v4 = vrot.slane %v3938_v31, %v6194_v13  ;;  %v3965_v51 = vrot.slane %v3938_v31, %v6197_v14 }
 0x16c   :  { %v3969_v33 = vrot.slane %v3946_v25, %v6194_v13  ;;  %v3973_v30 = vrot.slane %v3946_v25, %v6197_v14  ;;  %v3985_v12 = vrot.slane %v3931_v28, %v6194_v13  ;;  %v3989_v40 = vrot.slane %v3931_v28, %v6197_v14 }
 0x16d   :  { %v3977_v59 = vrot.slane %v3948_v56, %v6194_v13  ;;  %v3981_v42 = vrot.slane %v3948_v56, %v6197_v14  ;;  %v3993_v3 = vrot.slane %v3945_v19, %v6194_v13  ;;  %v3997_v0 = vrot.slane %v3945_v19, %v6197_v14 }
 0x16e   :  { %v4001_v36 = vrot.slane %v3947_v45, %v6194_v13  ;;  %v4005_v52 = vrot.slane %v3947_v45, %v6197_v14  ;;  %v4009_v53 = vrot.slane %v3949_v62, %v6194_v13  ;;  %v4013_v16 = vrot.slane %v3949_v62, %v6197_v14 }
 0x16f   :  { %v4030_v46 = vmul.f32 %v8416_v27, %v3953_v49  ;;  %v4031_v9 = vmul.f32 %v8421_v54, %v3957_v41  ;;  %v4032_v20 = vmul.f32 %v8416_v27, %v3961_v4  ;;  %v4033_v44 = vmul.f32 %v8421_v54, %v3965_v51 }
 0x170   :  { %v4034_v18 = vmul.f32 %v8416_v27, %v3969_v33  ;;  %v4035_v60 = vmul.f32 %v8421_v54, %v3973_v30  ;;  %v4036_v61 = vmul.f32 %v8416_v27, %v3977_v59  ;;  %v4037_v10 = vmul.f32 %v8421_v54, %v3981_v42 }
 0x171   :  { %v4038_v7 = vmul.f32 %v8416_v27, %v3985_v12  ;;  %v4039_v58 = vmul.f32 %v8421_v54, %v3989_v40  ;;  %v4040_v35 = vmul.f32 %v8416_v27, %v3993_v3  ;;  %v4041_v28 = vmul.f32 %v8421_v54, %v3997_v0 }
 0x172   :  { %v4042_v31 = vmul.f32 %v8416_v27, %v4001_v36  ;;  %v4043_v19 = vmul.f32 %v8421_v54, %v4005_v52  ;;  %v4044_v25 = vmul.f32 %v8416_v27, %v4009_v53  ;;  %v4045_v45 = vmul.f32 %v8421_v54, %v4013_v16 }
 0x173   :  { %v8614_v56 = vadd.f32 %v4030_v46, %v8501_v15  ;;  %v8617_v62 = vadd.f32 %v4031_v9, %v8504_v55  ;;  %v8620_v49 = vadd.f32 %v4032_v20, %v8507_v37  ;;  %v8623_v41 = vadd.f32 %v4033_v44, %v8510_v26  ;;  %v8646_v37 = vld [vmem:[%s9471_s1 + $0x170] sm:$0xff]  ;;  %v8651_v26 = vld [vmem:[%s9471_s1 + $0x178] sm:$0xff] }
 0x174   :  { %v8626_v4 = vadd.f32 %v4034_v18, %v8513_v29  ;;  %v8629_v51 = vadd.f32 %v4035_v60, %v8516_v50  ;;  %v8632_v27 = vadd.f32 %v4036_v61, %v8519_v5  ;;  %v8635_v54 = vadd.f32 %v4037_v10, %v8522_v8  ;;  %v6090_v29 = vld [vmem:[%s9470_s0 + $0x27] ss:$8 sm:$0x3] }
 0x175   :  { %v8638_v15 = vadd.f32 %v4038_v7, %v8525_v11  ;;  %v8641_v55 = vadd.f32 %v4039_v58, %v8528_v32  ;;  %v8657_v50 = vadd.f32 %v4040_v35, %v8531_v57  ;;  %v8660_v5 = vadd.f32 %v4041_v28, %v8534_v21 }
 0x176   :  { %v8663_v8 = vadd.f32 %v4042_v31, %v8537_v24  ;;  %v8666_v11 = vadd.f32 %v4043_v19, %v8540_v39  ;;  %v4078_v32 = vmul.f32 %v8556_v22, %v4071_v63  ;;  %v4079_v33 = vmul.f32 %v8561_v23, %v4075_v2 }
 0x177   :  { %v4092_v30 = vrot.slane %v4084_v47, %v6204_v17  ;;  %v4099_v59 = vrot.slane %v4085_v38, %v6204_v17  ;;  %v4255_v57 = vrot.slane %v6090_v29, %v6194_v13  ;;  %v4259_v42 = vrot.slane %v6090_v29, %v6197_v14 }
 0x178   :  { %v4268_v21 = vcombine.low %v8646_v37, %v8651_v26  ;;  %v4269_v24 = vcombine.high %v8646_v37, %v8651_v26  ;;  %v8679_v39 = vadd.f32 %v4044_v25, %v8548_v1  ;;  %v8682_v63 = vadd.f32 %v4045_v45, %v8551_v48 }
 0x179   :  { %v4100_v2 = vcombine.high %v4092_v30, %v4092_v30  ;;  %v4101_v47 = vcombine.high %v4099_v59, %v4099_v59  ;;  %v8685_v38 = vadd.f32 %v4078_v32, %v8564_v43  ;;  %v8688_v12 = vadd.f32 %v4079_v33, %v8567_v34 }
 0x17a   :  { %v4108_v40 = vrot.slane %v4092_v30, %v6204_v17  ;;  %v4115_v3 = vrot.slane %v4099_v59, %v6204_v17  ;;  %v4262_v36 = vmul.f32 %v8646_v37, %v4255_v57  ;;  %v4263_v48 = vmul.f32 %v8651_v26, %v4259_v42 }
 0x17b   :  { %v4122_v0 = vrot.slane %v4100_v2, %v6204_v17  ;;  %v4129_v1 = vrot.slane %v4101_v47, %v6204_v17  ;;  %v4276_v43 = vrot.slane %v4268_v21, %v6204_v17  ;;  %v4283_v16 = vrot.slane %v4269_v24, %v6204_v17 }
 0x17c   :  { %v4130_v52 = vcombine.high %v4108_v40, %v4108_v40  ;;  %v4131_v53 = vcombine.high %v4115_v3, %v4115_v3  ;;  %v4137_v9 = vrot.slane %v4108_v40, %v6194_v13  ;;  %v4141_v20 = vrot.slane %v4108_v40, %v6197_v14 }
 0x17d   :  { %v4132_v34 = vcombine.high %v4122_v0, %v4122_v0  ;;  %v4133_v46 = vcombine.high %v4129_v1, %v4129_v1  ;;  %v4145_v44 = vrot.slane %v4122_v0, %v6194_v13  ;;  %v4149_v18 = vrot.slane %v4122_v0, %v6197_v14 }
 0x17e   :  { %v4153_v60 = vrot.slane %v4130_v52, %v6194_v13  ;;  %v4157_v61 = vrot.slane %v4130_v52, %v6197_v14  ;;  %v4169_v58 = vrot.slane %v4115_v3, %v6194_v13  ;;  %v4173_v35 = vrot.slane %v4115_v3, %v6197_v14 }
 0x17f   :  { %v4161_v10 = vrot.slane %v4132_v34, %v6194_v13  ;;  %v4165_v7 = vrot.slane %v4132_v34, %v6197_v14  ;;  %v4177_v28 = vrot.slane %v4129_v1, %v6194_v13  ;;  %v4181_v31 = vrot.slane %v4129_v1, %v6197_v14 }
 0x180   :  { %v4185_v19 = vrot.slane %v4131_v53, %v6194_v13  ;;  %v4189_v25 = vrot.slane %v4131_v53, %v6197_v14  ;;  %v4193_v45 = vrot.slane %v4133_v46, %v6194_v13  ;;  %v4197_v29 = vrot.slane %v4133_v46, %v6197_v14 }
 0x181   :  { %v4214_v32 = vmul.f32 %v8556_v22, %v4137_v9  ;;  %v4215_v33 = vmul.f32 %v8561_v23, %v4141_v20  ;;  %v4216_v30 = vmul.f32 %v8556_v22, %v4145_v44  ;;  %v4217_v59 = vmul.f32 %v8561_v23, %v4149_v18 }
 0x182   :  { %v4218_v57 = vmul.f32 %v8556_v22, %v4153_v60  ;;  %v4219_v42 = vmul.f32 %v8561_v23, %v4157_v61  ;;  %v4220_v21 = vmul.f32 %v8556_v22, %v4161_v10  ;;  %v4221_v24 = vmul.f32 %v8561_v23, %v4165_v7 }
 0x183   :  { %v4222_v2 = vmul.f32 %v8556_v22, %v4169_v58  ;;  %v4223_v47 = vmul.f32 %v8561_v23, %v4173_v35  ;;  %v4224_v40 = vmul.f32 %v8556_v22, %v4177_v28  ;;  %v4225_v3 = vmul.f32 %v8561_v23, %v4181_v31 }
 0x184   :  { %v4226_v0 = vmul.f32 %v8556_v22, %v4185_v19  ;;  %v4227_v1 = vmul.f32 %v8561_v23, %v4189_v25  ;;  %v4228_v52 = vmul.f32 %v8556_v22, %v4193_v45  ;;  %v4229_v53 = vmul.f32 %v8561_v23, %v4197_v29 }
 0x185   :  { %v8731_v34 = vadd.f32 %v4214_v32, %v8614_v56  ;;  %v8734_v46 = vadd.f32 %v4215_v33, %v8617_v62  ;;  %v8737_v9 = vadd.f32 %v4216_v30, %v8620_v49  ;;  %v8740_v20 = vadd.f32 %v4217_v59, %v8623_v41  ;;  %v8763_v49 = vld [vmem:[%s9472_s2] sm:$0xff]  ;;  %v8768_v41 = vld [vmem:[%s9472_s2 + $0x8] sm:$0xff] }
 0x186   :  { %v8743_v44 = vadd.f32 %v4218_v57, %v8626_v4  ;;  %v8746_v18 = vadd.f32 %v4219_v42, %v8629_v51  ;;  %v8749_v22 = vadd.f32 %v4220_v21, %v8632_v27  ;;  %v8752_v23 = vadd.f32 %v4221_v24, %v8635_v54 }
 0x187   :  { %v8755_v56 = vadd.f32 %v4222_v2, %v8638_v15  ;;  %v8758_v62 = vadd.f32 %v4223_v47, %v8641_v55  ;;  %v8771_v4 = vadd.f32 %v4224_v40, %v8657_v50  ;;  %v8774_v51 = vadd.f32 %v4225_v3, %v8660_v5 }
 0x188   :  { %v8777_v27 = vadd.f32 %v4226_v0, %v8663_v8  ;;  %v8780_v54 = vadd.f32 %v4227_v1, %v8666_v11  ;;  %v8783_v15 = vadd.f32 %v4228_v52, %v8679_v39  ;;  %v4264_v55 = vadd.f32 %v4262_v36, %v8685_v38 }
 0x189   :  { %v4284_v60 = vcombine.high %v4276_v43, %v4276_v43  ;;  %v4285_v61 = vcombine.high %v4283_v16, %v4283_v16  ;;  %v8787_v10 = vadd.f32 %v4229_v53, %v8682_v63  ;;  %v4265_v50 = vadd.f32 %v4263_v48, %v8688_v12 }
 0x18a   :  { %v4292_v5 = vrot.slane %v4276_v43, %v6204_v17  ;;  %v4299_v8 = vrot.slane %v4283_v16, %v6204_v17  ;;  %v4453_v39 = vrot.slane %v8763_v49, %v6194_v13  ;;  %v4457_v38 = vrot.slane %v8768_v41, %v6194_v13 }
 0x18b   :  { %v4306_v7 = vrot.slane %v4284_v60, %v6204_v17  ;;  %v4313_v11 = vrot.slane %v4285_v61, %v6204_v17  ;;  %v8799_v35 = vmul.f32 0.01, %v4264_v55  ;;  %v8806_v19 = vmul.f32 0.01, %v4265_v50 }
 0x18c   :  { %v4314_v36 = vcombine.high %v4292_v5, %v4292_v5  ;;  %v4315_v58 = vcombine.high %v4299_v8, %v4299_v8  ;;  %v4321_v63 = vrot.slane %v4292_v5, %v6194_v13  ;;  %v4325_v43 = vrot.slane %v4292_v5, %v6197_v14 }
 0x18d   :  { %v4316_v12 = vcombine.high %v4306_v7, %v4306_v7  ;;  %v4317_v48 = vcombine.high %v4313_v11, %v4313_v11  ;;  %v4329_v16 = vrot.slane %v4306_v7, %v6194_v13  ;;  %v4333_v17 = vrot.slane %v4306_v7, %v6197_v14 }
 0x18e   :  { %v4337_v28 = vrot.slane %v4314_v36, %v6194_v13  ;;  %v4341_v31 = vrot.slane %v4314_v36, %v6197_v14  ;;  %v4353_v29 = vrot.slane %v4299_v8, %v6194_v13  ;;  %v4357_v32 = vrot.slane %v4299_v8, %v6197_v14 }
 0x18f   :  { %v4345_v25 = vrot.slane %v4316_v12, %v6194_v13  ;;  %v4349_v45 = vrot.slane %v4316_v12, %v6197_v14  ;;  %v4361_v33 = vrot.slane %v4313_v11, %v6194_v13  ;;  %v4365_v30 = vrot.slane %v4313_v11, %v6197_v14 }
 0x190   :  { %v4369_v59 = vrot.slane %v4315_v58, %v6194_v13  ;;  %v4373_v57 = vrot.slane %v4315_v58, %v6197_v14  ;;  %v4377_v42 = vrot.slane %v4317_v48, %v6194_v13  ;;  %v4398_v21 = vmul.f32 %v8646_v37, %v4321_v63 }
 0x191   :  { %v4399_v24 = vmul.f32 %v8651_v26, %v4325_v43  ;;  %v4400_v2 = vmul.f32 %v8646_v37, %v4329_v16  ;;  %v4381_v47 = vrot.slane %v4317_v48, %v6197_v14  ;;  %v4401_v40 = vmul.f32 %v8651_v26, %v4333_v17 }
 0x192   :  { %v4402_v3 = vmul.f32 %v8646_v37, %v4337_v28  ;;  %v4403_v0 = vmul.f32 %v8651_v26, %v4341_v31  ;;  %v4404_v1 = vmul.f32 %v8646_v37, %v4345_v25  ;;  %v4405_v52 = vmul.f32 %v8651_v26, %v4349_v45 }
 0x193   :  { %v4406_v53 = vmul.f32 %v8646_v37, %v4353_v29  ;;  %v4407_v55 = vmul.f32 %v8651_v26, %v4357_v32  ;;  %v4408_v60 = vmul.f32 %v8646_v37, %v4361_v33  ;;  %v4409_v61 = vmul.f32 %v8651_v26, %v4365_v30 }
 0x194   :  { %v4410_v50 = vmul.f32 %v8646_v37, %v4369_v59  ;;  %v4411_v5 = vmul.f32 %v8651_v26, %v4373_v57  ;;  %v4412_v8 = vmul.f32 %v8646_v37, %v4377_v42  ;;  %v4414_v7 = vadd.f32 %v4398_v21, %v8731_v34 }
 0x195   :  { %v4415_v11 = vadd.f32 %v4399_v24, %v8734_v46  ;;  %v4416_v36 = vadd.f32 %v4400_v2, %v8737_v9  ;;  %v4413_v58 = vmul.f32 %v8651_v26, %v4381_v47  ;;  %v4417_v63 = vadd.f32 %v4401_v40, %v8740_v20 }
 0x196   :  { %v4418_v12 = vadd.f32 %v4402_v3, %v8743_v44  ;;  %v4419_v48 = vadd.f32 %v4403_v0, %v8746_v18  ;;  %v4420_v43 = vadd.f32 %v4404_v1, %v8749_v22  ;;  %v4421_v16 = vadd.f32 %v4405_v52, %v8752_v23 }
 0x197   :  { %v4422_v37 = vadd.f32 %v4406_v53, %v8755_v56  ;;  %v4423_v34 = vadd.f32 %v4407_v55, %v8758_v62  ;;  %v4424_v46 = vadd.f32 %v4408_v60, %v8771_v4  ;;  %v4425_v9 = vadd.f32 %v4409_v61, %v8774_v51 }
 0x198   :  { %v4426_v26 = vadd.f32 %v4410_v50, %v8777_v27  ;;  %v4427_v20 = vadd.f32 %v4411_v5, %v8780_v54  ;;  %v4428_v44 = vadd.f32 %v4412_v8, %v8783_v15  ;;  %v8849_v17 = vmul.f32 -0.01, %v4414_v7 }
 0x199   :  { %v8851_v18 = vmul.f32 -0.01, %v4415_v11  ;;  %v8853_v22 = vmul.f32 -0.01, %v4416_v36  ;;  %v8855_v23 = vmul.f32 -0.01, %v4417_v63  ;;  %v4448_v62 = vadd.f32 %v8799_v35, %v8763_v49 }
 0x19a   :  { %v8857_v56 = vmul.f32 -0.01, %v4418_v12  ;;  %v4449_v4 = vadd.f32 %v8806_v19, %v8768_v41  ;;  %v8863_v51 = vmul.f32 -0.01, %v4419_v48  ;;  %v8865_v27 = vmul.f32 -0.01, %v4420_v43 }
 0x19b   :  { %v8867_v54 = vmul.f32 -0.01, %v4421_v16  ;;  %v4458_v15 = vmul.f32 %v4453_v39, %v8849_v17  ;;  %v8873_v28 = vmul.f32 -0.01, %v4422_v37  ;;  %v8875_v31 = vmul.f32 -0.01, %v4423_v34 }
 0x19c   :  { %v8877_v25 = vmul.f32 -0.01, %v4424_v46  ;;  %v4459_v45 = vmul.f32 %v4457_v38, %v8851_v18  ;;  %v4429_v29 = vadd.f32 %v4413_v58, %v8787_v10  ;;  %v8884_v32 = vmul.f32 -0.01, %v4425_v9 }
 0x19d   :  { %v8886_v33 = vmul.f32 -0.01, %v4426_v26  ;;  %v8888_v30 = vmul.f32 -0.01, %v4427_v20  ;;  %v4460_v39 = vadd.f32 %v4458_v15, %v4448_v62  ;;  %v4465_v57 = vrot.slane %v8763_v49, %v6197_v14 }
 0x19e   :  { %v4461_v59 = vadd.f32 %v4459_v45, %v4449_v4  ;;  %v4469_v42 = vrot.slane %v8768_v41, %v6197_v14  ;;  %v8895_v21 = vsub.s32 2, %v6174_v6  ;;  %v8898_v38 = vsub.s32 3, %v6174_v6 }
 0x19f   :  { %v8901_v10 = vsub.s32 4, %v6174_v6  ;;  %v8904_v24 = vsub.s32 5, %v6174_v6  ;;  %v4470_v2 = vmul.f32 %v4465_v57, %v8853_v22  ;;  %v8909_v40 = vsub.s32 6, %v6174_v6 }
 0x1a0   :  { %v4471_v47 = vmul.f32 %v4469_v42, %v8855_v23  ;;  %v8912_v3 = vsub.s32 7, %v6174_v6  ;;  %v4477_v0 = vrot.slane %v8763_v49, %v8895_v21  ;;  %v4481_v1 = vrot.slane %v8768_v41, %v8895_v21 }
 0x1a1   :  { %v4489_v52 = vrot.slane %v8763_v49, %v8898_v38  ;;  %v4493_v53 = vrot.slane %v8768_v41, %v8898_v38  ;;  %v4472_v55 = vadd.f32 %v4470_v2, %v4460_v39  ;;  %v4501_v61 = vrot.slane %v8763_v49, %v8901_v10 }
 0x1a2   :  { %v4473_v60 = vadd.f32 %v4471_v47, %v4461_v59  ;;  %v4505_v6 = vrot.slane %v8768_v41, %v8901_v10  ;;  %v4482_v50 = vmul.f32 %v4477_v0, %v8857_v56  ;;  %v4483_v5 = vmul.f32 %v4481_v1, %v8863_v51 }
 0x1a3   :  { %v4494_v8 = vmul.f32 %v4489_v52, %v8865_v27  ;;  %v4495_v7 = vmul.f32 %v4493_v53, %v8867_v54  ;;  %v4506_v11 = vmul.f32 %v4501_v61, %v8873_v28  ;;  %v4513_v58 = vrot.slane %v8763_v49, %v8904_v24 }
 0x1a4   :  { %v4507_v36 = vmul.f32 %v4505_v6, %v8875_v31  ;;  %v4517_v63 = vrot.slane %v8768_v41, %v8904_v24  ;;  %v4484_v12 = vadd.f32 %v4482_v50, %v4472_v55  ;;  %v4485_v48 = vadd.f32 %v4483_v5, %v4473_v60 }
 0x1a5   :  { %v4525_v43 = vrot.slane %v8763_v49, %v8909_v40  ;;  %v4529_v16 = vrot.slane %v8768_v41, %v8909_v40  ;;  %v8940_v37 = vmul.f32 -0.01, %v4428_v44  ;;  %v8942_v34 = vmul.f32 -0.01, %v4429_v29 }
 0x1a6   :  { %v4518_v46 = vmul.f32 %v4513_v58, %v8877_v25  ;;  %v4519_v9 = vmul.f32 %v4517_v63, %v8884_v32  ;;  %v4496_v26 = vadd.f32 %v4494_v8, %v4484_v12  ;;  %v4497_v20 = vadd.f32 %v4495_v7, %v4485_v48 }
 0x1a7   :  { %v4537_v62 = vrot.slane %v8763_v49, %v8912_v3  ;;  %v4541_v4 = vrot.slane %v8768_v41, %v8912_v3  ;;  %v4530_v39 = vmul.f32 %v4525_v43, %v8886_v33  ;;  %v4531_v44 = vmul.f32 %v4529_v16, %v8888_v30 }
 0x1a8   :  { %v4508_v15 = vadd.f32 %v4506_v11, %v4496_v26  ;;  %v4509_v45 = vadd.f32 %v4507_v36, %v4497_v20 }
 0x1a9   :  { %v4542_v57 = vmul.f32 %v4537_v62, %v8940_v37  ;;  %v4543_v42 = vmul.f32 %v4541_v4, %v8942_v34 }
 0x1aa   :  { %v4520_v29 = vadd.f32 %v4518_v46, %v4508_v15  ;;  %v4521_v59 = vadd.f32 %v4519_v9, %v4509_v45 }
 0x1ac   :  { %v4532_v2 = vadd.f32 %v4530_v39, %v4520_v29  ;;  %v4533_v47 = vadd.f32 %v4531_v44, %v4521_v59 }
 0x1ae   :  { %v4544_v0 = vadd.f32 %v4542_v57, %v4532_v2  ;;  %v4545_v1 = vadd.f32 %v4543_v42, %v4533_v47 }
 0x1b0   :  { %v4546_v49 = vadd.f32 %v4544_v0, %v8799_v35  ;;  %v4547_v41 = vadd.f32 %v4545_v1, %v8806_v19  ;;  %v4551_v52 = vrot.slane %v4544_v0, %v6194_v13  ;;  %v4555_v53 = vrot.slane %v4545_v1, %v6194_v13 }
 0x1b1   :  { %v4563_v55 = vrot.slane %v4544_v0, %v6197_v14  ;;  %v4567_v60 = vrot.slane %v4545_v1, %v6197_v14  ;;  %v4575_v61 = vrot.slane %v4544_v0, %v8895_v21  ;;  %v4579_v6 = vrot.slane %v4545_v1, %v8895_v21 }
 0x1b2   :  { %v4556_v50 = vmul.f32 %v4551_v52, %v8849_v17  ;;  %v4557_v5 = vmul.f32 %v4555_v53, %v8851_v18  ;;  %v4587_v8 = vrot.slane %v4544_v0, %v8898_v38  ;;  %v4591_v7 = vrot.slane %v4545_v1, %v8898_v38 }
 0x1b3   :  { %v4568_v11 = vmul.f32 %v4563_v55, %v8853_v22  ;;  %v4569_v36 = vmul.f32 %v4567_v60, %v8855_v23  ;;  %v4580_v12 = vmul.f32 %v4575_v61, %v8857_v56  ;;  %v4581_v48 = vmul.f32 %v4579_v6, %v8863_v51 }
 0x1b4   :  { %v4558_v58 = vadd.f32 %v4556_v50, %v4546_v49  ;;  %v4559_v63 = vadd.f32 %v4557_v5, %v4547_v41  ;;  %v4599_v43 = vrot.slane %v4544_v0, %v8901_v10  ;;  %v4603_v16 = vrot.slane %v4545_v1, %v8901_v10 }
 0x1b5   :  { %v4611_v46 = vrot.slane %v4544_v0, %v8904_v24  ;;  %v4615_v9 = vrot.slane %v4545_v1, %v8904_v24  ;;  %v4592_v62 = vmul.f32 %v4587_v8, %v8865_v27  ;;  %v4593_v4 = vmul.f32 %v4591_v7, %v8867_v54 }
 0x1b6   :  { %v4570_v26 = vadd.f32 %v4568_v11, %v4558_v58  ;;  %v4571_v20 = vadd.f32 %v4569_v36, %v4559_v63  ;;  %v4623_v15 = vrot.slane %v4544_v0, %v8909_v40  ;;  %v4627_v45 = vrot.slane %v4545_v1, %v8909_v40 }
 0x1b7   :  { %v4604_v29 = vmul.f32 %v4599_v43, %v8873_v28  ;;  %v4605_v59 = vmul.f32 %v4603_v16, %v8875_v31  ;;  %v4616_v57 = vmul.f32 %v4611_v46, %v8877_v25  ;;  %v4617_v42 = vmul.f32 %v4615_v9, %v8884_v32 }
 0x1b8   :  { %v4582_v39 = vadd.f32 %v4580_v12, %v4570_v26  ;;  %v4583_v44 = vadd.f32 %v4581_v48, %v4571_v20  ;;  %v4635_v49 = vrot.slane %v4544_v0, %v8912_v3  ;;  %v4639_v41 = vrot.slane %v4545_v1, %v8912_v3 }
 0x1b9   :  { %v4628_v55 = vmul.f32 %v4623_v15, %v8886_v33  ;;  %v4629_v60 = vmul.f32 %v4627_v45, %v8888_v30 }
 0x1ba   :  { %v4594_v2 = vadd.f32 %v4592_v62, %v4582_v39  ;;  %v4595_v47 = vadd.f32 %v4593_v4, %v4583_v44  ;;  %v4640_v50 = vmul.f32 %v4635_v49, %v8940_v37  ;;  %v4641_v5 = vmul.f32 %v4639_v41, %v8942_v34 }
 0x1bc   :  { %v4606_v52 = vadd.f32 %v4604_v29, %v4594_v2  ;;  %v4607_v53 = vadd.f32 %v4605_v59, %v4595_v47 }
 0x1be   :  { %v4618_v61 = vadd.f32 %v4616_v57, %v4606_v52  ;;  %v4619_v6 = vadd.f32 %v4617_v42, %v4607_v53 }
 0x1c0   :  { %v4630_v8 = vadd.f32 %v4628_v55, %v4618_v61  ;;  %v4631_v7 = vadd.f32 %v4629_v60, %v4619_v6 }
 0x1c2   :  { %v4642_v11 = vadd.f32 %v4640_v50, %v4630_v8  ;;  %v4643_v36 = vadd.f32 %v4641_v5, %v4631_v7 }
 0x1c4   :  { %v4644_v0 = vadd.f32 %v4642_v11, %v8799_v35  ;;  %v4645_v1 = vadd.f32 %v4643_v36, %v8806_v19  ;;  %v4649_v58 = vrot.slane %v4642_v11, %v6194_v13  ;;  %v4653_v63 = vrot.slane %v4643_v36, %v6194_v13 }
 0x1c5   :  { %v4661_v12 = vrot.slane %v4642_v11, %v6197_v14  ;;  %v4665_v48 = vrot.slane %v4643_v36, %v6197_v14  ;;  %v4673_v43 = vrot.slane %v4642_v11, %v8895_v21  ;;  %v4677_v16 = vrot.slane %v4643_v36, %v8895_v21 }
 0x1c6   :  { %v4654_v46 = vmul.f32 %v4649_v58, %v8849_v17  ;;  %v4655_v9 = vmul.f32 %v4653_v63, %v8851_v18  ;;  %v4685_v26 = vrot.slane %v4642_v11, %v8898_v38  ;;  %v4689_v20 = vrot.slane %v4643_v36, %v8898_v38 }
 0x1c7   :  { %v4666_v62 = vmul.f32 %v4661_v12, %v8853_v22  ;;  %v4667_v4 = vmul.f32 %v4665_v48, %v8855_v23  ;;  %v4678_v39 = vmul.f32 %v4673_v43, %v8857_v56  ;;  %v4679_v44 = vmul.f32 %v4677_v16, %v8863_v51 }
 0x1c8   :  { %v4656_v15 = vadd.f32 %v4654_v46, %v4644_v0  ;;  %v4657_v45 = vadd.f32 %v4655_v9, %v4645_v1  ;;  %v4697_v29 = vrot.slane %v4642_v11, %v8901_v10  ;;  %v4701_v59 = vrot.slane %v4643_v36, %v8901_v10 }
 0x1c9   :  { %v4709_v57 = vrot.slane %v4642_v11, %v8904_v24  ;;  %v4713_v42 = vrot.slane %v4643_v36, %v8904_v24  ;;  %v4690_v49 = vmul.f32 %v4685_v26, %v8865_v27  ;;  %v4691_v41 = vmul.f32 %v4689_v20, %v8867_v54 }
 0x1ca   :  { %v4668_v2 = vadd.f32 %v4666_v62, %v4656_v15  ;;  %v4669_v47 = vadd.f32 %v4667_v4, %v4657_v45  ;;  %v4721_v52 = vrot.slane %v4642_v11, %v8909_v40  ;;  %v4725_v53 = vrot.slane %v4643_v36, %v8909_v40 }
 0x1cb   :  { %v4702_v61 = vmul.f32 %v4697_v29, %v8873_v28  ;;  %v4703_v6 = vmul.f32 %v4701_v59, %v8875_v31  ;;  %v4714_v50 = vmul.f32 %v4709_v57, %v8877_v25  ;;  %v4715_v5 = vmul.f32 %v4713_v42, %v8884_v32 }
 0x1cc   :  { %v4680_v55 = vadd.f32 %v4678_v39, %v4668_v2  ;;  %v4681_v60 = vadd.f32 %v4679_v44, %v4669_v47  ;;  %v4733_v0 = vrot.slane %v4642_v11, %v8912_v3  ;;  %v4737_v1 = vrot.slane %v4643_v36, %v8912_v3 }
 0x1cd   :  { %v4726_v12 = vmul.f32 %v4721_v52, %v8886_v33  ;;  %v4727_v48 = vmul.f32 %v4725_v53, %v8888_v30 }
 0x1ce   :  { %v4692_v8 = vadd.f32 %v4690_v49, %v4680_v55  ;;  %v4693_v7 = vadd.f32 %v4691_v41, %v4681_v60  ;;  %v4738_v46 = vmul.f32 %v4733_v0, %v8940_v37  ;;  %v4739_v9 = vmul.f32 %v4737_v1, %v8942_v34 }
 0x1d0   :  { %v4704_v58 = vadd.f32 %v4702_v61, %v4692_v8  ;;  %v4705_v63 = vadd.f32 %v4703_v6, %v4693_v7 }
 0x1d2   :  { %v4716_v43 = vadd.f32 %v4714_v50, %v4704_v58  ;;  %v4717_v16 = vadd.f32 %v4715_v5, %v4705_v63 }
 0x1d4   :  { %v4728_v26 = vadd.f32 %v4726_v12, %v4716_v43  ;;  %v4729_v20 = vadd.f32 %v4727_v48, %v4717_v16 }
 0x1d6   :  { %v4740_v62 = vadd.f32 %v4738_v46, %v4728_v26  ;;  %v4741_v4 = vadd.f32 %v4739_v9, %v4729_v20 }
 0x1d8   :  { %v4742_v11 = vadd.f32 %v4740_v62, %v8799_v35  ;;  %v4743_v36 = vadd.f32 %v4741_v4, %v8806_v19  ;;  %v4747_v15 = vrot.slane %v4740_v62, %v6194_v13  ;;  %v4751_v45 = vrot.slane %v4741_v4, %v6194_v13 }
 0x1d9   :  { %v4759_v39 = vrot.slane %v4740_v62, %v6197_v14  ;;  %v4763_v44 = vrot.slane %v4741_v4, %v6197_v14  ;;  %v4771_v29 = vrot.slane %v4740_v62, %v8895_v21  ;;  %v4775_v59 = vrot.slane %v4741_v4, %v8895_v21 }
 0x1da   :  { %v4752_v57 = vmul.f32 %v4747_v15, %v8849_v17  ;;  %v4753_v42 = vmul.f32 %v4751_v45, %v8851_v18  ;;  %v4783_v2 = vrot.slane %v4740_v62, %v8898_v38  ;;  %v4787_v47 = vrot.slane %v4741_v4, %v8898_v38 }
 0x1db   :  { %v4764_v49 = vmul.f32 %v4759_v39, %v8853_v22  ;;  %v4765_v41 = vmul.f32 %v4763_v44, %v8855_v23  ;;  %v4776_v55 = vmul.f32 %v4771_v29, %v8857_v56  ;;  %v4777_v60 = vmul.f32 %v4775_v59, %v8863_v51 }
 0x1dc   :  { %v4754_v52 = vadd.f32 %v4752_v57, %v4742_v11  ;;  %v4755_v53 = vadd.f32 %v4753_v42, %v4743_v36  ;;  %v4795_v61 = vrot.slane %v4740_v62, %v8901_v10  ;;  %v4799_v6 = vrot.slane %v4741_v4, %v8901_v10 }
 0x1dd   :  { %v4807_v50 = vrot.slane %v4740_v62, %v8904_v24  ;;  %v4811_v5 = vrot.slane %v4741_v4, %v8904_v24  ;;  %v4788_v0 = vmul.f32 %v4783_v2, %v8865_v27  ;;  %v4789_v1 = vmul.f32 %v4787_v47, %v8867_v54 }
 0x1de   :  { %v4766_v8 = vadd.f32 %v4764_v49, %v4754_v52  ;;  %v4767_v7 = vadd.f32 %v4765_v41, %v4755_v53  ;;  %v4819_v58 = vrot.slane %v4740_v62, %v8909_v40  ;;  %v4823_v63 = vrot.slane %v4741_v4, %v8909_v40 }
 0x1df   :  { %v4800_v43 = vmul.f32 %v4795_v61, %v8873_v28  ;;  %v4801_v16 = vmul.f32 %v4799_v6, %v8875_v31  ;;  %v4812_v46 = vmul.f32 %v4807_v50, %v8877_v25  ;;  %v4813_v9 = vmul.f32 %v4811_v5, %v8884_v32 }
 0x1e0   :  { %v4778_v12 = vadd.f32 %v4776_v55, %v4766_v8  ;;  %v4779_v48 = vadd.f32 %v4777_v60, %v4767_v7  ;;  %v4831_v11 = vrot.slane %v4740_v62, %v8912_v3  ;;  %v4835_v36 = vrot.slane %v4741_v4, %v8912_v3 }
 0x1e1   :  { %v4824_v39 = vmul.f32 %v4819_v58, %v8886_v33  ;;  %v4825_v44 = vmul.f32 %v4823_v63, %v8888_v30 }
 0x1e2   :  { %v4790_v26 = vadd.f32 %v4788_v0, %v4778_v12  ;;  %v4791_v20 = vadd.f32 %v4789_v1, %v4779_v48  ;;  %v4836_v57 = vmul.f32 %v4831_v11, %v8940_v37  ;;  %v4837_v42 = vmul.f32 %v4835_v36, %v8942_v34 }
 0x1e4   :  { %v4802_v15 = vadd.f32 %v4800_v43, %v4790_v26  ;;  %v4803_v45 = vadd.f32 %v4801_v16, %v4791_v20 }
 0x1e6   :  { %v4814_v29 = vadd.f32 %v4812_v46, %v4802_v15  ;;  %v4815_v59 = vadd.f32 %v4813_v9, %v4803_v45 }
 0x1e8   :  { %v4826_v2 = vadd.f32 %v4824_v39, %v4814_v29  ;;  %v4827_v47 = vadd.f32 %v4825_v44, %v4815_v59 }
 0x1ea   :  { %v4838_v49 = vadd.f32 %v4836_v57, %v4826_v2  ;;  %v4839_v41 = vadd.f32 %v4837_v42, %v4827_v47 }
 0x1ec   :  { %v4840_v62 = vadd.f32 %v4838_v49, %v8799_v35  ;;  %v4841_v4 = vadd.f32 %v4839_v41, %v8806_v19  ;;  %v4845_v52 = vrot.slane %v4838_v49, %v6194_v13  ;;  %v4849_v53 = vrot.slane %v4839_v41, %v6194_v13 }
 0x1ed   :  { %v4857_v55 = vrot.slane %v4838_v49, %v6197_v14  ;;  %v4861_v60 = vrot.slane %v4839_v41, %v6197_v14  ;;  %v4869_v61 = vrot.slane %v4838_v49, %v8895_v21  ;;  %v4873_v6 = vrot.slane %v4839_v41, %v8895_v21 }
 0x1ee   :  { %v4850_v50 = vmul.f32 %v4845_v52, %v8849_v17  ;;  %v4851_v5 = vmul.f32 %v4849_v53, %v8851_v18  ;;  %v4881_v8 = vrot.slane %v4838_v49, %v8898_v38  ;;  %v4885_v7 = vrot.slane %v4839_v41, %v8898_v38 }
 0x1ef   :  { %v4862_v0 = vmul.f32 %v4857_v55, %v8853_v22  ;;  %v4863_v1 = vmul.f32 %v4861_v60, %v8855_v23  ;;  %v4874_v12 = vmul.f32 %v4869_v61, %v8857_v56  ;;  %v4875_v48 = vmul.f32 %v4873_v6, %v8863_v51 }
 0x1f0   :  { %v4852_v58 = vadd.f32 %v4850_v50, %v4840_v62  ;;  %v4853_v63 = vadd.f32 %v4851_v5, %v4841_v4  ;;  %v4893_v43 = vrot.slane %v4838_v49, %v8901_v10  ;;  %v4897_v16 = vrot.slane %v4839_v41, %v8901_v10 }
 0x1f1   :  { %v4905_v46 = vrot.slane %v4838_v49, %v8904_v24  ;;  %v4909_v9 = vrot.slane %v4839_v41, %v8904_v24  ;;  %v4886_v11 = vmul.f32 %v4881_v8, %v8865_v27  ;;  %v4887_v36 = vmul.f32 %v4885_v7, %v8867_v54 }
 0x1f2   :  { %v4864_v26 = vadd.f32 %v4862_v0, %v4852_v58  ;;  %v4865_v20 = vadd.f32 %v4863_v1, %v4853_v63  ;;  %v4917_v15 = vrot.slane %v4838_v49, %v8909_v40  ;;  %v4921_v45 = vrot.slane %v4839_v41, %v8909_v40 }
 0x1f3   :  { %v4898_v29 = vmul.f32 %v4893_v43, %v8873_v28  ;;  %v4899_v59 = vmul.f32 %v4897_v16, %v8875_v31  ;;  %v4910_v57 = vmul.f32 %v4905_v46, %v8877_v25  ;;  %v4911_v42 = vmul.f32 %v4909_v9, %v8884_v32 }
 0x1f4   :  { %v4876_v39 = vadd.f32 %v4874_v12, %v4864_v26  ;;  %v4877_v44 = vadd.f32 %v4875_v48, %v4865_v20  ;;  %v4929_v62 = vrot.slane %v4838_v49, %v8912_v3  ;;  %v4933_v4 = vrot.slane %v4839_v41, %v8912_v3 }
 0x1f5   :  { %v4922_v55 = vmul.f32 %v4917_v15, %v8886_v33  ;;  %v4923_v60 = vmul.f32 %v4921_v45, %v8888_v30 }
 0x1f6   :  { %v4888_v2 = vadd.f32 %v4886_v11, %v4876_v39  ;;  %v4889_v47 = vadd.f32 %v4887_v36, %v4877_v44  ;;  %v4934_v50 = vmul.f32 %v4929_v62, %v8940_v37  ;;  %v4935_v5 = vmul.f32 %v4933_v4, %v8942_v34 }
 0x1f8   :  { %v4900_v52 = vadd.f32 %v4898_v29, %v4888_v2  ;;  %v4901_v53 = vadd.f32 %v4899_v59, %v4889_v47 }
 0x1fa   :  { %v4912_v61 = vadd.f32 %v4910_v57, %v4900_v52  ;;  %v4913_v6 = vadd.f32 %v4911_v42, %v4901_v53 }
 0x1fc   :  { %v4924_v8 = vadd.f32 %v4922_v55, %v4912_v61  ;;  %v4925_v7 = vadd.f32 %v4923_v60, %v4913_v6 }
 0x1fe   :  { %v4936_v0 = vadd.f32 %v4934_v50, %v4924_v8  ;;  %v4937_v1 = vadd.f32 %v4935_v5, %v4925_v7 }
 0x200   :  { %v4938_v49 = vadd.f32 %v4936_v0, %v8799_v35  ;;  %v4939_v41 = vadd.f32 %v4937_v1, %v8806_v19  ;;  %v4943_v58 = vrot.slane %v4936_v0, %v6194_v13  ;;  %v4947_v63 = vrot.slane %v4937_v1, %v6194_v13 }
 0x201   :  { %v4955_v12 = vrot.slane %v4936_v0, %v6197_v14  ;;  %v4959_v48 = vrot.slane %v4937_v1, %v6197_v14  ;;  %v4967_v43 = vrot.slane %v4936_v0, %v8895_v21  ;;  %v4971_v16 = vrot.slane %v4937_v1, %v8895_v21 }
 0x202   :  { %v4948_v46 = vmul.f32 %v4943_v58, %v8849_v17  ;;  %v4949_v9 = vmul.f32 %v4947_v63, %v8851_v18  ;;  %v4979_v26 = vrot.slane %v4936_v0, %v8898_v38  ;;  %v4983_v20 = vrot.slane %v4937_v1, %v8898_v38 }
 0x203   :  { %v4960_v11 = vmul.f32 %v4955_v12, %v8853_v22  ;;  %v4961_v36 = vmul.f32 %v4959_v48, %v8855_v23  ;;  %v4972_v39 = vmul.f32 %v4967_v43, %v8857_v56  ;;  %v4973_v44 = vmul.f32 %v4971_v16, %v8863_v51 }
 0x204   :  { %v4950_v15 = vadd.f32 %v4948_v46, %v4938_v49  ;;  %v4951_v45 = vadd.f32 %v4949_v9, %v4939_v41  ;;  %v4991_v29 = vrot.slane %v4936_v0, %v8901_v10  ;;  %v4995_v59 = vrot.slane %v4937_v1, %v8901_v10 }
 0x205   :  { %v5003_v57 = vrot.slane %v4936_v0, %v8904_v24  ;;  %v5007_v42 = vrot.slane %v4937_v1, %v8904_v24  ;;  %v4984_v62 = vmul.f32 %v4979_v26, %v8865_v27  ;;  %v4985_v4 = vmul.f32 %v4983_v20, %v8867_v54 }
 0x206   :  { %v4962_v2 = vadd.f32 %v4960_v11, %v4950_v15  ;;  %v4963_v47 = vadd.f32 %v4961_v36, %v4951_v45  ;;  %v5015_v52 = vrot.slane %v4936_v0, %v8909_v40  ;;  %v5019_v53 = vrot.slane %v4937_v1, %v8909_v40 }
 0x207   :  { %v4996_v61 = vmul.f32 %v4991_v29, %v8873_v28  ;;  %v4997_v6 = vmul.f32 %v4995_v59, %v8875_v31  ;;  %v5008_v50 = vmul.f32 %v5003_v57, %v8877_v25  ;;  %v5009_v5 = vmul.f32 %v5007_v42, %v8884_v32 }
 0x208   :  { %v4974_v55 = vadd.f32 %v4972_v39, %v4962_v2  ;;  %v4975_v60 = vadd.f32 %v4973_v44, %v4963_v47  ;;  %v5027_v49 = vrot.slane %v4936_v0, %v8912_v3  ;;  %v5031_v41 = vrot.slane %v4937_v1, %v8912_v3 }
 0x209   :  { %v5020_v12 = vmul.f32 %v5015_v52, %v8886_v33  ;;  %v5021_v48 = vmul.f32 %v5019_v53, %v8888_v30 }
 0x20a   :  { %v4986_v8 = vadd.f32 %v4984_v62, %v4974_v55  ;;  %v4987_v7 = vadd.f32 %v4985_v4, %v4975_v60  ;;  %v5032_v46 = vmul.f32 %v5027_v49, %v8940_v37  ;;  %v5033_v9 = vmul.f32 %v5031_v41, %v8942_v34 }
 0x20c   :  { %v4998_v58 = vadd.f32 %v4996_v61, %v4986_v8  ;;  %v4999_v63 = vadd.f32 %v4997_v6, %v4987_v7 }
 0x20e   :  { %v5010_v43 = vadd.f32 %v5008_v50, %v4998_v58  ;;  %v5011_v16 = vadd.f32 %v5009_v5, %v4999_v63 }
 0x210   :  { %v5022_v26 = vadd.f32 %v5020_v12, %v5010_v43  ;;  %v5023_v20 = vadd.f32 %v5021_v48, %v5011_v16 }
 0x212   :  { %v5034_v11 = vadd.f32 %v5032_v46, %v5022_v26  ;;  %v5035_v36 = vadd.f32 %v5033_v9, %v5023_v20 }
 0x214   :  { %v5036_v0 = vadd.f32 %v5034_v11, %v8799_v35  ;;  %v5037_v1 = vadd.f32 %v5035_v36, %v8806_v19  ;;  %v5041_v15 = vrot.slane %v5034_v11, %v6194_v13  ;;  %v5045_v45 = vrot.slane %v5035_v36, %v6194_v13 }
 0x215   :  { %v5053_v39 = vrot.slane %v5034_v11, %v6197_v14  ;;  %v5057_v44 = vrot.slane %v5035_v36, %v6197_v14  ;;  %v5065_v29 = vrot.slane %v5034_v11, %v8895_v21  ;;  %v5069_v59 = vrot.slane %v5035_v36, %v8895_v21 }
 0x216   :  { %v5046_v57 = vmul.f32 %v5041_v15, %v8849_v17  ;;  %v5047_v42 = vmul.f32 %v5045_v45, %v8851_v18  ;;  %v5077_v2 = vrot.slane %v5034_v11, %v8898_v38  ;;  %v5081_v47 = vrot.slane %v5035_v36, %v8898_v38 }
 0x217   :  { %v5058_v62 = vmul.f32 %v5053_v39, %v8853_v22  ;;  %v5059_v4 = vmul.f32 %v5057_v44, %v8855_v23  ;;  %v5070_v55 = vmul.f32 %v5065_v29, %v8857_v56  ;;  %v5071_v60 = vmul.f32 %v5069_v59, %v8863_v51 }
 0x218   :  { %v5048_v52 = vadd.f32 %v5046_v57, %v5036_v0  ;;  %v5049_v53 = vadd.f32 %v5047_v42, %v5037_v1  ;;  %v5089_v61 = vrot.slane %v5034_v11, %v8901_v10  ;;  %v5093_v6 = vrot.slane %v5035_v36, %v8901_v10 }
 0x219   :  { %v5101_v50 = vrot.slane %v5034_v11, %v8904_v24  ;;  %v5105_v5 = vrot.slane %v5035_v36, %v8904_v24  ;;  %v5082_v49 = vmul.f32 %v5077_v2, %v8865_v27  ;;  %v5083_v41 = vmul.f32 %v5081_v47, %v8867_v54 }
 0x21a   :  { %v5060_v8 = vadd.f32 %v5058_v62, %v5048_v52  ;;  %v5061_v7 = vadd.f32 %v5059_v4, %v5049_v53  ;;  %v5113_v58 = vrot.slane %v5034_v11, %v8909_v40  ;;  %v5117_v63 = vrot.slane %v5035_v36, %v8909_v40 }
 0x21b   :  { %v5094_v43 = vmul.f32 %v5089_v61, %v8873_v28  ;;  %v5095_v16 = vmul.f32 %v5093_v6, %v8875_v31  ;;  %v5106_v46 = vmul.f32 %v5101_v50, %v8877_v25  ;;  %v5107_v9 = vmul.f32 %v5105_v5, %v8884_v32 }
 0x21c   :  { %v5072_v12 = vadd.f32 %v5070_v55, %v5060_v8  ;;  %v5073_v48 = vadd.f32 %v5071_v60, %v5061_v7  ;;  %v5125_v0 = vrot.slane %v5034_v11, %v8912_v3  ;;  %v5129_v1 = vrot.slane %v5035_v36, %v8912_v3 }
 0x21d   :  { %v5118_v39 = vmul.f32 %v5113_v58, %v8886_v33  ;;  %v5119_v44 = vmul.f32 %v5117_v63, %v8888_v30 }
 0x21e   :  { %v5084_v26 = vadd.f32 %v5082_v49, %v5072_v12  ;;  %v5085_v20 = vadd.f32 %v5083_v41, %v5073_v48  ;;  %v5130_v57 = vmul.f32 %v5125_v0, %v8940_v37  ;;  %v5131_v42 = vmul.f32 %v5129_v1, %v8942_v34 }
 0x220   :  { %v5096_v15 = vadd.f32 %v5094_v43, %v5084_v26  ;;  %v5097_v45 = vadd.f32 %v5095_v16, %v5085_v20 }
 0x222   :  { %v5108_v29 = vadd.f32 %v5106_v46, %v5096_v15  ;;  %v5109_v59 = vadd.f32 %v5107_v9, %v5097_v45 }
 0x224   :  { %v5120_v2 = vadd.f32 %v5118_v39, %v5108_v29  ;;  %v5121_v47 = vadd.f32 %v5119_v44, %v5109_v59 }
 0x226   :  { %v5132_v62 = vadd.f32 %v5130_v57, %v5120_v2  ;;  %v5133_v4 = vadd.f32 %v5131_v42, %v5121_v47 }
 0x228   :  { %v5134_v11 = vadd.f32 %v5132_v62, %v8799_v35  ;;  %v5135_v36 = vadd.f32 %v5133_v4, %v8806_v19  ;;  %v5139_v52 = vrot.slane %v5132_v62, %v6194_v13  ;;  %v5143_v53 = vrot.slane %v5133_v4, %v6194_v13 }
 0x229   :  { %v5151_v55 = vrot.slane %v5132_v62, %v6197_v14  ;;  %v5155_v60 = vrot.slane %v5133_v4, %v6197_v14  ;;  %v5163_v61 = vrot.slane %v5132_v62, %v8895_v21  ;;  %v5167_v6 = vrot.slane %v5133_v4, %v8895_v21 }
 0x22a   :  { %v5144_v50 = vmul.f32 %v5139_v52, %v8849_v17  ;;  %v5145_v5 = vmul.f32 %v5143_v53, %v8851_v18  ;;  %v5175_v8 = vrot.slane %v5132_v62, %v8898_v38  ;;  %v5179_v7 = vrot.slane %v5133_v4, %v8898_v38 }
 0x22b   :  { %v5156_v49 = vmul.f32 %v5151_v55, %v8853_v22  ;;  %v5157_v41 = vmul.f32 %v5155_v60, %v8855_v23  ;;  %v5168_v12 = vmul.f32 %v5163_v61, %v8857_v56  ;;  %v5169_v48 = vmul.f32 %v5167_v6, %v8863_v51 }
 0x22c   :  { %v5146_v58 = vadd.f32 %v5144_v50, %v5134_v11  ;;  %v5147_v63 = vadd.f32 %v5145_v5, %v5135_v36  ;;  %v5187_v43 = vrot.slane %v5132_v62, %v8901_v10  ;;  %v5191_v16 = vrot.slane %v5133_v4, %v8901_v10 }
 0x22d   :  { %v5199_v46 = vrot.slane %v5132_v62, %v8904_v24  ;;  %v5203_v9 = vrot.slane %v5133_v4, %v8904_v24  ;;  %v5180_v0 = vmul.f32 %v5175_v8, %v8865_v27  ;;  %v5181_v1 = vmul.f32 %v5179_v7, %v8867_v54 }
 0x22e   :  { %v5158_v26 = vadd.f32 %v5156_v49, %v5146_v58  ;;  %v5159_v20 = vadd.f32 %v5157_v41, %v5147_v63  ;;  %v5211_v15 = vrot.slane %v5132_v62, %v8909_v40  ;;  %v5215_v45 = vrot.slane %v5133_v4, %v8909_v40 }
 0x22f   :  { %v5192_v29 = vmul.f32 %v5187_v43, %v8873_v28  ;;  %v5193_v59 = vmul.f32 %v5191_v16, %v8875_v31  ;;  %v5204_v57 = vmul.f32 %v5199_v46, %v8877_v25  ;;  %v5205_v42 = vmul.f32 %v5203_v9, %v8884_v32 }
 0x230   :  { %v5170_v39 = vadd.f32 %v5168_v12, %v5158_v26  ;;  %v5171_v44 = vadd.f32 %v5169_v48, %v5159_v20  ;;  %v5223_v11 = vrot.slane %v5132_v62, %v8912_v3  ;;  %v5227_v36 = vrot.slane %v5133_v4, %v8912_v3 }
 0x231   :  { %v5216_v55 = vmul.f32 %v5211_v15, %v8886_v33  ;;  %v5217_v60 = vmul.f32 %v5215_v45, %v8888_v30 }
 0x232   :  { %v5182_v2 = vadd.f32 %v5180_v0, %v5170_v39  ;;  %v5183_v47 = vadd.f32 %v5181_v1, %v5171_v44  ;;  %v5228_v50 = vmul.f32 %v5223_v11, %v8940_v37  ;;  %v5229_v5 = vmul.f32 %v5227_v36, %v8942_v34 }
 0x234   :  { %v5194_v52 = vadd.f32 %v5192_v29, %v5182_v2  ;;  %v5195_v53 = vadd.f32 %v5193_v59, %v5183_v47 }
 0x236   :  { %v5206_v61 = vadd.f32 %v5204_v57, %v5194_v52  ;;  %v5207_v6 = vadd.f32 %v5205_v42, %v5195_v53 }
 0x238   :  { %v5218_v8 = vadd.f32 %v5216_v55, %v5206_v61  ;;  %v5219_v7 = vadd.f32 %v5217_v60, %v5207_v6 }
 0x23a   :  { %v5230_v49 = vadd.f32 %v5228_v50, %v5218_v8  ;;  %v5231_v41 = vadd.f32 %v5229_v5, %v5219_v7 }
 0x23c   :  { %v5232_v62 = vadd.f32 %v5230_v49, %v8799_v35  ;;  %v5233_v4 = vadd.f32 %v5231_v41, %v8806_v19  ;;  %v5237_v58 = vrot.slane %v5230_v49, %v6194_v13  ;;  %v5241_v63 = vrot.slane %v5231_v41, %v6194_v13 }
 0x23d   :  { %v5249_v12 = vrot.slane %v5230_v49, %v6197_v14  ;;  %v5253_v48 = vrot.slane %v5231_v41, %v6197_v14  ;;  %v5261_v43 = vrot.slane %v5230_v49, %v8895_v21  ;;  %v5265_v16 = vrot.slane %v5231_v41, %v8895_v21 }
 0x23e   :  { %v5242_v46 = vmul.f32 %v5237_v58, %v8849_v17  ;;  %v5243_v9 = vmul.f32 %v5241_v63, %v8851_v18  ;;  %v5273_v26 = vrot.slane %v5230_v49, %v8898_v38  ;;  %v5277_v20 = vrot.slane %v5231_v41, %v8898_v38 }
 0x23f   :  { %v5254_v0 = vmul.f32 %v5249_v12, %v8853_v22  ;;  %v5255_v1 = vmul.f32 %v5253_v48, %v8855_v23  ;;  %v5266_v39 = vmul.f32 %v5261_v43, %v8857_v56  ;;  %v5267_v44 = vmul.f32 %v5265_v16, %v8863_v51 }
 0x240   :  { %v5244_v15 = vadd.f32 %v5242_v46, %v5232_v62  ;;  %v5245_v45 = vadd.f32 %v5243_v9, %v5233_v4  ;;  %v5285_v29 = vrot.slane %v5230_v49, %v8901_v10  ;;  %v5289_v59 = vrot.slane %v5231_v41, %v8901_v10 }
 0x241   :  { %v5297_v57 = vrot.slane %v5230_v49, %v8904_v24  ;;  %v5301_v42 = vrot.slane %v5231_v41, %v8904_v24  ;;  %v5278_v11 = vmul.f32 %v5273_v26, %v8865_v27  ;;  %v5279_v36 = vmul.f32 %v5277_v20, %v8867_v54 }
 0x242   :  { %v5256_v2 = vadd.f32 %v5254_v0, %v5244_v15  ;;  %v5257_v47 = vadd.f32 %v5255_v1, %v5245_v45  ;;  %v5309_v52 = vrot.slane %v5230_v49, %v8909_v40  ;;  %v5313_v53 = vrot.slane %v5231_v41, %v8909_v40 }
 0x243   :  { %v5290_v61 = vmul.f32 %v5285_v29, %v8873_v28  ;;  %v5291_v6 = vmul.f32 %v5289_v59, %v8875_v31  ;;  %v5302_v50 = vmul.f32 %v5297_v57, %v8877_v25  ;;  %v5303_v5 = vmul.f32 %v5301_v42, %v8884_v32 }
 0x244   :  { %v5268_v55 = vadd.f32 %v5266_v39, %v5256_v2  ;;  %v5269_v60 = vadd.f32 %v5267_v44, %v5257_v47  ;;  %v5321_v62 = vrot.slane %v5230_v49, %v8912_v3  ;;  %v5325_v4 = vrot.slane %v5231_v41, %v8912_v3 }
 0x245   :  { %v5314_v12 = vmul.f32 %v5309_v52, %v8886_v33  ;;  %v5315_v48 = vmul.f32 %v5313_v53, %v8888_v30 }
 0x246   :  { %v5280_v8 = vadd.f32 %v5278_v11, %v5268_v55  ;;  %v5281_v7 = vadd.f32 %v5279_v36, %v5269_v60  ;;  %v5326_v46 = vmul.f32 %v5321_v62, %v8940_v37  ;;  %v5327_v9 = vmul.f32 %v5325_v4, %v8942_v34 }
 0x248   :  { %v5292_v58 = vadd.f32 %v5290_v61, %v5280_v8  ;;  %v5293_v63 = vadd.f32 %v5291_v6, %v5281_v7 }
 0x24a   :  { %v5304_v43 = vadd.f32 %v5302_v50, %v5292_v58  ;;  %v5305_v16 = vadd.f32 %v5303_v5, %v5293_v63 }
 0x24c   :  { %v5316_v26 = vadd.f32 %v5314_v12, %v5304_v43  ;;  %v5317_v20 = vadd.f32 %v5315_v48, %v5305_v16 }
 0x24e   :  { %v5328_v0 = vadd.f32 %v5326_v46, %v5316_v26  ;;  %v5329_v1 = vadd.f32 %v5327_v9, %v5317_v20 }
 0x250   :  { %v5330_v49 = vadd.f32 %v5328_v0, %v8799_v35  ;;  %v5331_v41 = vadd.f32 %v5329_v1, %v8806_v19  ;;  %v5335_v15 = vrot.slane %v5328_v0, %v6194_v13  ;;  %v5339_v45 = vrot.slane %v5329_v1, %v6194_v13 }
 0x251   :  { %v5347_v39 = vrot.slane %v5328_v0, %v6197_v14  ;;  %v5351_v44 = vrot.slane %v5329_v1, %v6197_v14  ;;  %v5359_v29 = vrot.slane %v5328_v0, %v8895_v21  ;;  %v5363_v59 = vrot.slane %v5329_v1, %v8895_v21 }
 0x252   :  { %v5340_v57 = vmul.f32 %v5335_v15, %v8849_v17  ;;  %v5341_v42 = vmul.f32 %v5339_v45, %v8851_v18  ;;  %v5371_v2 = vrot.slane %v5328_v0, %v8898_v38  ;;  %v5375_v47 = vrot.slane %v5329_v1, %v8898_v38 }
 0x253   :  { %v5352_v11 = vmul.f32 %v5347_v39, %v8853_v22  ;;  %v5353_v36 = vmul.f32 %v5351_v44, %v8855_v23  ;;  %v5364_v55 = vmul.f32 %v5359_v29, %v8857_v56  ;;  %v5365_v60 = vmul.f32 %v5363_v59, %v8863_v51 }
 0x254   :  { %v5342_v52 = vadd.f32 %v5340_v57, %v5330_v49  ;;  %v5343_v53 = vadd.f32 %v5341_v42, %v5331_v41  ;;  %v5383_v61 = vrot.slane %v5328_v0, %v8901_v10  ;;  %v5387_v6 = vrot.slane %v5329_v1, %v8901_v10 }
 0x255   :  { %v5395_v50 = vrot.slane %v5328_v0, %v8904_v24  ;;  %v5399_v5 = vrot.slane %v5329_v1, %v8904_v24  ;;  %v5376_v62 = vmul.f32 %v5371_v2, %v8865_v27  ;;  %v5377_v4 = vmul.f32 %v5375_v47, %v8867_v54 }
 0x256   :  { %v5354_v8 = vadd.f32 %v5352_v11, %v5342_v52  ;;  %v5355_v7 = vadd.f32 %v5353_v36, %v5343_v53  ;;  %v5407_v58 = vrot.slane %v5328_v0, %v8909_v40  ;;  %v5411_v63 = vrot.slane %v5329_v1, %v8909_v40 }
 0x257   :  { %v5388_v43 = vmul.f32 %v5383_v61, %v8873_v28  ;;  %v5389_v16 = vmul.f32 %v5387_v6, %v8875_v31  ;;  %v5400_v46 = vmul.f32 %v5395_v50, %v8877_v25  ;;  %v5401_v9 = vmul.f32 %v5399_v5, %v8884_v32 }
 0x258   :  { %v5366_v12 = vadd.f32 %v5364_v55, %v5354_v8  ;;  %v5367_v48 = vadd.f32 %v5365_v60, %v5355_v7  ;;  %v5419_v49 = vrot.slane %v5328_v0, %v8912_v3  ;;  %v5423_v41 = vrot.slane %v5329_v1, %v8912_v3 }
 0x259   :  { %v5412_v39 = vmul.f32 %v5407_v58, %v8886_v33  ;;  %v5413_v44 = vmul.f32 %v5411_v63, %v8888_v30 }
 0x25a   :  { %v5378_v26 = vadd.f32 %v5376_v62, %v5366_v12  ;;  %v5379_v20 = vadd.f32 %v5377_v4, %v5367_v48  ;;  %v5424_v57 = vmul.f32 %v5419_v49, %v8940_v37  ;;  %v5425_v42 = vmul.f32 %v5423_v41, %v8942_v34 }
 0x25c   :  { %v5390_v15 = vadd.f32 %v5388_v43, %v5378_v26  ;;  %v5391_v45 = vadd.f32 %v5389_v16, %v5379_v20 }
 0x25e   :  { %v5402_v29 = vadd.f32 %v5400_v46, %v5390_v15  ;;  %v5403_v59 = vadd.f32 %v5401_v9, %v5391_v45 }
 0x260   :  { %v5414_v2 = vadd.f32 %v5412_v39, %v5402_v29  ;;  %v5415_v47 = vadd.f32 %v5413_v44, %v5403_v59 }
 0x262   :  { %v5426_v11 = vadd.f32 %v5424_v57, %v5414_v2  ;;  %v5427_v36 = vadd.f32 %v5425_v42, %v5415_v47 }
 0x264   :  { %v5428_v0 = vadd.f32 %v5426_v11, %v8799_v35  ;;  %v5429_v1 = vadd.f32 %v5427_v36, %v8806_v19  ;;  %v5433_v52 = vrot.slane %v5426_v11, %v6194_v13  ;;  %v5437_v53 = vrot.slane %v5427_v36, %v6194_v13 }
 0x265   :  { %v5445_v55 = vrot.slane %v5426_v11, %v6197_v14  ;;  %v5449_v60 = vrot.slane %v5427_v36, %v6197_v14  ;;  %v5457_v61 = vrot.slane %v5426_v11, %v8895_v21  ;;  %v5461_v6 = vrot.slane %v5427_v36, %v8895_v21 }
 0x266   :  { %v5438_v50 = vmul.f32 %v5433_v52, %v8849_v17  ;;  %v5439_v5 = vmul.f32 %v5437_v53, %v8851_v18  ;;  %v5469_v8 = vrot.slane %v5426_v11, %v8898_v38  ;;  %v5473_v7 = vrot.slane %v5427_v36, %v8898_v38 }
 0x267   :  { %v5450_v62 = vmul.f32 %v5445_v55, %v8853_v22  ;;  %v5451_v4 = vmul.f32 %v5449_v60, %v8855_v23  ;;  %v5462_v12 = vmul.f32 %v5457_v61, %v8857_v56  ;;  %v5463_v48 = vmul.f32 %v5461_v6, %v8863_v51 }
 0x268   :  { %v5440_v58 = vadd.f32 %v5438_v50, %v5428_v0  ;;  %v5441_v63 = vadd.f32 %v5439_v5, %v5429_v1  ;;  %v5481_v43 = vrot.slane %v5426_v11, %v8901_v10  ;;  %v5485_v16 = vrot.slane %v5427_v36, %v8901_v10 }
 0x269   :  { %v5493_v46 = vrot.slane %v5426_v11, %v8904_v24  ;;  %v5497_v9 = vrot.slane %v5427_v36, %v8904_v24  ;;  %v5474_v49 = vmul.f32 %v5469_v8, %v8865_v27  ;;  %v5475_v41 = vmul.f32 %v5473_v7, %v8867_v54 }
 0x26a   :  { %v5452_v26 = vadd.f32 %v5450_v62, %v5440_v58  ;;  %v5453_v20 = vadd.f32 %v5451_v4, %v5441_v63  ;;  %v5505_v15 = vrot.slane %v5426_v11, %v8909_v40  ;;  %v5509_v45 = vrot.slane %v5427_v36, %v8909_v40 }
 0x26b   :  { %v5486_v29 = vmul.f32 %v5481_v43, %v8873_v28  ;;  %v5487_v59 = vmul.f32 %v5485_v16, %v8875_v31  ;;  %v5498_v57 = vmul.f32 %v5493_v46, %v8877_v25  ;;  %v5499_v42 = vmul.f32 %v5497_v9, %v8884_v32 }
 0x26c   :  { %v5464_v39 = vadd.f32 %v5462_v12, %v5452_v26  ;;  %v5465_v44 = vadd.f32 %v5463_v48, %v5453_v20  ;;  %v5517_v0 = vrot.slane %v5426_v11, %v8912_v3  ;;  %v5521_v1 = vrot.slane %v5427_v36, %v8912_v3 }
 0x26d   :  { %v5510_v55 = vmul.f32 %v5505_v15, %v8886_v33  ;;  %v5511_v60 = vmul.f32 %v5509_v45, %v8888_v30 }
 0x26e   :  { %v5476_v2 = vadd.f32 %v5474_v49, %v5464_v39  ;;  %v5477_v47 = vadd.f32 %v5475_v41, %v5465_v44  ;;  %v5522_v50 = vmul.f32 %v5517_v0, %v8940_v37  ;;  %v5523_v5 = vmul.f32 %v5521_v1, %v8942_v34 }
 0x270   :  { %v5488_v52 = vadd.f32 %v5486_v29, %v5476_v2  ;;  %v5489_v53 = vadd.f32 %v5487_v59, %v5477_v47 }
 0x272   :  { %v5500_v61 = vadd.f32 %v5498_v57, %v5488_v52  ;;  %v5501_v6 = vadd.f32 %v5499_v42, %v5489_v53 }
 0x274   :  { %v5512_v8 = vadd.f32 %v5510_v55, %v5500_v61  ;;  %v5513_v7 = vadd.f32 %v5511_v60, %v5501_v6 }
 0x276   :  { %v5524_v62 = vadd.f32 %v5522_v50, %v5512_v8  ;;  %v5525_v4 = vadd.f32 %v5523_v5, %v5513_v7 }
 0x278   :  { %v5526_v11 = vadd.f32 %v5524_v62, %v8799_v35  ;;  %v5527_v36 = vadd.f32 %v5525_v4, %v8806_v19  ;;  %v5531_v58 = vrot.slane %v5524_v62, %v6194_v13  ;;  %v5535_v63 = vrot.slane %v5525_v4, %v6194_v13 }
 0x279   :  { %v5543_v12 = vrot.slane %v5524_v62, %v6197_v14  ;;  %v5547_v48 = vrot.slane %v5525_v4, %v6197_v14  ;;  %v5555_v43 = vrot.slane %v5524_v62, %v8895_v21  ;;  %v5559_v16 = vrot.slane %v5525_v4, %v8895_v21 }
 0x27a   :  { %v5536_v46 = vmul.f32 %v5531_v58, %v8849_v17  ;;  %v5537_v9 = vmul.f32 %v5535_v63, %v8851_v18  ;;  %v5567_v26 = vrot.slane %v5524_v62, %v8898_v38  ;;  %v5571_v20 = vrot.slane %v5525_v4, %v8898_v38 }
 0x27b   :  { %v5548_v49 = vmul.f32 %v5543_v12, %v8853_v22  ;;  %v5549_v41 = vmul.f32 %v5547_v48, %v8855_v23  ;;  %v5560_v39 = vmul.f32 %v5555_v43, %v8857_v56  ;;  %v5561_v44 = vmul.f32 %v5559_v16, %v8863_v51 }
 0x27c   :  { %v5538_v15 = vadd.f32 %v5536_v46, %v5526_v11  ;;  %v5539_v45 = vadd.f32 %v5537_v9, %v5527_v36  ;;  %v5579_v29 = vrot.slane %v5524_v62, %v8901_v10  ;;  %v5583_v59 = vrot.slane %v5525_v4, %v8901_v10 }
 0x27d   :  { %v5591_v57 = vrot.slane %v5524_v62, %v8904_v24  ;;  %v5595_v42 = vrot.slane %v5525_v4, %v8904_v24  ;;  %v5572_v0 = vmul.f32 %v5567_v26, %v8865_v27  ;;  %v5573_v1 = vmul.f32 %v5571_v20, %v8867_v54 }
 0x27e   :  { %v5550_v2 = vadd.f32 %v5548_v49, %v5538_v15  ;;  %v5551_v47 = vadd.f32 %v5549_v41, %v5539_v45  ;;  %v5603_v52 = vrot.slane %v5524_v62, %v8909_v40  ;;  %v5607_v53 = vrot.slane %v5525_v4, %v8909_v40 }
 0x27f   :  { %v5584_v61 = vmul.f32 %v5579_v29, %v8873_v28  ;;  %v5585_v6 = vmul.f32 %v5583_v59, %v8875_v31  ;;  %v5596_v50 = vmul.f32 %v5591_v57, %v8877_v25  ;;  %v5597_v5 = vmul.f32 %v5595_v42, %v8884_v32 }
 0x280   :  { %v5562_v55 = vadd.f32 %v5560_v39, %v5550_v2  ;;  %v5563_v60 = vadd.f32 %v5561_v44, %v5551_v47  ;;  %v5615_v11 = vrot.slane %v5524_v62, %v8912_v3  ;;  %v5619_v36 = vrot.slane %v5525_v4, %v8912_v3 }
 0x281   :  { %v5608_v12 = vmul.f32 %v5603_v52, %v8886_v33  ;;  %v5609_v48 = vmul.f32 %v5607_v53, %v8888_v30 }
 0x282   :  { %v5574_v8 = vadd.f32 %v5572_v0, %v5562_v55  ;;  %v5575_v7 = vadd.f32 %v5573_v1, %v5563_v60  ;;  %v5620_v46 = vmul.f32 %v5615_v11, %v8940_v37  ;;  %v5621_v9 = vmul.f32 %v5619_v36, %v8942_v34 }
 0x284   :  { %v5586_v58 = vadd.f32 %v5584_v61, %v5574_v8  ;;  %v5587_v63 = vadd.f32 %v5585_v6, %v5575_v7 }
 0x286   :  { %v5598_v43 = vadd.f32 %v5596_v50, %v5586_v58  ;;  %v5599_v16 = vadd.f32 %v5597_v5, %v5587_v63 }
 0x288   :  { %v5610_v26 = vadd.f32 %v5608_v12, %v5598_v43  ;;  %v5611_v20 = vadd.f32 %v5609_v48, %v5599_v16 }
 0x28a   :  { %v5622_v49 = vadd.f32 %v5620_v46, %v5610_v26  ;;  %v5623_v41 = vadd.f32 %v5621_v9, %v5611_v20 }
 0x28c   :  { %v5624_v62 = vadd.f32 %v5622_v49, %v8799_v35  ;;  %v5625_v4 = vadd.f32 %v5623_v41, %v8806_v19  ;;  %v5629_v15 = vrot.slane %v5622_v49, %v6194_v13  ;;  %v5633_v45 = vrot.slane %v5623_v41, %v6194_v13 }
 0x28d   :  { %v5641_v39 = vrot.slane %v5622_v49, %v6197_v14  ;;  %v5645_v44 = vrot.slane %v5623_v41, %v6197_v14  ;;  %v5653_v29 = vrot.slane %v5622_v49, %v8895_v21  ;;  %v5657_v59 = vrot.slane %v5623_v41, %v8895_v21 }
 0x28e   :  { %v5634_v57 = vmul.f32 %v5629_v15, %v8849_v17  ;;  %v5635_v42 = vmul.f32 %v5633_v45, %v8851_v18  ;;  %v5665_v2 = vrot.slane %v5622_v49, %v8898_v38  ;;  %v5669_v47 = vrot.slane %v5623_v41, %v8898_v38 }
 0x28f   :  { %v5646_v0 = vmul.f32 %v5641_v39, %v8853_v22  ;;  %v5647_v1 = vmul.f32 %v5645_v44, %v8855_v23  ;;  %v5658_v55 = vmul.f32 %v5653_v29, %v8857_v56  ;;  %v5659_v60 = vmul.f32 %v5657_v59, %v8863_v51 }
 0x290   :  { %v5636_v52 = vadd.f32 %v5634_v57, %v5624_v62  ;;  %v5637_v53 = vadd.f32 %v5635_v42, %v5625_v4  ;;  %v5677_v61 = vrot.slane %v5622_v49, %v8901_v10  ;;  %v5681_v6 = vrot.slane %v5623_v41, %v8901_v10 }
 0x291   :  { %v5689_v50 = vrot.slane %v5622_v49, %v8904_v24  ;;  %v5693_v5 = vrot.slane %v5623_v41, %v8904_v24  ;;  %v5670_v11 = vmul.f32 %v5665_v2, %v8865_v27  ;;  %v5671_v36 = vmul.f32 %v5669_v47, %v8867_v54 }
 0x292   :  { %v5648_v8 = vadd.f32 %v5646_v0, %v5636_v52  ;;  %v5649_v7 = vadd.f32 %v5647_v1, %v5637_v53  ;;  %v5701_v58 = vrot.slane %v5622_v49, %v8909_v40  ;;  %v5705_v63 = vrot.slane %v5623_v41, %v8909_v40 }
 0x293   :  { %v5682_v43 = vmul.f32 %v5677_v61, %v8873_v28  ;;  %v5683_v16 = vmul.f32 %v5681_v6, %v8875_v31  ;;  %v5694_v46 = vmul.f32 %v5689_v50, %v8877_v25  ;;  %v5695_v9 = vmul.f32 %v5693_v5, %v8884_v32 }
 0x294   :  { %v5660_v12 = vadd.f32 %v5658_v55, %v5648_v8  ;;  %v5661_v48 = vadd.f32 %v5659_v60, %v5649_v7  ;;  %v5713_v62 = vrot.slane %v5622_v49, %v8912_v3  ;;  %v5717_v4 = vrot.slane %v5623_v41, %v8912_v3 }
 0x295   :  { %v5706_v39 = vmul.f32 %v5701_v58, %v8886_v33  ;;  %v5707_v44 = vmul.f32 %v5705_v63, %v8888_v30 }
 0x296   :  { %v5672_v26 = vadd.f32 %v5670_v11, %v5660_v12  ;;  %v5673_v20 = vadd.f32 %v5671_v36, %v5661_v48  ;;  %v5718_v57 = vmul.f32 %v5713_v62, %v8940_v37  ;;  %v5719_v42 = vmul.f32 %v5717_v4, %v8942_v34 }
 0x298   :  { %v5684_v15 = vadd.f32 %v5682_v43, %v5672_v26  ;;  %v5685_v45 = vadd.f32 %v5683_v16, %v5673_v20 }
 0x29a   :  { %v5696_v29 = vadd.f32 %v5694_v46, %v5684_v15  ;;  %v5697_v59 = vadd.f32 %v5695_v9, %v5685_v45 }
 0x29c   :  { %v5708_v2 = vadd.f32 %v5706_v39, %v5696_v29  ;;  %v5709_v47 = vadd.f32 %v5707_v44, %v5697_v59 }
 0x29e   :  { %v5720_v0 = vadd.f32 %v5718_v57, %v5708_v2  ;;  %v5721_v1 = vadd.f32 %v5719_v42, %v5709_v47 }
 0x2a0   :  { %v5722_v49 = vadd.f32 %v5720_v0, %v8799_v35  ;;  %v5723_v41 = vadd.f32 %v5721_v1, %v8806_v19  ;;  %v5727_v52 = vrot.slane %v5720_v0, %v6194_v13  ;;  %v5731_v53 = vrot.slane %v5721_v1, %v6194_v13 }
 0x2a1   :  { %v5739_v55 = vrot.slane %v5720_v0, %v6197_v14  ;;  %v5743_v60 = vrot.slane %v5721_v1, %v6197_v14  ;;  %v5751_v61 = vrot.slane %v5720_v0, %v8895_v21  ;;  %v5755_v6 = vrot.slane %v5721_v1, %v8895_v21 }
 0x2a2   :  { %v5732_v50 = vmul.f32 %v5727_v52, %v8849_v17  ;;  %v5733_v5 = vmul.f32 %v5731_v53, %v8851_v18  ;;  %v5763_v8 = vrot.slane %v5720_v0, %v8898_v38  ;;  %v5767_v7 = vrot.slane %v5721_v1, %v8898_v38 }
 0x2a3   :  { %v5744_v11 = vmul.f32 %v5739_v55, %v8853_v22  ;;  %v5745_v36 = vmul.f32 %v5743_v60, %v8855_v23  ;;  %v5756_v12 = vmul.f32 %v5751_v61, %v8857_v56  ;;  %v5757_v48 = vmul.f32 %v5755_v6, %v8863_v51 }
 0x2a4   :  { %v5734_v58 = vadd.f32 %v5732_v50, %v5722_v49  ;;  %v5735_v63 = vadd.f32 %v5733_v5, %v5723_v41  ;;  %v5775_v43 = vrot.slane %v5720_v0, %v8901_v10  ;;  %v5779_v16 = vrot.slane %v5721_v1, %v8901_v10 }
 0x2a5   :  { %v5787_v46 = vrot.slane %v5720_v0, %v8904_v24  ;;  %v5791_v9 = vrot.slane %v5721_v1, %v8904_v24  ;;  %v5768_v62 = vmul.f32 %v5763_v8, %v8865_v27  ;;  %v5769_v4 = vmul.f32 %v5767_v7, %v8867_v54 }
 0x2a6   :  { %v5746_v26 = vadd.f32 %v5744_v11, %v5734_v58  ;;  %v5747_v20 = vadd.f32 %v5745_v36, %v5735_v63  ;;  %v5799_v15 = vrot.slane %v5720_v0, %v8909_v40  ;;  %v5803_v45 = vrot.slane %v5721_v1, %v8909_v40 }
 0x2a7   :  { %v5780_v29 = vmul.f32 %v5775_v43, %v8873_v28  ;;  %v5781_v59 = vmul.f32 %v5779_v16, %v8875_v31  ;;  %v5792_v57 = vmul.f32 %v5787_v46, %v8877_v25  ;;  %v5793_v42 = vmul.f32 %v5791_v9, %v8884_v32 }
 0x2a8   :  { %v5758_v39 = vadd.f32 %v5756_v12, %v5746_v26  ;;  %v5759_v44 = vadd.f32 %v5757_v48, %v5747_v20  ;;  %v5811_v49 = vrot.slane %v5720_v0, %v8912_v3  ;;  %v5815_v41 = vrot.slane %v5721_v1, %v8912_v3 }
 0x2a9   :  { %v5804_v55 = vmul.f32 %v5799_v15, %v8886_v33  ;;  %v5805_v60 = vmul.f32 %v5803_v45, %v8888_v30 }
 0x2aa   :  { %v5770_v2 = vadd.f32 %v5768_v62, %v5758_v39  ;;  %v5771_v47 = vadd.f32 %v5769_v4, %v5759_v44  ;;  %v5816_v50 = vmul.f32 %v5811_v49, %v8940_v37  ;;  %v5817_v5 = vmul.f32 %v5815_v41, %v8942_v34 }
 0x2ac   :  { %v5782_v52 = vadd.f32 %v5780_v29, %v5770_v2  ;;  %v5783_v53 = vadd.f32 %v5781_v59, %v5771_v47 }
 0x2ae   :  { %v5794_v61 = vadd.f32 %v5792_v57, %v5782_v52  ;;  %v5795_v6 = vadd.f32 %v5793_v42, %v5783_v53 }
 0x2b0   :  { %v5806_v8 = vadd.f32 %v5804_v55, %v5794_v61  ;;  %v5807_v7 = vadd.f32 %v5805_v60, %v5795_v6 }
 0x2b2   :  { %v5818_v11 = vadd.f32 %v5816_v50, %v5806_v8  ;;  %v5819_v36 = vadd.f32 %v5817_v5, %v5807_v7 }
 0x2b4   :  { %v5820_v0 = vadd.f32 %v5818_v11, %v8799_v35  ;;  %v5821_v1 = vadd.f32 %v5819_v36, %v8806_v19  ;;  %v5825_v58 = vrot.slane %v5818_v11, %v6194_v13  ;;  %v5829_v63 = vrot.slane %v5819_v36, %v6194_v13 }
 0x2b5   :  { %v5837_v12 = vrot.slane %v5818_v11, %v6197_v14  ;;  %v5841_v48 = vrot.slane %v5819_v36, %v6197_v14  ;;  %v5849_v43 = vrot.slane %v5818_v11, %v8895_v21  ;;  %v5853_v16 = vrot.slane %v5819_v36, %v8895_v21 }
 0x2b6   :  { %v5830_v46 = vmul.f32 %v5825_v58, %v8849_v17  ;;  %v5831_v9 = vmul.f32 %v5829_v63, %v8851_v18  ;;  %v5861_v26 = vrot.slane %v5818_v11, %v8898_v38  ;;  %v5865_v20 = vrot.slane %v5819_v36, %v8898_v38 }
 0x2b7   :  { %v5842_v62 = vmul.f32 %v5837_v12, %v8853_v22  ;;  %v5843_v4 = vmul.f32 %v5841_v48, %v8855_v23  ;;  %v5854_v39 = vmul.f32 %v5849_v43, %v8857_v56  ;;  %v5855_v44 = vmul.f32 %v5853_v16, %v8863_v51 }
 0x2b8   :  { %v5832_v15 = vadd.f32 %v5830_v46, %v5820_v0  ;;  %v5833_v45 = vadd.f32 %v5831_v9, %v5821_v1  ;;  %v5873_v29 = vrot.slane %v5818_v11, %v8901_v10  ;;  %v5877_v59 = vrot.slane %v5819_v36, %v8901_v10 }
 0x2b9   :  { %v5885_v57 = vrot.slane %v5818_v11, %v8904_v24  ;;  %v5889_v42 = vrot.slane %v5819_v36, %v8904_v24  ;;  %v5866_v49 = vmul.f32 %v5861_v26, %v8865_v27  ;;  %v5867_v41 = vmul.f32 %v5865_v20, %v8867_v54 }
 0x2ba   :  { %v5844_v2 = vadd.f32 %v5842_v62, %v5832_v15  ;;  %v5845_v47 = vadd.f32 %v5843_v4, %v5833_v45  ;;  %v5897_v52 = vrot.slane %v5818_v11, %v8909_v40  ;;  %v5901_v53 = vrot.slane %v5819_v36, %v8909_v40 }
 0x2bb   :  { %v5878_v61 = vmul.f32 %v5873_v29, %v8873_v28  ;;  %v5879_v6 = vmul.f32 %v5877_v59, %v8875_v31  ;;  %v5890_v50 = vmul.f32 %v5885_v57, %v8877_v25  ;;  %v5891_v5 = vmul.f32 %v5889_v42, %v8884_v32 }
 0x2bc   :  { %v5856_v55 = vadd.f32 %v5854_v39, %v5844_v2  ;;  %v5857_v60 = vadd.f32 %v5855_v44, %v5845_v47  ;;  %v5909_v0 = vrot.slane %v5818_v11, %v8912_v3  ;;  %v5913_v1 = vrot.slane %v5819_v36, %v8912_v3 }
 0x2bd   :  { %v5902_v12 = vmul.f32 %v5897_v52, %v8886_v33  ;;  %v5903_v48 = vmul.f32 %v5901_v53, %v8888_v30 }
 0x2be   :  { %v5868_v8 = vadd.f32 %v5866_v49, %v5856_v55  ;;  %v5869_v7 = vadd.f32 %v5867_v41, %v5857_v60  ;;  %v5914_v46 = vmul.f32 %v5909_v0, %v8940_v37  ;;  %v5915_v9 = vmul.f32 %v5913_v1, %v8942_v34 }
 0x2c0   :  { %v5880_v58 = vadd.f32 %v5878_v61, %v5868_v8  ;;  %v5881_v63 = vadd.f32 %v5879_v6, %v5869_v7 }
 0x2c2   :  { %v5892_v43 = vadd.f32 %v5890_v50, %v5880_v58  ;;  %v5893_v16 = vadd.f32 %v5891_v5, %v5881_v63 }
 0x2c4   :  { %v5904_v26 = vadd.f32 %v5902_v12, %v5892_v43  ;;  %v5905_v20 = vadd.f32 %v5903_v48, %v5893_v16 }
 0x2c6   :  { %v5916_v62 = vadd.f32 %v5914_v46, %v5904_v26  ;;  %v5917_v4 = vadd.f32 %v5915_v9, %v5905_v20 }
 0x2c8   :  { %v5918_v11 = vadd.f32 %v5916_v62, %v8799_v35  ;;  %v5919_v36 = vadd.f32 %v5917_v4, %v8806_v19  ;;  %v5923_v15 = vrot.slane %v5916_v62, %v6194_v13  ;;  %v5927_v45 = vrot.slane %v5917_v4, %v6194_v13 }
 0x2c9   :  { %v5935_v39 = vrot.slane %v5916_v62, %v6197_v14  ;;  %v5939_v44 = vrot.slane %v5917_v4, %v6197_v14  ;;  %v5947_v29 = vrot.slane %v5916_v62, %v8895_v21  ;;  %v5951_v59 = vrot.slane %v5917_v4, %v8895_v21 }
 0x2ca   :  { %v5928_v57 = vmul.f32 %v5923_v15, %v8849_v17  ;;  %v5929_v42 = vmul.f32 %v5927_v45, %v8851_v18  ;;  %v5959_v35 = vrot.slane %v5916_v62, %v8898_v38  ;;  %v5963_v19 = vrot.slane %v5917_v4, %v8898_v38 }
 0x2cb   :  { %v5940_v2 = vmul.f32 %v5935_v39, %v8853_v22  ;;  %v5941_v13 = vmul.f32 %v5939_v44, %v8855_v23  ;;  %v5952_v14 = vmul.f32 %v5947_v29, %v8857_v56  ;;  %v5953_v41 = vmul.f32 %v5951_v59, %v8863_v51 }
 0x2cc   :  { %v5930_v47 = vadd.f32 %v5928_v57, %v5918_v11  ;;  %v5931_v49 = vadd.f32 %v5929_v42, %v5919_v36  ;;  %v5971_v21 = vrot.slane %v5916_v62, %v8901_v10  ;;  %v5975_v17 = vrot.slane %v5917_v4, %v8901_v10 }
 0x2cd   :  { %v5983_v18 = vrot.slane %v5916_v62, %v8904_v24  ;;  %v5987_v52 = vrot.slane %v5917_v4, %v8904_v24  ;;  %v5964_v22 = vmul.f32 %v5959_v35, %v8865_v27  ;;  %v5965_v23 = vmul.f32 %v5963_v19, %v8867_v54 }
 0x2ce   :  { %v5942_v53 = vadd.f32 %v5940_v2, %v5930_v47  ;;  %v5943_v38 = vadd.f32 %v5941_v13, %v5931_v49  ;;  %v5995_v55 = vrot.slane %v5916_v62, %v8909_v40  ;;  %v5999_v56 = vrot.slane %v5917_v4, %v8909_v40 }
 0x2cf   :  { %v5976_v61 = vmul.f32 %v5971_v21, %v8873_v28  ;;  %v5977_v10 = vmul.f32 %v5975_v17, %v8875_v31  ;;  %v5988_v6 = vmul.f32 %v5983_v18, %v8877_v25  ;;  %v5989_v24 = vmul.f32 %v5987_v52, %v8884_v32 }
 0x2d0   :  { %v5954_v60 = vadd.f32 %v5952_v14, %v5942_v53  ;;  %v5955_v51 = vadd.f32 %v5953_v41, %v5943_v38  ;;  %v6007_v27 = vrot.slane %v5916_v62, %v8912_v3  ;;  %v6011_v54 = vrot.slane %v5917_v4, %v8912_v3 }
 0x2d1   :  { %v6000_v40 = vmul.f32 %v5995_v55, %v8886_v33  ;;  %v6001_v0 = vmul.f32 %v5999_v56, %v8888_v30 }
 0x2d2   :  { %v5966_v50 = vadd.f32 %v5964_v22, %v5954_v60  ;;  %v5967_v5 = vadd.f32 %v5965_v23, %v5955_v51  ;;  %v6012_v31 = vmul.f32 %v6007_v27, %v8940_v37  ;;  %v6013_v25 = vmul.f32 %v6011_v54, %v8942_v34 }
 0x2d4   :  { %v5978_v8 = vadd.f32 %v5976_v61, %v5966_v50  ;;  %v5979_v7 = vadd.f32 %v5977_v10, %v5967_v5 }
 0x2d6   :  { %v5990_v1 = vadd.f32 %v5988_v6, %v5978_v8  ;;  %v5991_v28 = vadd.f32 %v5989_v24, %v5979_v7 }
 0x2d8   :  { %v6002_v58 = vadd.f32 %v6000_v40, %v5990_v1  ;;  %v6003_v32 = vadd.f32 %v6001_v0, %v5991_v28 }
 0x2da   :  { %v6014_v63 = vadd.f32 %v6012_v31, %v6002_v58  ;;  %v6015_v12 = vadd.f32 %v6013_v25, %v6003_v32 }
 0x2dc   :  { %6016 = vst [vmem:[%s9473_s3] sm:$0xff] %v6014_v63  ;;  %6017 = vst [vmem:[%s9473_s3 + $0x8] sm:$0xff] %v6015_v12 }

</bundles_post_ra>
